<compile_context>
chip_gen: v6e
topology: v6e:2x2x1
jax: 0.10.0
libtpu: 0.0.40
codegen_flags: <defaults>
</compile_context>

<pallas_src>
import math

import jax
import jax.numpy as jnp
import numpy as np
from jax.experimental import pallas as pl
from jax.experimental.pallas import tpu as pltpu

C_IN = 3
C_OUT = 8

# packed-weight layout (flat f32[64] in SMEM)
_WK = 0                      # key   weights  (C_OUT*C_IN = 24)
_BK = _WK + C_OUT * C_IN     # key   bias     (8)
_WV = _BK + C_OUT            # value weights  (24)
_BV = _WV + C_OUT * C_IN     # value bias     (8)
_W_TOTAL = _BV + C_OUT       # 64


def _attn_kernel(x_ref, w_ref, o_ref, y3_ref, y7_ref):
    # x_ref  : (B, C_IN, H, W)  VMEM  -- raw NCHW input (no wrapper pad/transpose)
    # w_ref  : (64,)            SMEM  -- packed [wk | bk | wv | bv]
    # o_ref  : (B*C_OUT, Wp, Wp) VMEM -- output, (B, C_OUT)-major merged maps
    # y3_ref : (B, C_OUT, Wp, Hp) VMEM scratch -- key(x_pad) spatially transposed
    # y7_ref : (B, C_OUT, Wp, Hp) VMEM scratch -- value(x_pad) spatially transposed
    B, c_in, H, W = x_ref.shape
    _, c_out, Wp, Hp = y3_ref.shape

    # ---- border of the padded 1x1-conv maps: conv(0) + bias = bias ---------
    for c in range(c_out):
        y3_ref[:, c] = jnp.full((B, Wp, Hp), w_ref[_BK + c], dtype=jnp.float32)
        y7_ref[:, c] = jnp.full((B, Wp, Hp), w_ref[_BV + c], dtype=jnp.float32)

    # ---- interior: 1x1 convs on the spatially transposed input -------------
    # (a 1x1 conv commutes with the spatial transpose, so both maps come out
    #  directly in the "y3" transposed layout; no transpose after the conv)
    xt = jnp.swapaxes(x_ref[...], -1, -2)        # (B, C_IN, W, H)
    k_chans, v_chans = [], []
    for c in range(c_out):
        acc_k = xt[:, 0] * w_ref[_WK + c * c_in]
        acc_v = xt[:, 0] * w_ref[_WV + c * c_in]
        for ci in range(1, c_in):
            acc_k = acc_k + xt[:, ci] * w_ref[_WK + c * c_in + ci]
            acc_v = acc_v + xt[:, ci] * w_ref[_WV + c * c_in + ci]
        k_chans.append(acc_k + w_ref[_BK + c])
        v_chans.append(acc_v + w_ref[_BV + c])
    y3_ref[:, :, 1:Wp - 1, 1:Hp - 1] = jnp.stack(k_chans, axis=1)  # (B,8,W,H)
    y7_ref[:, :, 1:Wp - 1, 1:Hp - 1] = jnp.stack(v_chans, axis=1)

    # ---- v1 = softmax(y3 + 1, dim=channel) ----------------------------------
    y6 = y3_ref[...] + 1.0                        # (B, C_OUT, Wp, Hp)
    m = jnp.max(y6, axis=1, keepdims=True)
    e = jnp.exp(y6 - m)
    s = jnp.sum(e, axis=1, keepdims=True)
    v1 = e * pl.reciprocal(s, approx=True)        # (B, C_OUT, Wp, Hp)

    # ---- v2[b,c,i,j] = sum_h v1[b,c,i,h] * value(x)[b,c,h,j]
    #                  = sum_h v1[b,c,i,h] * y7t[b,c,j,h]
    # one batched MXU matmul over all B*C_OUT maps, contracting the last dims.
    v1_m = v1.reshape(B * c_out, Wp, Hp)          # leading-dim merge: free
    y7_m = y7_ref[...].reshape(B * c_out, Wp, Hp)
    o_ref[...] = jax.lax.dot_general(
        v1_m, y7_m, (((2,), (2,)), ((0,), (0,))),
        preferred_element_type=jnp.float32)       # (B*C_OUT, Wp, Wp)


def model_forward(x, params):
    """x: (B, 3, H, W) float32, NCHW. Returns v2: (B, 8, W+2, W+2)."""
    # query(x) only feeds y4/y5, which are dead w.r.t. the returned value, so
    # wq/bq are accepted but unused (dead-code elimination of the y5 branch).
    _wq, _bq, wk, bk, wv, bv = params
    B, c_in, H, W = x.shape
    Hp, Wp = H + 2, W + 2

    # single flat SMEM operand: one tiny DMA instead of four
    wpack = jnp.concatenate(
        [wk.reshape(-1), bk, wv.reshape(-1), bv]).astype(jnp.float32)

    vmem = pl.BlockSpec(memory_space=pltpu.MemorySpace.VMEM)
    smem = pl.BlockSpec(memory_space=pltpu.MemorySpace.SMEM)

    v2_flat = pl.pallas_call(
        _attn_kernel,
        out_shape=jax.ShapeDtypeStruct((B * C_OUT, Wp, Wp), jnp.float32),
        in_specs=[vmem, smem],
        out_specs=vmem,
        scratch_shapes=[
            pltpu.VMEM((B, C_OUT, Wp, Hp), jnp.float32),   # y3 (key, transposed)
            pltpu.VMEM((B, C_OUT, Wp, Hp), jnp.float32),   # y7 (value, transposed)
        ],
    )(x, wpack)

    # (B*C_OUT, Wp, Wp) -> (B, C_OUT, Wp, Wp): pure metadata reshape, no transpose
    return v2_flat.reshape(B, C_OUT, Wp, Wp)


def _ref_forward(x, params):
    """Pure-JAX reference (mirrors the full PyTorch forward graph)."""
    wq, bq, wk, bk, wv, bv = params
    xp = jnp.pad(x, ((0, 0), (0, 0), (1, 1), (1, 1)))

    def conv(w, b):
        return (jnp.einsum('oc,bchw->bohw', w, xp,
                           precision=jax.lax.Precision.HIGHEST)
                + b[None, :, None, None])

    y1 = conv(wq, bq)
    y2 = conv(wk, bk)
    y3 = jnp.swapaxes(y2, -1, -2)
    y4 = jnp.matmul(y1, y3, precision=jax.lax.Precision.HIGHEST)
    _y5 = y4 / math.sqrt(8.0)                      # dead in the return path
    y6 = y3 + 1.0
    v1 = jax.nn.softmax(y6, axis=1)
    y7 = conv(wv, bv)
    return jnp.matmul(v1, y7, precision=jax.lax.Precision.HIGHEST)


if __name__ == "__main__":
    key = jax.random.PRNGKey(0)
    kx, kwq, kbq, kwk, kbk, kwv, kbv = jax.random.split(key, 7)

    # Small shapes consistent with the module: B=2, C=3, H=W=16 -> output (2, 8, 18, 18)
    x = jax.random.normal(kx, (2, C_IN, 16, 16), dtype=jnp.float32)

    wq = jax.random.normal(kwq, (C_OUT, C_IN), dtype=jnp.float32) * 0.3
    bq = jax.random.normal(kbq, (C_OUT,), dtype=jnp.float32) * 0.1
    wk = jax.random.normal(kwk, (C_OUT, C_IN), dtype=jnp.float32) * 0.3
    bk = jax.random.normal(kbk, (C_OUT,), dtype=jnp.float32) * 0.1
    wv = jax.random.normal(kwv, (C_OUT, C_IN), dtype=jnp.float32) * 0.3
    bv = jax.random.normal(kbv, (C_OUT,), dtype=jnp.float32) * 0.1
    params = (wq, bq, wk, bk, wv, bv)

    out = jax.jit(model_forward)(x, params)
    out = jax.block_until_ready(out)

    ref = _ref_forward(x, params)
    assert out.shape == ref.shape, (out.shape, ref.shape)
    np.testing.assert_allclose(np.asarray(out), np.asarray(ref), rtol=1e-2, atol=1e-2)

    print("KERNEL_OK")
</pallas_src>

<mosaic_0001>
module attributes {stable_mosaic.version = 11 : i64} {
  func.func @_attn_kernel(%arg0: memref<2x3x16x16xf32, #tpu.memory_space<vmem>>, %arg1: memref<64xf32, #tpu.memory_space<smem>>, %arg2: memref<16x18x18xf32, #tpu.memory_space<vmem>>, %arg3: memref<2x8x18x18xf32, #tpu.memory_space<vmem>>, %arg4: memref<2x8x18x18xf32, #tpu.memory_space<vmem>>) attributes {dimension_semantics = [], scalar_prefetch = 0 : i64, scratch_operands = 2 : i64, tpu.core_type = #tpu.core_type<tc>} {
    %c24 = arith.constant 24 : index
    %0 = memref.load %arg1[%c24] : memref<64xf32, #tpu.memory_space<smem>>
    %1 = vector.broadcast %0 : f32 to vector<2x18x18xf32>
    %c0 = arith.constant 0 : index
    %c0_0 = arith.constant 0 : index
    %c0_1 = arith.constant 0 : index
    %c0_2 = arith.constant 0 : index
    %2 = vector.load %arg3[%c0, %c0_0, %c0_1, %c0_2] : memref<2x8x18x18xf32, #tpu.memory_space<vmem>>, vector<2x1x18x18xf32>
    %3 = vector.shape_cast %2 : vector<2x1x18x18xf32> to vector<2x18x18xf32>
    %4 = vector.shape_cast %1 : vector<2x18x18xf32> to vector<2x1x18x18xf32>
    tpu.vector_store %arg3[%c0, %c0_0, %c0_1, %c0_2], %4 {strides = array<i32>} : memref<2x8x18x18xf32, #tpu.memory_space<vmem>>, vector<2x1x18x18xf32>,
    %c56 = arith.constant 56 : index
    %5 = memref.load %arg1[%c56] : memref<64xf32, #tpu.memory_space<smem>>
    %6 = vector.broadcast %5 : f32 to vector<2x18x18xf32>
    %c0_3 = arith.constant 0 : index
    %c0_4 = arith.constant 0 : index
    %c0_5 = arith.constant 0 : index
    %c0_6 = arith.constant 0 : index
    %7 = vector.load %arg4[%c0_3, %c0_4, %c0_5, %c0_6] : memref<2x8x18x18xf32, #tpu.memory_space<vmem>>, vector<2x1x18x18xf32>
    %8 = vector.shape_cast %7 : vector<2x1x18x18xf32> to vector<2x18x18xf32>
    %9 = vector.shape_cast %6 : vector<2x18x18xf32> to vector<2x1x18x18xf32>
    tpu.vector_store %arg4[%c0_3, %c0_4, %c0_5, %c0_6], %9 {strides = array<i32>} : memref<2x8x18x18xf32, #tpu.memory_space<vmem>>, vector<2x1x18x18xf32>,
    %c25 = arith.constant 25 : index
    %10 = memref.load %arg1[%c25] : memref<64xf32, #tpu.memory_space<smem>>
    %11 = vector.broadcast %10 : f32 to vector<2x18x18xf32>
    %c0_7 = arith.constant 0 : index
    %c1 = arith.constant 1 : index
    %c0_8 = arith.constant 0 : index
    %c0_9 = arith.constant 0 : index
    %12 = vector.load %arg3[%c0_7, %c1, %c0_8, %c0_9] : memref<2x8x18x18xf32, #tpu.memory_space<vmem>>, vector<2x1x18x18xf32>
    %13 = vector.shape_cast %12 : vector<2x1x18x18xf32> to vector<2x18x18xf32>
    %14 = vector.shape_cast %11 : vector<2x18x18xf32> to vector<2x1x18x18xf32>
    tpu.vector_store %arg3[%c0_7, %c1, %c0_8, %c0_9], %14 {strides = array<i32>} : memref<2x8x18x18xf32, #tpu.memory_space<vmem>>, vector<2x1x18x18xf32>,
    %c57 = arith.constant 57 : index
    %15 = memref.load %arg1[%c57] : memref<64xf32, #tpu.memory_space<smem>>
    %16 = vector.broadcast %15 : f32 to vector<2x18x18xf32>
    %c0_10 = arith.constant 0 : index
    %c1_11 = arith.constant 1 : index
    %c0_12 = arith.constant 0 : index
    %c0_13 = arith.constant 0 : index
    %17 = vector.load %arg4[%c0_10, %c1_11, %c0_12, %c0_13] : memref<2x8x18x18xf32, #tpu.memory_space<vmem>>, vector<2x1x18x18xf32>
    %18 = vector.shape_cast %17 : vector<2x1x18x18xf32> to vector<2x18x18xf32>
    %19 = vector.shape_cast %16 : vector<2x18x18xf32> to vector<2x1x18x18xf32>
    tpu.vector_store %arg4[%c0_10, %c1_11, %c0_12, %c0_13], %19 {strides = array<i32>} : memref<2x8x18x18xf32, #tpu.memory_space<vmem>>, vector<2x1x18x18xf32>,
    %c26 = arith.constant 26 : index
    %20 = memref.load %arg1[%c26] : memref<64xf32, #tpu.memory_space<smem>>
    %21 = vector.broadcast %20 : f32 to vector<2x18x18xf32>
    %c0_14 = arith.constant 0 : index
    %c2 = arith.constant 2 : index
    %c0_15 = arith.constant 0 : index
    %c0_16 = arith.constant 0 : index
    %22 = vector.load %arg3[%c0_14, %c2, %c0_15, %c0_16] : memref<2x8x18x18xf32, #tpu.memory_space<vmem>>, vector<2x1x18x18xf32>
    %23 = vector.shape_cast %22 : vector<2x1x18x18xf32> to vector<2x18x18xf32>
    %24 = vector.shape_cast %21 : vector<2x18x18xf32> to vector<2x1x18x18xf32>
    tpu.vector_store %arg3[%c0_14, %c2, %c0_15, %c0_16], %24 {strides = array<i32>} : memref<2x8x18x18xf32, #tpu.memory_space<vmem>>, vector<2x1x18x18xf32>,
    %c58 = arith.constant 58 : index
    %25 = memref.load %arg1[%c58] : memref<64xf32, #tpu.memory_space<smem>>
    %26 = vector.broadcast %25 : f32 to vector<2x18x18xf32>
    %c0_17 = arith.constant 0 : index
    %c2_18 = arith.constant 2 : index
    %c0_19 = arith.constant 0 : index
    %c0_20 = arith.constant 0 : index
    %27 = vector.load %arg4[%c0_17, %c2_18, %c0_19, %c0_20] : memref<2x8x18x18xf32, #tpu.memory_space<vmem>>, vector<2x1x18x18xf32>
    %28 = vector.shape_cast %27 : vector<2x1x18x18xf32> to vector<2x18x18xf32>
    %29 = vector.shape_cast %26 : vector<2x18x18xf32> to vector<2x1x18x18xf32>
    tpu.vector_store %arg4[%c0_17, %c2_18, %c0_19, %c0_20], %29 {strides = array<i32>} : memref<2x8x18x18xf32, #tpu.memory_space<vmem>>, vector<2x1x18x18xf32>,
    %c27 = arith.constant 27 : index
    %30 = memref.load %arg1[%c27] : memref<64xf32, #tpu.memory_space<smem>>
    %31 = vector.broadcast %30 : f32 to vector<2x18x18xf32>
    %c0_21 = arith.constant 0 : index
    %c3 = arith.constant 3 : index
    %c0_22 = arith.constant 0 : index
    %c0_23 = arith.constant 0 : index
    %32 = vector.load %arg3[%c0_21, %c3, %c0_22, %c0_23] : memref<2x8x18x18xf32, #tpu.memory_space<vmem>>, vector<2x1x18x18xf32>
    %33 = vector.shape_cast %32 : vector<2x1x18x18xf32> to vector<2x18x18xf32>
    %34 = vector.shape_cast %31 : vector<2x18x18xf32> to vector<2x1x18x18xf32>
    tpu.vector_store %arg3[%c0_21, %c3, %c0_22, %c0_23], %34 {strides = array<i32>} : memref<2x8x18x18xf32, #tpu.memory_space<vmem>>, vector<2x1x18x18xf32>,
    %c59 = arith.constant 59 : index
    %35 = memref.load %arg1[%c59] : memref<64xf32, #tpu.memory_space<smem>>
    %36 = vector.broadcast %35 : f32 to vector<2x18x18xf32>
    %c0_24 = arith.constant 0 : index
    %c3_25 = arith.constant 3 : index
    %c0_26 = arith.constant 0 : index
    %c0_27 = arith.constant 0 : index
    %37 = vector.load %arg4[%c0_24, %c3_25, %c0_26, %c0_27] : memref<2x8x18x18xf32, #tpu.memory_space<vmem>>, vector<2x1x18x18xf32>
    %38 = vector.shape_cast %37 : vector<2x1x18x18xf32> to vector<2x18x18xf32>
    %39 = vector.shape_cast %36 : vector<2x18x18xf32> to vector<2x1x18x18xf32>
    tpu.vector_store %arg4[%c0_24, %c3_25, %c0_26, %c0_27], %39 {strides = array<i32>} : memref<2x8x18x18xf32, #tpu.memory_space<vmem>>, vector<2x1x18x18xf32>,
    %c28 = arith.constant 28 : index
    %40 = memref.load %arg1[%c28] : memref<64xf32, #tpu.memory_space<smem>>
    %41 = vector.broadcast %40 : f32 to vector<2x18x18xf32>
    %c0_28 = arith.constant 0 : index
    %c4 = arith.constant 4 : index
    %c0_29 = arith.constant 0 : index
    %c0_30 = arith.constant 0 : index
    %42 = vector.load %arg3[%c0_28, %c4, %c0_29, %c0_30] : memref<2x8x18x18xf32, #tpu.memory_space<vmem>>, vector<2x1x18x18xf32>
    %43 = vector.shape_cast %42 : vector<2x1x18x18xf32> to vector<2x18x18xf32>
    %44 = vector.shape_cast %41 : vector<2x18x18xf32> to vector<2x1x18x18xf32>
    tpu.vector_store %arg3[%c0_28, %c4, %c0_29, %c0_30], %44 {strides = array<i32>} : memref<2x8x18x18xf32, #tpu.memory_space<vmem>>, vector<2x1x18x18xf32>,
    %c60 = arith.constant 60 : index
    %45 = memref.load %arg1[%c60] : memref<64xf32, #tpu.memory_space<smem>>
    %46 = vector.broadcast %45 : f32 to vector<2x18x18xf32>
    %c0_31 = arith.constant 0 : index
    %c4_32 = arith.constant 4 : index
    %c0_33 = arith.constant 0 : index
    %c0_34 = arith.constant 0 : index
    %47 = vector.load %arg4[%c0_31, %c4_32, %c0_33, %c0_34] : memref<2x8x18x18xf32, #tpu.memory_space<vmem>>, vector<2x1x18x18xf32>
    %48 = vector.shape_cast %47 : vector<2x1x18x18xf32> to vector<2x18x18xf32>
    %49 = vector.shape_cast %46 : vector<2x18x18xf32> to vector<2x1x18x18xf32>
    tpu.vector_store %arg4[%c0_31, %c4_32, %c0_33, %c0_34], %49 {strides = array<i32>} : memref<2x8x18x18xf32, #tpu.memory_space<vmem>>, vector<2x1x18x18xf32>,
    %c29 = arith.constant 29 : index
    %50 = memref.load %arg1[%c29] : memref<64xf32, #tpu.memory_space<smem>>
    %51 = vector.broadcast %50 : f32 to vector<2x18x18xf32>
    %c0_35 = arith.constant 0 : index
    %c5 = arith.constant 5 : index
    %c0_36 = arith.constant 0 : index
    %c0_37 = arith.constant 0 : index
    %52 = vector.load %arg3[%c0_35, %c5, %c0_36, %c0_37] : memref<2x8x18x18xf32, #tpu.memory_space<vmem>>, vector<2x1x18x18xf32>
    %53 = vector.shape_cast %52 : vector<2x1x18x18xf32> to vector<2x18x18xf32>
    %54 = vector.shape_cast %51 : vector<2x18x18xf32> to vector<2x1x18x18xf32>
    tpu.vector_store %arg3[%c0_35, %c5, %c0_36, %c0_37], %54 {strides = array<i32>} : memref<2x8x18x18xf32, #tpu.memory_space<vmem>>, vector<2x1x18x18xf32>,
    %c61 = arith.constant 61 : index
    %55 = memref.load %arg1[%c61] : memref<64xf32, #tpu.memory_space<smem>>
    %56 = vector.broadcast %55 : f32 to vector<2x18x18xf32>
    %c0_38 = arith.constant 0 : index
    %c5_39 = arith.constant 5 : index
    %c0_40 = arith.constant 0 : index
    %c0_41 = arith.constant 0 : index
    %57 = vector.load %arg4[%c0_38, %c5_39, %c0_40, %c0_41] : memref<2x8x18x18xf32, #tpu.memory_space<vmem>>, vector<2x1x18x18xf32>
    %58 = vector.shape_cast %57 : vector<2x1x18x18xf32> to vector<2x18x18xf32>
    %59 = vector.shape_cast %56 : vector<2x18x18xf32> to vector<2x1x18x18xf32>
    tpu.vector_store %arg4[%c0_38, %c5_39, %c0_40, %c0_41], %59 {strides = array<i32>} : memref<2x8x18x18xf32, #tpu.memory_space<vmem>>, vector<2x1x18x18xf32>,
    %c30 = arith.constant 30 : index
    %60 = memref.load %arg1[%c30] : memref<64xf32, #tpu.memory_space<smem>>
    %61 = vector.broadcast %60 : f32 to vector<2x18x18xf32>
    %c0_42 = arith.constant 0 : index
    %c6 = arith.constant 6 : index
    %c0_43 = arith.constant 0 : index
    %c0_44 = arith.constant 0 : index
    %62 = vector.load %arg3[%c0_42, %c6, %c0_43, %c0_44] : memref<2x8x18x18xf32, #tpu.memory_space<vmem>>, vector<2x1x18x18xf32>
    %63 = vector.shape_cast %62 : vector<2x1x18x18xf32> to vector<2x18x18xf32>
    %64 = vector.shape_cast %61 : vector<2x18x18xf32> to vector<2x1x18x18xf32>
    tpu.vector_store %arg3[%c0_42, %c6, %c0_43, %c0_44], %64 {strides = array<i32>} : memref<2x8x18x18xf32, #tpu.memory_space<vmem>>, vector<2x1x18x18xf32>,
    %c62 = arith.constant 62 : index
    %65 = memref.load %arg1[%c62] : memref<64xf32, #tpu.memory_space<smem>>
    %66 = vector.broadcast %65 : f32 to vector<2x18x18xf32>
    %c0_45 = arith.constant 0 : index
    %c6_46 = arith.constant 6 : index
    %c0_47 = arith.constant 0 : index
    %c0_48 = arith.constant 0 : index
    %67 = vector.load %arg4[%c0_45, %c6_46, %c0_47, %c0_48] : memref<2x8x18x18xf32, #tpu.memory_space<vmem>>, vector<2x1x18x18xf32>
    %68 = vector.shape_cast %67 : vector<2x1x18x18xf32> to vector<2x18x18xf32>
    %69 = vector.shape_cast %66 : vector<2x18x18xf32> to vector<2x1x18x18xf32>
    tpu.vector_store %arg4[%c0_45, %c6_46, %c0_47, %c0_48], %69 {strides = array<i32>} : memref<2x8x18x18xf32, #tpu.memory_space<vmem>>, vector<2x1x18x18xf32>,
    %c31 = arith.constant 31 : index
    %70 = memref.load %arg1[%c31] : memref<64xf32, #tpu.memory_space<smem>>
    %71 = vector.broadcast %70 : f32 to vector<2x18x18xf32>
    %c0_49 = arith.constant 0 : index
    %c7 = arith.constant 7 : index
    %c0_50 = arith.constant 0 : index
    %c0_51 = arith.constant 0 : index
    %72 = vector.load %arg3[%c0_49, %c7, %c0_50, %c0_51] : memref<2x8x18x18xf32, #tpu.memory_space<vmem>>, vector<2x1x18x18xf32>
    %73 = vector.shape_cast %72 : vector<2x1x18x18xf32> to vector<2x18x18xf32>
    %74 = vector.shape_cast %71 : vector<2x18x18xf32> to vector<2x1x18x18xf32>
    tpu.vector_store %arg3[%c0_49, %c7, %c0_50, %c0_51], %74 {strides = array<i32>} : memref<2x8x18x18xf32, #tpu.memory_space<vmem>>, vector<2x1x18x18xf32>,
    %c63 = arith.constant 63 : index
    %75 = memref.load %arg1[%c63] : memref<64xf32, #tpu.memory_space<smem>>
    %76 = vector.broadcast %75 : f32 to vector<2x18x18xf32>
    %c0_52 = arith.constant 0 : index
    %c7_53 = arith.constant 7 : index
    %c0_54 = arith.constant 0 : index
    %c0_55 = arith.constant 0 : index
    %77 = vector.load %arg4[%c0_52, %c7_53, %c0_54, %c0_55] : memref<2x8x18x18xf32, #tpu.memory_space<vmem>>, vector<2x1x18x18xf32>
    %78 = vector.shape_cast %77 : vector<2x1x18x18xf32> to vector<2x18x18xf32>
    %79 = vector.shape_cast %76 : vector<2x18x18xf32> to vector<2x1x18x18xf32>
    tpu.vector_store %arg4[%c0_52, %c7_53, %c0_54, %c0_55], %79 {strides = array<i32>} : memref<2x8x18x18xf32, #tpu.memory_space<vmem>>, vector<2x1x18x18xf32>,
    %c0_56 = arith.constant 0 : index
    %c0_57 = arith.constant 0 : index
    %c0_58 = arith.constant 0 : index
    %c0_59 = arith.constant 0 : index
    %80 = vector.load %arg0[%c0_56, %c0_57, %c0_58, %c0_59] : memref<2x3x16x16xf32, #tpu.memory_space<vmem>>, vector<2x3x16x16xf32>
    %81 = tpu.transpose %80, [0, 1, 3, 2] : vector<2x3x16x16xf32> -> vector<2x3x16x16xf32>
    %82 = vector.extract_strided_slice %81 {offsets = [0, 0, 0, 0], sizes = [2, 1, 16, 16], strides = [1, 1, 1, 1]} : vector<2x3x16x16xf32> to vector<2x1x16x16xf32>
    %83 = vector.shape_cast %82 : vector<2x1x16x16xf32> to vector<2x16x16xf32>
    %c0_60 = arith.constant 0 : index
    %84 = memref.load %arg1[%c0_60] : memref<64xf32, #tpu.memory_space<smem>>
    %85 = vector.broadcast %84 : f32 to vector<2x16x16xf32>
    %86 = arith.mulf %83, %85 : vector<2x16x16xf32>
    %87 = vector.extract_strided_slice %81 {offsets = [0, 0, 0, 0], sizes = [2, 1, 16, 16], strides = [1, 1, 1, 1]} : vector<2x3x16x16xf32> to vector<2x1x16x16xf32>
    %88 = vector.shape_cast %87 : vector<2x1x16x16xf32> to vector<2x16x16xf32>
    %c32 = arith.constant 32 : index
    %89 = memref.load %arg1[%c32] : memref<64xf32, #tpu.memory_space<smem>>
    %90 = vector.broadcast %89 : f32 to vector<2x16x16xf32>
    %91 = arith.mulf %88, %90 : vector<2x16x16xf32>
    %92 = vector.extract_strided_slice %81 {offsets = [0, 1, 0, 0], sizes = [2, 1, 16, 16], strides = [1, 1, 1, 1]} : vector<2x3x16x16xf32> to vector<2x1x16x16xf32>
    %93 = vector.shape_cast %92 : vector<2x1x16x16xf32> to vector<2x16x16xf32>
    %c1_61 = arith.constant 1 : index
    %94 = memref.load %arg1[%c1_61] : memref<64xf32, #tpu.memory_space<smem>>
    %95 = vector.broadcast %94 : f32 to vector<2x16x16xf32>
    %96 = arith.mulf %93, %95 : vector<2x16x16xf32>
    %97 = arith.addf %86, %96 : vector<2x16x16xf32>
    %98 = vector.extract_strided_slice %81 {offsets = [0, 1, 0, 0], sizes = [2, 1, 16, 16], strides = [1, 1, 1, 1]} : vector<2x3x16x16xf32> to vector<2x1x16x16xf32>
    %99 = vector.shape_cast %98 : vector<2x1x16x16xf32> to vector<2x16x16xf32>
    %c33 = arith.constant 33 : index
    %100 = memref.load %arg1[%c33] : memref<64xf32, #tpu.memory_space<smem>>
    %101 = vector.broadcast %100 : f32 to vector<2x16x16xf32>
    %102 = arith.mulf %99, %101 : vector<2x16x16xf32>
    %103 = arith.addf %91, %102 : vector<2x16x16xf32>
    %104 = vector.extract_strided_slice %81 {offsets = [0, 2, 0, 0], sizes = [2, 1, 16, 16], strides = [1, 1, 1, 1]} : vector<2x3x16x16xf32> to vector<2x1x16x16xf32>
    %105 = vector.shape_cast %104 : vector<2x1x16x16xf32> to vector<2x16x16xf32>
    %c2_62 = arith.constant 2 : index
    %106 = memref.load %arg1[%c2_62] : memref<64xf32, #tpu.memory_space<smem>>
    %107 = vector.broadcast %106 : f32 to vector<2x16x16xf32>
    %108 = arith.mulf %105, %107 : vector<2x16x16xf32>
    %109 = arith.addf %97, %108 : vector<2x16x16xf32>
    %110 = vector.extract_strided_slice %81 {offsets = [0, 2, 0, 0], sizes = [2, 1, 16, 16], strides = [1, 1, 1, 1]} : vector<2x3x16x16xf32> to vector<2x1x16x16xf32>
    %111 = vector.shape_cast %110 : vector<2x1x16x16xf32> to vector<2x16x16xf32>
    %c34 = arith.constant 34 : index
    %112 = memref.load %arg1[%c34] : memref<64xf32, #tpu.memory_space<smem>>
    %113 = vector.broadcast %112 : f32 to vector<2x16x16xf32>
    %114 = arith.mulf %111, %113 : vector<2x16x16xf32>
    %115 = arith.addf %103, %114 : vector<2x16x16xf32>
    %c24_63 = arith.constant 24 : index
    %116 = memref.load %arg1[%c24_63] : memref<64xf32, #tpu.memory_space<smem>>
    %117 = vector.broadcast %116 : f32 to vector<2x16x16xf32>
    %118 = arith.addf %109, %117 : vector<2x16x16xf32>
    %c56_64 = arith.constant 56 : index
    %119 = memref.load %arg1[%c56_64] : memref<64xf32, #tpu.memory_space<smem>>
    %120 = vector.broadcast %119 : f32 to vector<2x16x16xf32>
    %121 = arith.addf %115, %120 : vector<2x16x16xf32>
    %122 = vector.extract_strided_slice %81 {offsets = [0, 0, 0, 0], sizes = [2, 1, 16, 16], strides = [1, 1, 1, 1]} : vector<2x3x16x16xf32> to vector<2x1x16x16xf32>
    %123 = vector.shape_cast %122 : vector<2x1x16x16xf32> to vector<2x16x16xf32>
    %c3_65 = arith.constant 3 : index
    %124 = memref.load %arg1[%c3_65] : memref<64xf32, #tpu.memory_space<smem>>
    %125 = vector.broadcast %124 : f32 to vector<2x16x16xf32>
    %126 = arith.mulf %123, %125 : vector<2x16x16xf32>
    %127 = vector.extract_strided_slice %81 {offsets = [0, 0, 0, 0], sizes = [2, 1, 16, 16], strides = [1, 1, 1, 1]} : vector<2x3x16x16xf32> to vector<2x1x16x16xf32>
    %128 = vector.shape_cast %127 : vector<2x1x16x16xf32> to vector<2x16x16xf32>
    %c35 = arith.constant 35 : index
    %129 = memref.load %arg1[%c35] : memref<64xf32, #tpu.memory_space<smem>>
    %130 = vector.broadcast %129 : f32 to vector<2x16x16xf32>
    %131 = arith.mulf %128, %130 : vector<2x16x16xf32>
    %132 = vector.extract_strided_slice %81 {offsets = [0, 1, 0, 0], sizes = [2, 1, 16, 16], strides = [1, 1, 1, 1]} : vector<2x3x16x16xf32> to vector<2x1x16x16xf32>
    %133 = vector.shape_cast %132 : vector<2x1x16x16xf32> to vector<2x16x16xf32>
    %c4_66 = arith.constant 4 : index
    %134 = memref.load %arg1[%c4_66] : memref<64xf32, #tpu.memory_space<smem>>
    %135 = vector.broadcast %134 : f32 to vector<2x16x16xf32>
    %136 = arith.mulf %133, %135 : vector<2x16x16xf32>
    %137 = arith.addf %126, %136 : vector<2x16x16xf32>
    %138 = vector.extract_strided_slice %81 {offsets = [0, 1, 0, 0], sizes = [2, 1, 16, 16], strides = [1, 1, 1, 1]} : vector<2x3x16x16xf32> to vector<2x1x16x16xf32>
    %139 = vector.shape_cast %138 : vector<2x1x16x16xf32> to vector<2x16x16xf32>
    %c36 = arith.constant 36 : index
    %140 = memref.load %arg1[%c36] : memref<64xf32, #tpu.memory_space<smem>>
    %141 = vector.broadcast %140 : f32 to vector<2x16x16xf32>
    %142 = arith.mulf %139, %141 : vector<2x16x16xf32>
    %143 = arith.addf %131, %142 : vector<2x16x16xf32>
    %144 = vector.extract_strided_slice %81 {offsets = [0, 2, 0, 0], sizes = [2, 1, 16, 16], strides = [1, 1, 1, 1]} : vector<2x3x16x16xf32> to vector<2x1x16x16xf32>
    %145 = vector.shape_cast %144 : vector<2x1x16x16xf32> to vector<2x16x16xf32>
    %c5_67 = arith.constant 5 : index
    %146 = memref.load %arg1[%c5_67] : memref<64xf32, #tpu.memory_space<smem>>
    %147 = vector.broadcast %146 : f32 to vector<2x16x16xf32>
    %148 = arith.mulf %145, %147 : vector<2x16x16xf32>
    %149 = arith.addf %137, %148 : vector<2x16x16xf32>
    %150 = vector.extract_strided_slice %81 {offsets = [0, 2, 0, 0], sizes = [2, 1, 16, 16], strides = [1, 1, 1, 1]} : vector<2x3x16x16xf32> to vector<2x1x16x16xf32>
    %151 = vector.shape_cast %150 : vector<2x1x16x16xf32> to vector<2x16x16xf32>
    %c37 = arith.constant 37 : index
    %152 = memref.load %arg1[%c37] : memref<64xf32, #tpu.memory_space<smem>>
    %153 = vector.broadcast %152 : f32 to vector<2x16x16xf32>
    %154 = arith.mulf %151, %153 : vector<2x16x16xf32>
    %155 = arith.addf %143, %154 : vector<2x16x16xf32>
    %c25_68 = arith.constant 25 : index
    %156 = memref.load %arg1[%c25_68] : memref<64xf32, #tpu.memory_space<smem>>
    %157 = vector.broadcast %156 : f32 to vector<2x16x16xf32>
    %158 = arith.addf %149, %157 : vector<2x16x16xf32>
    %c57_69 = arith.constant 57 : index
    %159 = memref.load %arg1[%c57_69] : memref<64xf32, #tpu.memory_space<smem>>
    %160 = vector.broadcast %159 : f32 to vector<2x16x16xf32>
    %161 = arith.addf %155, %160 : vector<2x16x16xf32>
    %162 = vector.extract_strided_slice %81 {offsets = [0, 0, 0, 0], sizes = [2, 1, 16, 16], strides = [1, 1, 1, 1]} : vector<2x3x16x16xf32> to vector<2x1x16x16xf32>
    %163 = vector.shape_cast %162 : vector<2x1x16x16xf32> to vector<2x16x16xf32>
    %c6_70 = arith.constant 6 : index
    %164 = memref.load %arg1[%c6_70] : memref<64xf32, #tpu.memory_space<smem>>
    %165 = vector.broadcast %164 : f32 to vector<2x16x16xf32>
    %166 = arith.mulf %163, %165 : vector<2x16x16xf32>
    %167 = vector.extract_strided_slice %81 {offsets = [0, 0, 0, 0], sizes = [2, 1, 16, 16], strides = [1, 1, 1, 1]} : vector<2x3x16x16xf32> to vector<2x1x16x16xf32>
    %168 = vector.shape_cast %167 : vector<2x1x16x16xf32> to vector<2x16x16xf32>
    %c38 = arith.constant 38 : index
    %169 = memref.load %arg1[%c38] : memref<64xf32, #tpu.memory_space<smem>>
    %170 = vector.broadcast %169 : f32 to vector<2x16x16xf32>
    %171 = arith.mulf %168, %170 : vector<2x16x16xf32>
    %172 = vector.extract_strided_slice %81 {offsets = [0, 1, 0, 0], sizes = [2, 1, 16, 16], strides = [1, 1, 1, 1]} : vector<2x3x16x16xf32> to vector<2x1x16x16xf32>
    %173 = vector.shape_cast %172 : vector<2x1x16x16xf32> to vector<2x16x16xf32>
    %c7_71 = arith.constant 7 : index
    %174 = memref.load %arg1[%c7_71] : memref<64xf32, #tpu.memory_space<smem>>
    %175 = vector.broadcast %174 : f32 to vector<2x16x16xf32>
    %176 = arith.mulf %173, %175 : vector<2x16x16xf32>
    %177 = arith.addf %166, %176 : vector<2x16x16xf32>
    %178 = vector.extract_strided_slice %81 {offsets = [0, 1, 0, 0], sizes = [2, 1, 16, 16], strides = [1, 1, 1, 1]} : vector<2x3x16x16xf32> to vector<2x1x16x16xf32>
    %179 = vector.shape_cast %178 : vector<2x1x16x16xf32> to vector<2x16x16xf32>
    %c39 = arith.constant 39 : index
    %180 = memref.load %arg1[%c39] : memref<64xf32, #tpu.memory_space<smem>>
    %181 = vector.broadcast %180 : f32 to vector<2x16x16xf32>
    %182 = arith.mulf %179, %181 : vector<2x16x16xf32>
    %183 = arith.addf %171, %182 : vector<2x16x16xf32>
    %184 = vector.extract_strided_slice %81 {offsets = [0, 2, 0, 0], sizes = [2, 1, 16, 16], strides = [1, 1, 1, 1]} : vector<2x3x16x16xf32> to vector<2x1x16x16xf32>
    %185 = vector.shape_cast %184 : vector<2x1x16x16xf32> to vector<2x16x16xf32>
    %c8 = arith.constant 8 : index
    %186 = memref.load %arg1[%c8] : memref<64xf32, #tpu.memory_space<smem>>
    %187 = vector.broadcast %186 : f32 to vector<2x16x16xf32>
    %188 = arith.mulf %185, %187 : vector<2x16x16xf32>
    %189 = arith.addf %177, %188 : vector<2x16x16xf32>
    %190 = vector.extract_strided_slice %81 {offsets = [0, 2, 0, 0], sizes = [2, 1, 16, 16], strides = [1, 1, 1, 1]} : vector<2x3x16x16xf32> to vector<2x1x16x16xf32>
    %191 = vector.shape_cast %190 : vector<2x1x16x16xf32> to vector<2x16x16xf32>
    %c40 = arith.constant 40 : index
    %192 = memref.load %arg1[%c40] : memref<64xf32, #tpu.memory_space<smem>>
    %193 = vector.broadcast %192 : f32 to vector<2x16x16xf32>
    %194 = arith.mulf %191, %193 : vector<2x16x16xf32>
    %195 = arith.addf %183, %194 : vector<2x16x16xf32>
    %c26_72 = arith.constant 26 : index
    %196 = memref.load %arg1[%c26_72] : memref<64xf32, #tpu.memory_space<smem>>
    %197 = vector.broadcast %196 : f32 to vector<2x16x16xf32>
    %198 = arith.addf %189, %197 : vector<2x16x16xf32>
    %c58_73 = arith.constant 58 : index
    %199 = memref.load %arg1[%c58_73] : memref<64xf32, #tpu.memory_space<smem>>
    %200 = vector.broadcast %199 : f32 to vector<2x16x16xf32>
    %201 = arith.addf %195, %200 : vector<2x16x16xf32>
    %202 = vector.extract_strided_slice %81 {offsets = [0, 0, 0, 0], sizes = [2, 1, 16, 16], strides = [1, 1, 1, 1]} : vector<2x3x16x16xf32> to vector<2x1x16x16xf32>
    %203 = vector.shape_cast %202 : vector<2x1x16x16xf32> to vector<2x16x16xf32>
    %c9 = arith.constant 9 : index
    %204 = memref.load %arg1[%c9] : memref<64xf32, #tpu.memory_space<smem>>
    %205 = vector.broadcast %204 : f32 to vector<2x16x16xf32>
    %206 = arith.mulf %203, %205 : vector<2x16x16xf32>
    %207 = vector.extract_strided_slice %81 {offsets = [0, 0, 0, 0], sizes = [2, 1, 16, 16], strides = [1, 1, 1, 1]} : vector<2x3x16x16xf32> to vector<2x1x16x16xf32>
    %208 = vector.shape_cast %207 : vector<2x1x16x16xf32> to vector<2x16x16xf32>
    %c41 = arith.constant 41 : index
    %209 = memref.load %arg1[%c41] : memref<64xf32, #tpu.memory_space<smem>>
    %210 = vector.broadcast %209 : f32 to vector<2x16x16xf32>
    %211 = arith.mulf %208, %210 : vector<2x16x16xf32>
    %212 = vector.extract_strided_slice %81 {offsets = [0, 1, 0, 0], sizes = [2, 1, 16, 16], strides = [1, 1, 1, 1]} : vector<2x3x16x16xf32> to vector<2x1x16x16xf32>
    %213 = vector.shape_cast %212 : vector<2x1x16x16xf32> to vector<2x16x16xf32>
    %c10 = arith.constant 10 : index
    %214 = memref.load %arg1[%c10] : memref<64xf32, #tpu.memory_space<smem>>
    %215 = vector.broadcast %214 : f32 to vector<2x16x16xf32>
    %216 = arith.mulf %213, %215 : vector<2x16x16xf32>
    %217 = arith.addf %206, %216 : vector<2x16x16xf32>
    %218 = vector.extract_strided_slice %81 {offsets = [0, 1, 0, 0], sizes = [2, 1, 16, 16], strides = [1, 1, 1, 1]} : vector<2x3x16x16xf32> to vector<2x1x16x16xf32>
    %219 = vector.shape_cast %218 : vector<2x1x16x16xf32> to vector<2x16x16xf32>
    %c42 = arith.constant 42 : index
    %220 = memref.load %arg1[%c42] : memref<64xf32, #tpu.memory_space<smem>>
    %221 = vector.broadcast %220 : f32 to vector<2x16x16xf32>
    %222 = arith.mulf %219, %221 : vector<2x16x16xf32>
    %223 = arith.addf %211, %222 : vector<2x16x16xf32>
    %224 = vector.extract_strided_slice %81 {offsets = [0, 2, 0, 0], sizes = [2, 1, 16, 16], strides = [1, 1, 1, 1]} : vector<2x3x16x16xf32> to vector<2x1x16x16xf32>
    %225 = vector.shape_cast %224 : vector<2x1x16x16xf32> to vector<2x16x16xf32>
    %c11 = arith.constant 11 : index
    %226 = memref.load %arg1[%c11] : memref<64xf32, #tpu.memory_space<smem>>
    %227 = vector.broadcast %226 : f32 to vector<2x16x16xf32>
    %228 = arith.mulf %225, %227 : vector<2x16x16xf32>
    %229 = arith.addf %217, %228 : vector<2x16x16xf32>
    %230 = vector.extract_strided_slice %81 {offsets = [0, 2, 0, 0], sizes = [2, 1, 16, 16], strides = [1, 1, 1, 1]} : vector<2x3x16x16xf32> to vector<2x1x16x16xf32>
    %231 = vector.shape_cast %230 : vector<2x1x16x16xf32> to vector<2x16x16xf32>
    %c43 = arith.constant 43 : index
    %232 = memref.load %arg1[%c43] : memref<64xf32, #tpu.memory_space<smem>>
    %233 = vector.broadcast %232 : f32 to vector<2x16x16xf32>
    %234 = arith.mulf %231, %233 : vector<2x16x16xf32>
    %235 = arith.addf %223, %234 : vector<2x16x16xf32>
    %c27_74 = arith.constant 27 : index
    %236 = memref.load %arg1[%c27_74] : memref<64xf32, #tpu.memory_space<smem>>
    %237 = vector.broadcast %236 : f32 to vector<2x16x16xf32>
    %238 = arith.addf %229, %237 : vector<2x16x16xf32>
    %c59_75 = arith.constant 59 : index
    %239 = memref.load %arg1[%c59_75] : memref<64xf32, #tpu.memory_space<smem>>
    %240 = vector.broadcast %239 : f32 to vector<2x16x16xf32>
    %241 = arith.addf %235, %240 : vector<2x16x16xf32>
    %242 = vector.extract_strided_slice %81 {offsets = [0, 0, 0, 0], sizes = [2, 1, 16, 16], strides = [1, 1, 1, 1]} : vector<2x3x16x16xf32> to vector<2x1x16x16xf32>
    %243 = vector.shape_cast %242 : vector<2x1x16x16xf32> to vector<2x16x16xf32>
    %c12 = arith.constant 12 : index
    %244 = memref.load %arg1[%c12] : memref<64xf32, #tpu.memory_space<smem>>
    %245 = vector.broadcast %244 : f32 to vector<2x16x16xf32>
    %246 = arith.mulf %243, %245 : vector<2x16x16xf32>
    %247 = vector.extract_strided_slice %81 {offsets = [0, 0, 0, 0], sizes = [2, 1, 16, 16], strides = [1, 1, 1, 1]} : vector<2x3x16x16xf32> to vector<2x1x16x16xf32>
    %248 = vector.shape_cast %247 : vector<2x1x16x16xf32> to vector<2x16x16xf32>
    %c44 = arith.constant 44 : index
    %249 = memref.load %arg1[%c44] : memref<64xf32, #tpu.memory_space<smem>>
    %250 = vector.broadcast %249 : f32 to vector<2x16x16xf32>
    %251 = arith.mulf %248, %250 : vector<2x16x16xf32>
    %252 = vector.extract_strided_slice %81 {offsets = [0, 1, 0, 0], sizes = [2, 1, 16, 16], strides = [1, 1, 1, 1]} : vector<2x3x16x16xf32> to vector<2x1x16x16xf32>
    %253 = vector.shape_cast %252 : vector<2x1x16x16xf32> to vector<2x16x16xf32>
    %c13 = arith.constant 13 : index
    %254 = memref.load %arg1[%c13] : memref<64xf32, #tpu.memory_space<smem>>
    %255 = vector.broadcast %254 : f32 to vector<2x16x16xf32>
    %256 = arith.mulf %253, %255 : vector<2x16x16xf32>
    %257 = arith.addf %246, %256 : vector<2x16x16xf32>
    %258 = vector.extract_strided_slice %81 {offsets = [0, 1, 0, 0], sizes = [2, 1, 16, 16], strides = [1, 1, 1, 1]} : vector<2x3x16x16xf32> to vector<2x1x16x16xf32>
    %259 = vector.shape_cast %258 : vector<2x1x16x16xf32> to vector<2x16x16xf32>
    %c45 = arith.constant 45 : index
    %260 = memref.load %arg1[%c45] : memref<64xf32, #tpu.memory_space<smem>>
    %261 = vector.broadcast %260 : f32 to vector<2x16x16xf32>
    %262 = arith.mulf %259, %261 : vector<2x16x16xf32>
    %263 = arith.addf %251, %262 : vector<2x16x16xf32>
    %264 = vector.extract_strided_slice %81 {offsets = [0, 2, 0, 0], sizes = [2, 1, 16, 16], strides = [1, 1, 1, 1]} : vector<2x3x16x16xf32> to vector<2x1x16x16xf32>
    %265 = vector.shape_cast %264 : vector<2x1x16x16xf32> to vector<2x16x16xf32>
    %c14 = arith.constant 14 : index
    %266 = memref.load %arg1[%c14] : memref<64xf32, #tpu.memory_space<smem>>
    %267 = vector.broadcast %266 : f32 to vector<2x16x16xf32>
    %268 = arith.mulf %265, %267 : vector<2x16x16xf32>
    %269 = arith.addf %257, %268 : vector<2x16x16xf32>
    %270 = vector.extract_strided_slice %81 {offsets = [0, 2, 0, 0], sizes = [2, 1, 16, 16], strides = [1, 1, 1, 1]} : vector<2x3x16x16xf32> to vector<2x1x16x16xf32>
    %271 = vector.shape_cast %270 : vector<2x1x16x16xf32> to vector<2x16x16xf32>
    %c46 = arith.constant 46 : index
    %272 = memref.load %arg1[%c46] : memref<64xf32, #tpu.memory_space<smem>>
    %273 = vector.broadcast %272 : f32 to vector<2x16x16xf32>
    %274 = arith.mulf %271, %273 : vector<2x16x16xf32>
    %275 = arith.addf %263, %274 : vector<2x16x16xf32>
    %c28_76 = arith.constant 28 : index
    %276 = memref.load %arg1[%c28_76] : memref<64xf32, #tpu.memory_space<smem>>
    %277 = vector.broadcast %276 : f32 to vector<2x16x16xf32>
    %278 = arith.addf %269, %277 : vector<2x16x16xf32>
    %c60_77 = arith.constant 60 : index
    %279 = memref.load %arg1[%c60_77] : memref<64xf32, #tpu.memory_space<smem>>
    %280 = vector.broadcast %279 : f32 to vector<2x16x16xf32>
    %281 = arith.addf %275, %280 : vector<2x16x16xf32>
    %282 = vector.extract_strided_slice %81 {offsets = [0, 0, 0, 0], sizes = [2, 1, 16, 16], strides = [1, 1, 1, 1]} : vector<2x3x16x16xf32> to vector<2x1x16x16xf32>
    %283 = vector.shape_cast %282 : vector<2x1x16x16xf32> to vector<2x16x16xf32>
    %c15 = arith.constant 15 : index
    %284 = memref.load %arg1[%c15] : memref<64xf32, #tpu.memory_space<smem>>
    %285 = vector.broadcast %284 : f32 to vector<2x16x16xf32>
    %286 = arith.mulf %283, %285 : vector<2x16x16xf32>
    %287 = vector.extract_strided_slice %81 {offsets = [0, 0, 0, 0], sizes = [2, 1, 16, 16], strides = [1, 1, 1, 1]} : vector<2x3x16x16xf32> to vector<2x1x16x16xf32>
    %288 = vector.shape_cast %287 : vector<2x1x16x16xf32> to vector<2x16x16xf32>
    %c47 = arith.constant 47 : index
    %289 = memref.load %arg1[%c47] : memref<64xf32, #tpu.memory_space<smem>>
    %290 = vector.broadcast %289 : f32 to vector<2x16x16xf32>
    %291 = arith.mulf %288, %290 : vector<2x16x16xf32>
    %292 = vector.extract_strided_slice %81 {offsets = [0, 1, 0, 0], sizes = [2, 1, 16, 16], strides = [1, 1, 1, 1]} : vector<2x3x16x16xf32> to vector<2x1x16x16xf32>
    %293 = vector.shape_cast %292 : vector<2x1x16x16xf32> to vector<2x16x16xf32>
    %c16 = arith.constant 16 : index
    %294 = memref.load %arg1[%c16] : memref<64xf32, #tpu.memory_space<smem>>
    %295 = vector.broadcast %294 : f32 to vector<2x16x16xf32>
    %296 = arith.mulf %293, %295 : vector<2x16x16xf32>
    %297 = arith.addf %286, %296 : vector<2x16x16xf32>
    %298 = vector.extract_strided_slice %81 {offsets = [0, 1, 0, 0], sizes = [2, 1, 16, 16], strides = [1, 1, 1, 1]} : vector<2x3x16x16xf32> to vector<2x1x16x16xf32>
    %299 = vector.shape_cast %298 : vector<2x1x16x16xf32> to vector<2x16x16xf32>
    %c48 = arith.constant 48 : index
    %300 = memref.load %arg1[%c48] : memref<64xf32, #tpu.memory_space<smem>>
    %301 = vector.broadcast %300 : f32 to vector<2x16x16xf32>
    %302 = arith.mulf %299, %301 : vector<2x16x16xf32>
    %303 = arith.addf %291, %302 : vector<2x16x16xf32>
    %304 = vector.extract_strided_slice %81 {offsets = [0, 2, 0, 0], sizes = [2, 1, 16, 16], strides = [1, 1, 1, 1]} : vector<2x3x16x16xf32> to vector<2x1x16x16xf32>
    %305 = vector.shape_cast %304 : vector<2x1x16x16xf32> to vector<2x16x16xf32>
    %c17 = arith.constant 17 : index
    %306 = memref.load %arg1[%c17] : memref<64xf32, #tpu.memory_space<smem>>
    %307 = vector.broadcast %306 : f32 to vector<2x16x16xf32>
    %308 = arith.mulf %305, %307 : vector<2x16x16xf32>
    %309 = arith.addf %297, %308 : vector<2x16x16xf32>
    %310 = vector.extract_strided_slice %81 {offsets = [0, 2, 0, 0], sizes = [2, 1, 16, 16], strides = [1, 1, 1, 1]} : vector<2x3x16x16xf32> to vector<2x1x16x16xf32>
    %311 = vector.shape_cast %310 : vector<2x1x16x16xf32> to vector<2x16x16xf32>
    %c49 = arith.constant 49 : index
    %312 = memref.load %arg1[%c49] : memref<64xf32, #tpu.memory_space<smem>>
    %313 = vector.broadcast %312 : f32 to vector<2x16x16xf32>
    %314 = arith.mulf %311, %313 : vector<2x16x16xf32>
    %315 = arith.addf %303, %314 : vector<2x16x16xf32>
    %c29_78 = arith.constant 29 : index
    %316 = memref.load %arg1[%c29_78] : memref<64xf32, #tpu.memory_space<smem>>
    %317 = vector.broadcast %316 : f32 to vector<2x16x16xf32>
    %318 = arith.addf %309, %317 : vector<2x16x16xf32>
    %c61_79 = arith.constant 61 : index
    %319 = memref.load %arg1[%c61_79] : memref<64xf32, #tpu.memory_space<smem>>
    %320 = vector.broadcast %319 : f32 to vector<2x16x16xf32>
    %321 = arith.addf %315, %320 : vector<2x16x16xf32>
    %322 = vector.extract_strided_slice %81 {offsets = [0, 0, 0, 0], sizes = [2, 1, 16, 16], strides = [1, 1, 1, 1]} : vector<2x3x16x16xf32> to vector<2x1x16x16xf32>
    %323 = vector.shape_cast %322 : vector<2x1x16x16xf32> to vector<2x16x16xf32>
    %c18 = arith.constant 18 : index
    %324 = memref.load %arg1[%c18] : memref<64xf32, #tpu.memory_space<smem>>
    %325 = vector.broadcast %324 : f32 to vector<2x16x16xf32>
    %326 = arith.mulf %323, %325 : vector<2x16x16xf32>
    %327 = vector.extract_strided_slice %81 {offsets = [0, 0, 0, 0], sizes = [2, 1, 16, 16], strides = [1, 1, 1, 1]} : vector<2x3x16x16xf32> to vector<2x1x16x16xf32>
    %328 = vector.shape_cast %327 : vector<2x1x16x16xf32> to vector<2x16x16xf32>
    %c50 = arith.constant 50 : index
    %329 = memref.load %arg1[%c50] : memref<64xf32, #tpu.memory_space<smem>>
    %330 = vector.broadcast %329 : f32 to vector<2x16x16xf32>
    %331 = arith.mulf %328, %330 : vector<2x16x16xf32>
    %332 = vector.extract_strided_slice %81 {offsets = [0, 1, 0, 0], sizes = [2, 1, 16, 16], strides = [1, 1, 1, 1]} : vector<2x3x16x16xf32> to vector<2x1x16x16xf32>
    %333 = vector.shape_cast %332 : vector<2x1x16x16xf32> to vector<2x16x16xf32>
    %c19 = arith.constant 19 : index
    %334 = memref.load %arg1[%c19] : memref<64xf32, #tpu.memory_space<smem>>
    %335 = vector.broadcast %334 : f32 to vector<2x16x16xf32>
    %336 = arith.mulf %333, %335 : vector<2x16x16xf32>
    %337 = arith.addf %326, %336 : vector<2x16x16xf32>
    %338 = vector.extract_strided_slice %81 {offsets = [0, 1, 0, 0], sizes = [2, 1, 16, 16], strides = [1, 1, 1, 1]} : vector<2x3x16x16xf32> to vector<2x1x16x16xf32>
    %339 = vector.shape_cast %338 : vector<2x1x16x16xf32> to vector<2x16x16xf32>
    %c51 = arith.constant 51 : index
    %340 = memref.load %arg1[%c51] : memref<64xf32, #tpu.memory_space<smem>>
    %341 = vector.broadcast %340 : f32 to vector<2x16x16xf32>
    %342 = arith.mulf %339, %341 : vector<2x16x16xf32>
    %343 = arith.addf %331, %342 : vector<2x16x16xf32>
    %344 = vector.extract_strided_slice %81 {offsets = [0, 2, 0, 0], sizes = [2, 1, 16, 16], strides = [1, 1, 1, 1]} : vector<2x3x16x16xf32> to vector<2x1x16x16xf32>
    %345 = vector.shape_cast %344 : vector<2x1x16x16xf32> to vector<2x16x16xf32>
    %c20 = arith.constant 20 : index
    %346 = memref.load %arg1[%c20] : memref<64xf32, #tpu.memory_space<smem>>
    %347 = vector.broadcast %346 : f32 to vector<2x16x16xf32>
    %348 = arith.mulf %345, %347 : vector<2x16x16xf32>
    %349 = arith.addf %337, %348 : vector<2x16x16xf32>
    %350 = vector.extract_strided_slice %81 {offsets = [0, 2, 0, 0], sizes = [2, 1, 16, 16], strides = [1, 1, 1, 1]} : vector<2x3x16x16xf32> to vector<2x1x16x16xf32>
    %351 = vector.shape_cast %350 : vector<2x1x16x16xf32> to vector<2x16x16xf32>
    %c52 = arith.constant 52 : index
    %352 = memref.load %arg1[%c52] : memref<64xf32, #tpu.memory_space<smem>>
    %353 = vector.broadcast %352 : f32 to vector<2x16x16xf32>
    %354 = arith.mulf %351, %353 : vector<2x16x16xf32>
    %355 = arith.addf %343, %354 : vector<2x16x16xf32>
    %c30_80 = arith.constant 30 : index
    %356 = memref.load %arg1[%c30_80] : memref<64xf32, #tpu.memory_space<smem>>
    %357 = vector.broadcast %356 : f32 to vector<2x16x16xf32>
    %358 = arith.addf %349, %357 : vector<2x16x16xf32>
    %c62_81 = arith.constant 62 : index
    %359 = memref.load %arg1[%c62_81] : memref<64xf32, #tpu.memory_space<smem>>
    %360 = vector.broadcast %359 : f32 to vector<2x16x16xf32>
    %361 = arith.addf %355, %360 : vector<2x16x16xf32>
    %362 = vector.extract_strided_slice %81 {offsets = [0, 0, 0, 0], sizes = [2, 1, 16, 16], strides = [1, 1, 1, 1]} : vector<2x3x16x16xf32> to vector<2x1x16x16xf32>
    %363 = vector.shape_cast %362 : vector<2x1x16x16xf32> to vector<2x16x16xf32>
    %c21 = arith.constant 21 : index
    %364 = memref.load %arg1[%c21] : memref<64xf32, #tpu.memory_space<smem>>
    %365 = vector.broadcast %364 : f32 to vector<2x16x16xf32>
    %366 = arith.mulf %363, %365 : vector<2x16x16xf32>
    %367 = vector.extract_strided_slice %81 {offsets = [0, 0, 0, 0], sizes = [2, 1, 16, 16], strides = [1, 1, 1, 1]} : vector<2x3x16x16xf32> to vector<2x1x16x16xf32>
    %368 = vector.shape_cast %367 : vector<2x1x16x16xf32> to vector<2x16x16xf32>
    %c53 = arith.constant 53 : index
    %369 = memref.load %arg1[%c53] : memref<64xf32, #tpu.memory_space<smem>>
    %370 = vector.broadcast %369 : f32 to vector<2x16x16xf32>
    %371 = arith.mulf %368, %370 : vector<2x16x16xf32>
    %372 = vector.extract_strided_slice %81 {offsets = [0, 1, 0, 0], sizes = [2, 1, 16, 16], strides = [1, 1, 1, 1]} : vector<2x3x16x16xf32> to vector<2x1x16x16xf32>
    %373 = vector.shape_cast %372 : vector<2x1x16x16xf32> to vector<2x16x16xf32>
    %c22 = arith.constant 22 : index
    %374 = memref.load %arg1[%c22] : memref<64xf32, #tpu.memory_space<smem>>
    %375 = vector.broadcast %374 : f32 to vector<2x16x16xf32>
    %376 = arith.mulf %373, %375 : vector<2x16x16xf32>
    %377 = arith.addf %366, %376 : vector<2x16x16xf32>
    %378 = vector.extract_strided_slice %81 {offsets = [0, 1, 0, 0], sizes = [2, 1, 16, 16], strides = [1, 1, 1, 1]} : vector<2x3x16x16xf32> to vector<2x1x16x16xf32>
    %379 = vector.shape_cast %378 : vector<2x1x16x16xf32> to vector<2x16x16xf32>
    %c54 = arith.constant 54 : index
    %380 = memref.load %arg1[%c54] : memref<64xf32, #tpu.memory_space<smem>>
    %381 = vector.broadcast %380 : f32 to vector<2x16x16xf32>
    %382 = arith.mulf %379, %381 : vector<2x16x16xf32>
    %383 = arith.addf %371, %382 : vector<2x16x16xf32>
    %384 = vector.extract_strided_slice %81 {offsets = [0, 2, 0, 0], sizes = [2, 1, 16, 16], strides = [1, 1, 1, 1]} : vector<2x3x16x16xf32> to vector<2x1x16x16xf32>
    %385 = vector.shape_cast %384 : vector<2x1x16x16xf32> to vector<2x16x16xf32>
    %c23 = arith.constant 23 : index
    %386 = memref.load %arg1[%c23] : memref<64xf32, #tpu.memory_space<smem>>
    %387 = vector.broadcast %386 : f32 to vector<2x16x16xf32>
    %388 = arith.mulf %385, %387 : vector<2x16x16xf32>
    %389 = arith.addf %377, %388 : vector<2x16x16xf32>
    %390 = vector.extract_strided_slice %81 {offsets = [0, 2, 0, 0], sizes = [2, 1, 16, 16], strides = [1, 1, 1, 1]} : vector<2x3x16x16xf32> to vector<2x1x16x16xf32>
    %391 = vector.shape_cast %390 : vector<2x1x16x16xf32> to vector<2x16x16xf32>
    %c55 = arith.constant 55 : index
    %392 = memref.load %arg1[%c55] : memref<64xf32, #tpu.memory_space<smem>>
    %393 = vector.broadcast %392 : f32 to vector<2x16x16xf32>
    %394 = arith.mulf %391, %393 : vector<2x16x16xf32>
    %395 = arith.addf %383, %394 : vector<2x16x16xf32>
    %c31_82 = arith.constant 31 : index
    %396 = memref.load %arg1[%c31_82] : memref<64xf32, #tpu.memory_space<smem>>
    %397 = vector.broadcast %396 : f32 to vector<2x16x16xf32>
    %398 = arith.addf %389, %397 : vector<2x16x16xf32>
    %c63_83 = arith.constant 63 : index
    %399 = memref.load %arg1[%c63_83] : memref<64xf32, #tpu.memory_space<smem>>
    %400 = vector.broadcast %399 : f32 to vector<2x16x16xf32>
    %401 = arith.addf %395, %400 : vector<2x16x16xf32>
    %402 = vector.shape_cast %118 : vector<2x16x16xf32> to vector<2x1x16x16xf32>
    %403 = vector.shape_cast %158 : vector<2x16x16xf32> to vector<2x1x16x16xf32>
    %404 = vector.shape_cast %198 : vector<2x16x16xf32> to vector<2x1x16x16xf32>
    %405 = vector.shape_cast %238 : vector<2x16x16xf32> to vector<2x1x16x16xf32>
    %406 = vector.shape_cast %278 : vector<2x16x16xf32> to vector<2x1x16x16xf32>
    %407 = vector.shape_cast %318 : vector<2x16x16xf32> to vector<2x1x16x16xf32>
    %408 = vector.shape_cast %358 : vector<2x16x16xf32> to vector<2x1x16x16xf32>
    %409 = vector.shape_cast %398 : vector<2x16x16xf32> to vector<2x1x16x16xf32>
    %410 = tpu.concatenate %402, %403, %404, %405, %406, %407, %408, %409 in 1 : vector<2x1x16x16xf32>, vector<2x1x16x16xf32>, vector<2x1x16x16xf32>, vector<2x1x16x16xf32>, vector<2x1x16x16xf32>, vector<2x1x16x16xf32>, vector<2x1x16x16xf32>, vector<2x1x16x16xf32> -> vector<2x8x16x16xf32>
    %c0_84 = arith.constant 0 : index
    %c0_85 = arith.constant 0 : index
    %c1_86 = arith.constant 1 : index
    %c1_87 = arith.constant 1 : index
    %411 = vector.load %arg3[%c0_84, %c0_85, %c1_86, %c1_87] : memref<2x8x18x18xf32, #tpu.memory_space<vmem>>, vector<2x8x16x16xf32>
    tpu.vector_store %arg3[%c0_84, %c0_85, %c1_86, %c1_87], %410 {strides = array<i32>} : memref<2x8x18x18xf32, #tpu.memory_space<vmem>>, vector<2x8x16x16xf32>,
    %412 = vector.shape_cast %121 : vector<2x16x16xf32> to vector<2x1x16x16xf32>
    %413 = vector.shape_cast %161 : vector<2x16x16xf32> to vector<2x1x16x16xf32>
    %414 = vector.shape_cast %201 : vector<2x16x16xf32> to vector<2x1x16x16xf32>
    %415 = vector.shape_cast %241 : vector<2x16x16xf32> to vector<2x1x16x16xf32>
    %416 = vector.shape_cast %281 : vector<2x16x16xf32> to vector<2x1x16x16xf32>
    %417 = vector.shape_cast %321 : vector<2x16x16xf32> to vector<2x1x16x16xf32>
    %418 = vector.shape_cast %361 : vector<2x16x16xf32> to vector<2x1x16x16xf32>
    %419 = vector.shape_cast %401 : vector<2x16x16xf32> to vector<2x1x16x16xf32>
    %420 = tpu.concatenate %412, %413, %414, %415, %416, %417, %418, %419 in 1 : vector<2x1x16x16xf32>, vector<2x1x16x16xf32>, vector<2x1x16x16xf32>, vector<2x1x16x16xf32>, vector<2x1x16x16xf32>, vector<2x1x16x16xf32>, vector<2x1x16x16xf32>, vector<2x1x16x16xf32> -> vector<2x8x16x16xf32>
    %c0_88 = arith.constant 0 : index
    %c0_89 = arith.constant 0 : index
    %c1_90 = arith.constant 1 : index
    %c1_91 = arith.constant 1 : index
    %421 = vector.load %arg4[%c0_88, %c0_89, %c1_90, %c1_91] : memref<2x8x18x18xf32, #tpu.memory_space<vmem>>, vector<2x8x16x16xf32>
    tpu.vector_store %arg4[%c0_88, %c0_89, %c1_90, %c1_91], %420 {strides = array<i32>} : memref<2x8x18x18xf32, #tpu.memory_space<vmem>>, vector<2x8x16x16xf32>,
    %c0_92 = arith.constant 0 : index
    %c0_93 = arith.constant 0 : index
    %c0_94 = arith.constant 0 : index
    %c0_95 = arith.constant 0 : index
    %422 = vector.load %arg3[%c0_92, %c0_93, %c0_94, %c0_95] : memref<2x8x18x18xf32, #tpu.memory_space<vmem>>, vector<2x8x18x18xf32>
    %cst = arith.constant 1.000000e+00 : f32
    %423 = vector.broadcast %cst : f32 to vector<2x8x18x18xf32>
    %424 = arith.addf %422, %423 : vector<2x8x18x18xf32>
    %cst_96 = arith.constant dense<0xFF800000> : vector<2x18x18xf32>
    %425 = vector.multi_reduction <maximumf>, %424, %cst_96 [1] : vector<2x8x18x18xf32> to vector<2x18x18xf32>
    %426 = vector.shape_cast %425 : vector<2x18x18xf32> to vector<2x1x18x18xf32>
    %427 = vector.broadcast %426 : vector<2x1x18x18xf32> to vector<2x8x18x18xf32>
    %428 = arith.subf %424, %427 : vector<2x8x18x18xf32>
    %429 = math.exp %428 : vector<2x8x18x18xf32>
    %cst_97 = arith.constant dense<0.000000e+00> : vector<2x18x18xf32>
    %430 = vector.multi_reduction <add>, %429, %cst_97 [1] : vector<2x8x18x18xf32> to vector<2x18x18xf32>
    %431 = vector.shape_cast %430 : vector<2x18x18xf32> to vector<2x1x18x18xf32>
    %432 = tpu.reciprocal %431 {approx = true} : vector<2x1x18x18xf32> -> vector<2x1x18x18xf32>
    %433 = vector.broadcast %432 : vector<2x1x18x18xf32> to vector<2x8x18x18xf32>
    %434 = arith.mulf %429, %433 : vector<2x8x18x18xf32>
    %435 = vector.shape_cast %434 : vector<2x8x18x18xf32> to vector<16x18x18xf32>
    %c0_98 = arith.constant 0 : index
    %c0_99 = arith.constant 0 : index
    %c0_100 = arith.constant 0 : index
    %c0_101 = arith.constant 0 : index
    %436 = vector.load %arg4[%c0_98, %c0_99, %c0_100, %c0_101] : memref<2x8x18x18xf32, #tpu.memory_space<vmem>>, vector<2x8x18x18xf32>
    %437 = vector.shape_cast %436 : vector<2x8x18x18xf32> to vector<16x18x18xf32>
    %cst_102 = arith.constant dense<0.000000e+00> : vector<16x18x18xf32>
    %438 = tpu.matmul %435, %437, %cst_102 {dimension_numbers = #tpu.dot_dimension_numbers<[2], [2], [1], [1], [0, 0, 0, 1, 1, 1], [0], [0]>} : vector<16x18x18xf32>, vector<16x18x18xf32>, vector<16x18x18xf32> -> vector<16x18x18xf32>
    %c0_103 = arith.constant 0 : index
    %c0_104 = arith.constant 0 : index
    %c0_105 = arith.constant 0 : index
    %439 = vector.load %arg2[%c0_103, %c0_104, %c0_105] : memref<16x18x18xf32, #tpu.memory_space<vmem>>, vector<16x18x18xf32>
    tpu.vector_store %arg2[%c0_103, %c0_104, %c0_105], %438 {strides = array<i32>} : memref<16x18x18xf32, #tpu.memory_space<vmem>>, vector<16x18x18xf32>,
    return
  }
}

</mosaic_0001>

<bundles_post_ra>
// kernel: model_forward.1
= control target key start
LH: loop header
LB: loop body
LE: loop exit
PB: predicated region body
PF: predicated region fallthrough
CT: control target
= control target key end

     0   :  { %s6300_s0 = inlined_call_operand.hbm [shape: f32[2,3,16,16], index: 0, kind: input, shape index: {}]   ;;  %s6301_s1 = inlined_call_operand.vmem [shape: f32[64], index: 1, kind: input, shape index: {}]   ;;  %s6302_s2 = inlined_call_operand.vmem [shape: f32[16,18,18], index: 2, kind: output, shape index: {}]  }
   0x1   :  { %6413 = sst [smem:[#allocation89_spill]] %s6302_s2 }
   0x2   :  { %7 = vsyncpa [#allocation5], 0 }
   0x3   :  { %8 = vsyncpa [#allocation6], 0  ;;  %s4025_s9 = smov [#allocation4]   ;;  %s27_s13 = sshll.u32 %s6301_s1, 4  ;;  %s28_s13 = int_to_ptr.vmem [resolvable:$true] %s27_s13 }
   0x4   :  { %s14_s10 = sshll.u32 %s4025_s9, 4  ;;  %s15_s10 = int_to_ptr.vmem [resolvable:$true] %s14_s10 }
   0x5   :  { %s3997_s14 = scalar_lea.vmem %s15_s10, 1536  ;;  %p4002_p1 = scmp.lt.s32.totalorder %s15_s10, %s15_s10 }
   0x6   :  { %p3998_p0 = scmp.ne.s32.totalorder %s15_s10, %s3997_s14  ;;  %p4003_p2 = scmp.lt.s32.totalorder %s3997_s14, %s3997_s14 }
   0x8   :  { %p4004_p3 = por %p4003_p2, %p4002_p1 }
   0xa   :  { %p4005_p4 = pnand %p4004_p3, %p3998_p0 }
   0xc   :  { %4008 = shalt.err (!%p4005_p4)
}
   0xd   :  { %s4026_s15 = smov 128   ;;  %s4027_s16 = smov 8  }
   0xe   :  { %20 = dma.hbm_to_vmem [thread:$0]  %s6300_s0, 1536, %s15_s10, [#allocation5], %s4026_s15, %s4026_s15, %s4027_s16  }
   0xf   :  { %s4009_s19 = scalar_lea.vmem %s28_s13, 16  ;;  %p4014_p6 = scmp.lt.s32.totalorder %s28_s13, %s28_s13 }
  0x10   :  { %p4010_p5 = scmp.ne.s32.totalorder %s28_s13, %s4009_s19  ;;  %p4015_p7 = scmp.lt.s32.totalorder %s4009_s19, %s4009_s19 }
  0x12   :  { %p4016_p8 = por %p4015_p7, %p4014_p6 }
  0x14   :  { %p4017_p9 = pnand %p4016_p8, %p4010_p5 }
  0x16   :  { %4020 = shalt.err (!%p4017_p9)
}
  0x17   :  { %s4028_s1 = smov [#allocation7]  }
  0x18   :  { %30 = dma.vmem_to_smem %s28_s13, 16, %s4028_s1, [#allocation6]  }
  0x19   :  { %4021 = dma.done.wait [#allocation5], 1536  }
  0x1a   :  { %4022 = vsyncadd [#allocation5], 4294965760 }
  0x1b   :  { %4023 = dma.done.wait [#allocation6], 16  }
  0x1c   :  { %4024 = vsyncadd [#allocation6], 4294967280 }
  0x1d   :  { %37 = sfence }
  0x1e   :  { %v184_v0 = vld [vmem:[#allocation4 + $0x10] sm:$0xff]  ;;  %v182_v1 = vld [vmem:[#allocation4] sm:$0xff]  ;;  %v185_v2 = vld [vmem:[#allocation4 + $0x18] sm:$0xff]  ;;  %s4053_s0 = sld [smem:[#allocation7 + $0x3]]  ;;  %vm40_vm0 = vcmask 146432   ;;  %vm43_vm1 = vcmask 140288  }
  0x1f   :  { %226 = vxpose.xlu1.b32.start [1/2] (short) (narrow) %v184_v0, 16  ;;  %194 = vxpose.xlu0.b32.start [1/2] (short) (narrow) %v182_v1, 16  ;;  %v183_v3 = vld [vmem:[#allocation4 + $0x8] sm:$0xff]  ;;  %v186_v4 = vld [vmem:[#allocation4 + $0x20] sm:$0xff]  ;;  %s4055_s20 = sld [smem:[#allocation7 + $0x4]]  ;;  %vm1026_vm2 = vcmask 138248  }
  0x20   :  { %v187_v5 = vld [vmem:[#allocation4 + $0x28] sm:$0xff]  ;;  %v190_v6 = vld [vmem:[#allocation4 + $0x40] sm:$0xff]  ;;  %s4057_s21 = sld [smem:[#allocation7 + $0x5]]  ;;  %vm4031_vm3 = vmmov 0  }
  0x21   :  { %v191_v7 = vld [vmem:[#allocation4 + $0x48] sm:$0xff]  ;;  %s4059_s22 = sld [smem:[#allocation7 + $0x19]] }
  0x22   :  { %s4061_s23 = sld [smem:[#allocation7]] }
  0x23   :  { %227 = vxpose.xlu1.b32.end [2/2] (short) (narrow) %v185_v2, 16  ;;  %195 = vxpose.xlu0.b32.end [2/2] (short) (narrow) %v183_v3, 16  ;;  %s4063_s24 = sld [smem:[#allocation7 + $0x1]] }
  0x24   :  { %s4065_s25 = sld [smem:[#allocation7 + $0x2]]  ;;  %v4146_v8 = vstv %s4053_s0 }
  0x25   :  { %s4067_s26 = sld [smem:[#allocation7 + $0x18]]  ;;  %6431 = vst [vmem:[#allocation27_spill] sm:$0xff] %v4146_v8  ;;  %v4151_v9 = vstv %s4055_s20 }
  0x26   :  { %s4069_s27 = sld [smem:[#allocation7 + $0xc]]  ;;  %6432 = vst [vmem:[#allocation28_spill] sm:$0xff] %v4151_v9  ;;  %v4154_v10 = vstv %s4057_s21 }
  0x27   :  { %258 = vxpose.xlu0.b32.start [1/2] (short) (narrow) %v186_v4, 16  ;;  %s4071_s28 = sld [smem:[#allocation7 + $0xd]]  ;;  %v4157_v11 = vstv %s4059_s22 }
  0x28   :  { %s4073_s29 = sld [smem:[#allocation7 + $0xe]]  ;;  %v4160_v12 = vstv %s4061_s23  ;;  %59 = vst.msk [vmem:[#allocation2 + $0x18] sm:$0xff] %vm40_vm0, %v4157_v11  ;;  %60 = vst.msk [vmem:[#allocation2 + $0x20] sm:$0xff] %vm40_vm0, %v4157_v11 }
  0x29   :  { %s4075_s30 = sld [smem:[#allocation7 + $0x1c]]  ;;  %6433 = vst [vmem:[#allocation29_spill] sm:$0xff] %v4160_v12  ;;  %v4165_v13 = vstv %s4063_s24  ;;  %62 = vst.msk [vmem:[#allocation2 + $0xd8] sm:$0xff] %vm40_vm0, %v4157_v11 }
  0x2a   :  { %s4077_s3 = sld [smem:[#allocation7 + $0x6]]  ;;  %6434 = vst [vmem:[#allocation30_spill] sm:$0xff] %v4165_v13  ;;  %v4168_v14 = vstv %s4065_s25  ;;  %63 = vst.msk [vmem:[#allocation2 + $0xe0] sm:$0xff] %vm40_vm0, %v4157_v11 }
  0x2b   :  { %259 = vxpose.xlu0.b32.end [2/2] (short) (narrow) %v187_v5, 16  ;;  %s4079_s4 = sld [smem:[#allocation7 + $0x7]]  ;;  %v4171_v15 = vstv %s4067_s26  ;;  %61 = vst.msk [vmem:[#allocation2 + $0x28] sm:$0x3] %vm43_vm1, %v4157_v11  ;;  %64 = vst.msk [vmem:[#allocation2 + $0xe8] sm:$0x3] %vm43_vm1, %v4157_v11 }
  0x2c   :  { %s4081_s5 = sld [smem:[#allocation7 + $0x8]]  ;;  %v4174_v16 = vstv %s4069_s27  ;;  %41 = vst.msk [vmem:[#allocation2] sm:$0xff] %vm40_vm0, %v4171_v15  ;;  %42 = vst.msk [vmem:[#allocation2 + $0x8] sm:$0xff] %vm40_vm0, %v4171_v15 }
  0x2d   :  { %s4083_s6 = sld [smem:[#allocation7 + $0x1a]]  ;;  %6435 = vst [vmem:[#allocation31_spill] sm:$0xff] %v4174_v16  ;;  %v4179_v17 = vstv %s4071_s28  ;;  %45 = vst.msk [vmem:[#allocation2 + $0xc0] sm:$0xff] %vm40_vm0, %v4171_v15 }
  0x2e   :  { %s4085_s7 = sld [smem:[#allocation7 + $0x9]]  ;;  %6437 = vst [vmem:[#allocation32_spill] sm:$0xff] %v4179_v17  ;;  %v4182_v18 = vstv %s4073_s29  ;;  %46 = vst.msk [vmem:[#allocation2 + $0xc8] sm:$0xff] %vm40_vm0, %v4171_v15 }
  0x2f   :  { %322 = vxpose.xlu0.b32.start [1/2] (short) (narrow) %v190_v6, 16  ;;  %s4087_s8 = sld [smem:[#allocation7 + $0xa]]  ;;  %6439 = vst [vmem:[#allocation33_spill] sm:$0xff] %v4182_v18  ;;  %v4185_v19 = vstv %s4075_s30  ;;  %44 = vst.msk [vmem:[#allocation2 + $0x10] sm:$0x3] %vm43_vm1, %v4171_v15 }
  0x30   :  { %s4089_s9 = sld [smem:[#allocation7 + $0xb]]  ;;  %6441 = vst [vmem:[#allocation34_spill] sm:$0xff] %v4185_v19  ;;  %v4188_v20 = vstv %s4077_s3  ;;  %113 = vst.msk [vmem:[#allocation2 + $0x60] sm:$0xff] %vm40_vm0, %v4185_v19 }
  0x31   :  { %s4091_s10 = sld [smem:[#allocation7 + $0x1b]]  ;;  %v4193_v21 = vstv %s4079_s4  ;;  %114 = vst.msk [vmem:[#allocation2 + $0x68] sm:$0xff] %vm40_vm0, %v4185_v19  ;;  %116 = vst.msk [vmem:[#allocation2 + $0x120] sm:$0xff] %vm40_vm0, %v4185_v19 }
  0x32   :  { %s4093_s11 = sld [smem:[#allocation7 + $0x12]]  ;;  %v4196_v22 = vstv %s4081_s5  ;;  %117 = vst.msk [vmem:[#allocation2 + $0x128] sm:$0xff] %vm40_vm0, %v4185_v19 }
  0x33   :  { %323 = vxpose.xlu0.b32.end [2/2] (short) (narrow) %v191_v7, 16  ;;  %s4095_s12 = sld [smem:[#allocation7 + $0x13]]  ;;  %v4199_v23 = vstv %s4083_s6  ;;  %47 = vst.msk [vmem:[#allocation2 + $0xd0] sm:$0x3] %vm43_vm1, %v4171_v15  ;;  %115 = vst.msk [vmem:[#allocation2 + $0x70] sm:$0x3] %vm43_vm1, %v4185_v19 }
  0x34   :  { %s4097_s13 = sld [smem:[#allocation7 + $0x14]]  ;;  %6444 = vst [vmem:[#allocation35_spill] sm:$0xff] %v4199_v23  ;;  %v4202_v24 = vstv %s4085_s7  ;;  %77 = vst.msk [vmem:[#allocation2 + $0x30] sm:$0xff] %vm40_vm0, %v4199_v23 }
  0x35   :  { %s4099_s14 = sld [smem:[#allocation7 + $0x1e]]  ;;  %6446 = vst [vmem:[#allocation36_spill] sm:$0xff] %v4202_v24  ;;  %v4207_v25 = vstv %s4087_s8  ;;  %78 = vst.msk [vmem:[#allocation2 + $0x38] sm:$0xff] %vm40_vm0, %v4199_v23 }
  0x36   :  { %s4101_s15 = sld [smem:[#allocation7 + $0xf]]  ;;  %6448 = vst [vmem:[#allocation37_spill] sm:$0xff] %v4207_v25  ;;  %v4210_v26 = vstv %s4089_s9  ;;  %80 = vst.msk [vmem:[#allocation2 + $0xf0] sm:$0xff] %vm40_vm0, %v4199_v23 }
  0x37   :  { %s4103_s16 = sld [smem:[#allocation7 + $0x10]]  ;;  %6450 = vst [vmem:[#allocation38_spill] sm:$0xff] %v4210_v26  ;;  %v4213_v27 = vstv %s4091_s10  ;;  %81 = vst.msk [vmem:[#allocation2 + $0xf8] sm:$0xff] %vm40_vm0, %v4199_v23 }
  0x38   :  { %s4105_s17 = sld [smem:[#allocation7 + $0x11]]  ;;  %v4216_v28 = vstv %s4093_s11  ;;  %95 = vst.msk [vmem:[#allocation2 + $0x48] sm:$0xff] %vm40_vm0, %v4213_v27  ;;  %96 = vst.msk [vmem:[#allocation2 + $0x50] sm:$0xff] %vm40_vm0, %v4213_v27 }
  0x39   :  { %6414 = sst [smem:[#allocation10_spill]] %s4095_s12  ;;  %6453 = vst [vmem:[#allocation39_spill] sm:$0xff] %v4216_v28  ;;  %98 = vst.msk [vmem:[#allocation2 + $0x108] sm:$0xff] %vm40_vm0, %v4213_v27 }
  0x3a   :  { %6415 = sst [smem:[#allocation11_spill]] %s4097_s13  ;;  %99 = vst.msk [vmem:[#allocation2 + $0x110] sm:$0xff] %vm40_vm0, %v4213_v27 }
  0x3b   :  { %6416 = sst [smem:[#allocation12_spill]] %s4099_s14  ;;  %97 = vst.msk [vmem:[#allocation2 + $0x58] sm:$0x3] %vm43_vm1, %v4213_v27  ;;  %79 = vst.msk [vmem:[#allocation2 + $0x40] sm:$0x3] %vm43_vm1, %v4199_v23 }
  0x3c   :  { %s4107_s18 = sld [smem:[#allocation7 + $0x1d]]  ;;  %v4230_v32 = vstv %s4101_s15  ;;  %82 = vst.msk [vmem:[#allocation2 + $0x100] sm:$0x3] %vm43_vm1, %v4199_v23  ;;  %100 = vst.msk [vmem:[#allocation2 + $0x118] sm:$0x3] %vm43_vm1, %v4213_v27 }
  0x3d   :  { %6417 = sst [smem:[#allocation13_spill]] %s4103_s16  ;;  %6460 = vst [vmem:[#allocation42_spill] sm:$0xff] %v4230_v32  ;;  %118 = vst.msk [vmem:[#allocation2 + $0x130] sm:$0x3] %vm43_vm1, %v4185_v19 }
  0x3e   :  { %6418 = sst [smem:[#allocation14_spill]] %s4105_s17 }
  0x3f   :  { %s4109_s19 = sld [smem:[#allocation7 + $0x15]] }
  0x40   :  { %s4111_s1 = sld [smem:[#allocation7 + $0x16]] }
  0x41   :  { %s4113_s2 = sld [smem:[#allocation7 + $0x17]] }
  0x42   :  { %s4115_s12 = sld [smem:[#allocation7 + $0x1f]]  ;;  %v4241_v35 = vstv %s4107_s18 }
  0x43   :  { %s4117_s13 = sld [smem:[#allocation7 + $0x20]]  ;;  %132 = vst.msk [vmem:[#allocation2 + $0x80] sm:$0xff] %vm40_vm0, %v4241_v35  ;;  %131 = vst.msk [vmem:[#allocation2 + $0x78] sm:$0xff] %vm40_vm0, %v4241_v35 }
  0x44   :  { %s4119_s14 = sld [smem:[#allocation7 + $0x21]]  ;;  %134 = vst.msk [vmem:[#allocation2 + $0x138] sm:$0xff] %vm40_vm0, %v4241_v35  ;;  %135 = vst.msk [vmem:[#allocation2 + $0x140] sm:$0xff] %vm40_vm0, %v4241_v35 }
  0x45   :  { %6419 = sst [smem:[#allocation15_spill]] %s4109_s19  ;;  %133 = vst.msk [vmem:[#allocation2 + $0x88] sm:$0x3] %vm43_vm1, %v4241_v35  ;;  %136 = vst.msk [vmem:[#allocation2 + $0x148] sm:$0x3] %vm43_vm1, %v4241_v35 }
  0x46   :  { %6420 = sst [smem:[#allocation16_spill]] %s4111_s1 }
  0x47   :  { %6421 = sst [smem:[#allocation17_spill]] %s4113_s2 }
  0x48   :  { %6422 = sst [smem:[#allocation18_spill]] %s4115_s12 }
  0x49   :  { %6423 = sst [smem:[#allocation19_spill]] %s4117_s13 }
  0x4a   :  { %6424 = sst [smem:[#allocation20_spill]] %s4119_s14 }
  0x4b   :  { %s4121_s16 = sld [smem:[#allocation7 + $0x22]] }
  0x4c   :  { %s4123_s17 = sld [smem:[#allocation7 + $0x38]] }
  0x4d   :  { %s4125_s19 = sld [smem:[#allocation7 + $0x26]] }
  0x4e   :  { %s4127_s1 = sld [smem:[#allocation7 + $0x27]] }
  0x4f   :  { %s4129_s2 = sld [smem:[#allocation7 + $0x28]] }
  0x50   :  { %s4131_s12 = sld [smem:[#allocation7 + $0x3a]] }
  0x51   :  { %6425 = sst [smem:[#allocation21_spill]] %s4121_s16 }
  0x52   :  { %6426 = sst [smem:[#allocation22_spill]] %s4123_s17 }
  0x53   :  { %6427 = sst [smem:[#allocation23_spill]] %s4125_s19 }
  0x54   :  { %6428 = sst [smem:[#allocation24_spill]] %s4127_s1 }
  0x55   :  { %s4133_s13 = sld [smem:[#allocation7 + $0x2c]]  ;;  %v4278_v46 = vstv %s4129_s2 }
  0x56   :  { %6429 = sst [smem:[#allocation25_spill]] %s4131_s12  ;;  %6475 = vst [vmem:[#allocation54_spill] sm:$0xff] %v4278_v46 }
  0x57   :  { %s4135_s14 = sld [smem:[#allocation7 + $0x2d]] }
  0x58   :  { %s4137_s16 = sld [smem:[#allocation7 + $0x2e]] }
  0x59   :  { %s4139_s17 = sld [smem:[#allocation7 + $0x3c]] }
  0x5a   :  { %s4141_s19 = sld [smem:[#allocation7 + $0x32]] }
  0x5b   :  { %s4143_s1 = sld [smem:[#allocation7 + $0x33]]  ;;  %v4284_v48 = vstv %s4133_s13  ;;  %s4029_s13 = smov 1  }
  0x5c   :  { %s4148_s12 = sld [smem:[#allocation7 + $0x34]]  ;;  %6477 = vst [vmem:[#allocation56_spill] sm:$0xff] %v4284_v48 }
  0x5d   :  { %s4176_s0 = sld [smem:[#allocation7 + $0x23]]  ;;  %v4287_v49 = vstv %s4135_s14 }
  0x5e   :  { %s6436_s20 = sld [smem:[#allocation10_spill]]  ;;  %6478 = vst [vmem:[#allocation57_spill] sm:$0xff] %v4287_v49  ;;  %v4290_v50 = vstv %s4137_s16 }
  0x5f   :  { %s6438_s21 = sld [smem:[#allocation11_spill]]  ;;  %6479 = vst [vmem:[#allocation58_spill] sm:$0xff] %v4290_v50  ;;  %v4293_v51 = vstv %s4139_s17 }
  0x60   :  { %6430 = sst [smem:[#allocation26_spill]] %s4141_s19  ;;  %6480 = vst [vmem:[#allocation59_spill] sm:$0xff] %v4293_v51  ;;  %123 = vst.msk [vmem:[#allocation3 + $0x68] sm:$0xff] %vm40_vm0, %v4293_v51 }
  0x61   :  { %s4162_s19 = sld [smem:[#allocation7 + $0x3e]]  ;;  %v4303_v55 = vstv %s4143_s1  ;;  %122 = vst.msk [vmem:[#allocation3 + $0x60] sm:$0xff] %vm40_vm0, %v4293_v51  ;;  %125 = vst.msk [vmem:[#allocation3 + $0x120] sm:$0xff] %vm40_vm0, %v4293_v51 }
  0x62   :  { %s6440_s22 = sld [smem:[#allocation12_spill]]  ;;  %6482 = vst [vmem:[#allocation61_spill] sm:$0xff] %v4303_v55  ;;  %v4306_v56 = vstv %s4148_s12  ;;  %126 = vst.msk [vmem:[#allocation3 + $0x128] sm:$0xff] %vm40_vm0, %v4293_v51 }
  0x63   :  { %s4190_s23 = sld [smem:[#allocation7 + $0x24]]  ;;  %6483 = vst [vmem:[#allocation62_spill] sm:$0xff] %v4306_v56  ;;  %v4312_v58 = vstv %s4176_s0  ;;  %124 = vst.msk [vmem:[#allocation3 + $0x70] sm:$0x3] %vm43_vm1, %v4293_v51 }
  0x64   :  { %s6442_s24 = sld [smem:[#allocation13_spill]]  ;;  %v4221_v29 = vstv %s6436_s20  ;;  %6485 = vst [vmem:[#allocation64_spill] sm:$0xff] %v4312_v58  ;;  %127 = vst.msk [vmem:[#allocation3 + $0x130] sm:$0x3] %vm43_vm1, %v4293_v51 }
  0x65   :  { %s6443_s25 = sld [smem:[#allocation14_spill]]  ;;  %6455 = vst [vmem:[#allocation40_spill] sm:$0xff] %v4221_v29  ;;  %v4224_v30 = vstv %s6438_s21 }
  0x66   :  { %s6445_s26 = sld [smem:[#allocation15_spill]]  ;;  %6457 = vst [vmem:[#allocation41_spill] sm:$0xff] %v4224_v30 }
  0x67   :  { %s4204_s27 = sld [smem:[#allocation7 + $0x25]]  ;;  %v4309_v57 = vstv %s4162_s19 }
  0x68   :  { %s6447_s28 = sld [smem:[#allocation16_spill]]  ;;  %v4227_v31 = vstv %s6440_s22  ;;  %6484 = vst [vmem:[#allocation63_spill] sm:$0xff] %v4309_v57  ;;  %159 = vst.msk [vmem:[#allocation3 + $0x98] sm:$0xff] %vm40_vm0, %v4309_v57 }
  0x69   :  { %s6449_s29 = sld [smem:[#allocation17_spill]]  ;;  %v4323_v63 = vstv %s4190_s23  ;;  %149 = vst.msk [vmem:[#allocation2 + $0x90] sm:$0xff] %vm40_vm0, %v4227_v31  ;;  %150 = vst.msk [vmem:[#allocation2 + $0x98] sm:$0xff] %vm40_vm0, %v4227_v31 }
  0x6a   :  { %s6451_s30 = sld [smem:[#allocation18_spill]]  ;;  %v4235_v33 = vstv %s6442_s24  ;;  %6486 = vst [vmem:[#allocation65_spill] sm:$0xff] %v4323_v63  ;;  %152 = vst.msk [vmem:[#allocation2 + $0x150] sm:$0xff] %vm40_vm0, %v4227_v31 }
  0x6b   :  { %s6452_s3 = sld [smem:[#allocation19_spill]]  ;;  %6462 = vst [vmem:[#allocation43_spill] sm:$0xff] %v4235_v33  ;;  %v4238_v34 = vstv %s6443_s25  ;;  %153 = vst.msk [vmem:[#allocation2 + $0x158] sm:$0xff] %vm40_vm0, %v4227_v31 }
  0x6c   :  { %s4218_s4 = sld [smem:[#allocation7 + $0x39]]  ;;  %v4244_v36 = vstv %s6445_s26  ;;  %158 = vst.msk [vmem:[#allocation3 + $0x90] sm:$0xff] %vm40_vm0, %v4309_v57  ;;  %161 = vst.msk [vmem:[#allocation3 + $0x150] sm:$0xff] %vm40_vm0, %v4309_v57 }
  0x6d   :  { %s6454_s5 = sld [smem:[#allocation20_spill]]  ;;  %6464 = vst [vmem:[#allocation44_spill] sm:$0xff] %v4244_v36  ;;  %v4326_v0 = vstv %s4204_s27  ;;  %162 = vst.msk [vmem:[#allocation3 + $0x158] sm:$0xff] %vm40_vm0, %v4309_v57 }
  0x6e   :  { %s6456_s6 = sld [smem:[#allocation21_spill]]  ;;  %v4249_v37 = vstv %s6447_s28  ;;  %6487 = vst [vmem:[#allocation66_spill] sm:$0xff] %v4326_v0  ;;  %151 = vst.msk [vmem:[#allocation2 + $0xa0] sm:$0x3] %vm43_vm1, %v4227_v31 }
  0x6f   :  { %s6458_s7 = sld [smem:[#allocation22_spill]]  ;;  %6465 = vst [vmem:[#allocation45_spill] sm:$0xff] %v4249_v37  ;;  %v4252_v38 = vstv %s6449_s29  ;;  %154 = vst.msk [vmem:[#allocation2 + $0x160] sm:$0x3] %vm43_vm1, %v4227_v31 }
  0x70   :  { %s6459_s8 = sld [smem:[#allocation23_spill]]  ;;  %6467 = vst [vmem:[#allocation46_spill] sm:$0xff] %v4252_v38  ;;  %v4255_v39 = vstv %s6451_s30  ;;  %160 = vst.msk [vmem:[#allocation3 + $0xa0] sm:$0x3] %vm43_vm1, %v4309_v57 }
  0x71   :  { %s6461_s9 = sld [smem:[#allocation24_spill]]  ;;  %6468 = vst [vmem:[#allocation47_spill] sm:$0xff] %v4255_v39  ;;  %v4258_v40 = vstv %s6452_s3  ;;  %167 = vst.msk [vmem:[#allocation2 + $0xa8] sm:$0xff] %vm40_vm0, %v4255_v39 }
  0x72   :  { %s4232_s10 = sld [smem:[#allocation7 + $0x3b]]  ;;  %6469 = vst [vmem:[#allocation48_spill] sm:$0xff] %v4258_v40  ;;  %v4329_v1 = vstv %s4218_s4  ;;  %168 = vst.msk [vmem:[#allocation2 + $0xb0] sm:$0xff] %vm40_vm0, %v4255_v39 }
  0x73   :  { %s6463_s11 = sld [smem:[#allocation25_spill]]  ;;  %v4263_v41 = vstv %s6454_s5  ;;  %6488 = vst [vmem:[#allocation67_spill] sm:$0xff] %v4329_v1  ;;  %170 = vst.msk [vmem:[#allocation2 + $0x168] sm:$0xff] %vm40_vm0, %v4255_v39 }
  0x74   :  { %s4246_s20 = sld [smem:[#allocation7 + $0x3d]]  ;;  %6470 = vst [vmem:[#allocation49_spill] sm:$0xff] %v4263_v41  ;;  %v4266_v42 = vstv %s6456_s6  ;;  %171 = vst.msk [vmem:[#allocation2 + $0x170] sm:$0xff] %vm40_vm0, %v4255_v39 }
  0x75   :  { %s6466_s15 = sld [smem:[#allocation26_spill]]  ;;  %6471 = vst [vmem:[#allocation50_spill] sm:$0xff] %v4266_v42  ;;  %v4269_v43 = vstv %s6458_s7  ;;  %69 = vst.msk [vmem:[#allocation3 + $0x20] sm:$0xff] %vm40_vm0, %v4329_v1 }
  0x76   :  { %s4260_s21 = sld [smem:[#allocation7 + $0x3f]]  ;;  %6472 = vst [vmem:[#allocation51_spill] sm:$0xff] %v4269_v43  ;;  %v4272_v44 = vstv %s6459_s8  ;;  %50 = vst.msk [vmem:[#allocation3] sm:$0xff] %vm40_vm0, %v4269_v43 }
  0x77   :  { %6473 = vst [vmem:[#allocation52_spill] sm:$0xff] %v4272_v44  ;;  %v4275_v45 = vstv %s6461_s9  ;;  %s4392_s2 = sld [smem:[#allocation7 + $0x29]]  ;;  %51 = vst.msk [vmem:[#allocation3 + $0x8] sm:$0xff] %vm40_vm0, %v4269_v43 }
  0x78   :  { %6474 = vst [vmem:[#allocation53_spill] sm:$0xff] %v4275_v45  ;;  %v4332_v2 = vstv %s4232_s10  ;;  %s4398_s12 = sld [smem:[#allocation7 + $0x2a]]  ;;  %53 = vst.msk [vmem:[#allocation3 + $0xc0] sm:$0xff] %vm40_vm0, %v4269_v43 }
  0x79   :  { %v4281_v47 = vstv %s6463_s11  ;;  %6489 = vst [vmem:[#allocation68_spill] sm:$0xff] %v4332_v2  ;;  %s4442_s14 = sld [smem:[#allocation7 + $0x2b]]  ;;  %54 = vst.msk [vmem:[#allocation3 + $0xc8] sm:$0xff] %vm40_vm0, %v4269_v43 }
  0x7a   :  { %6476 = vst [vmem:[#allocation55_spill] sm:$0xff] %v4281_v47  ;;  %v4347_v56 = vstv %s4246_s20  ;;  %87 = vst.msk [vmem:[#allocation3 + $0x38] sm:$0xff] %vm40_vm0, %v4281_v47  ;;  %s4610_s16 = sld [smem:[#allocation7 + $0x2f]] }
  0x7b   :  { %v4296_v52 = vstv %s6466_s15  ;;  %6490 = vst [vmem:[#allocation69_spill] sm:$0xff] %v4347_v56  ;;  %86 = vst.msk [vmem:[#allocation3 + $0x30] sm:$0xff] %vm40_vm0, %v4281_v47  ;;  %s4706_s17 = sld [smem:[#allocation7 + $0x30]] }
  0x7c   :  { %6481 = vst [vmem:[#allocation60_spill] sm:$0xff] %v4296_v52  ;;  %v4350_v55 = vstv %s4260_s21  ;;  %89 = vst.msk [vmem:[#allocation3 + $0xf0] sm:$0xff] %vm40_vm0, %v4281_v47  ;;  %s4732_s18 = sld [smem:[#allocation7 + $0x31]] }
  0x7d   :  { %6491 = vst [vmem:[#allocation70_spill] sm:$0xff] %v4350_v55  ;;  %90 = vst.msk [vmem:[#allocation3 + $0xf8] sm:$0xff] %vm40_vm0, %v4281_v47  ;;  %s4763_s19 = sld [smem:[#allocation7 + $0x35]] }
  0x7e   :  { %68 = vst.msk [vmem:[#allocation3 + $0x18] sm:$0xff] %vm40_vm0, %v4329_v1  ;;  %71 = vst.msk [vmem:[#allocation3 + $0xd8] sm:$0xff] %vm40_vm0, %v4329_v1  ;;  %s4783_s1 = sld [smem:[#allocation7 + $0x36]] }
  0x7f   :  { %72 = vst.msk [vmem:[#allocation3 + $0xe0] sm:$0xff] %vm40_vm0, %v4329_v1  ;;  %105 = vst.msk [vmem:[#allocation3 + $0x50] sm:$0xff] %vm40_vm0, %v4332_v2  ;;  %s4792_s0 = sld [smem:[#allocation7 + $0x37]] }
  0x80   :  { %104 = vst.msk [vmem:[#allocation3 + $0x48] sm:$0xff] %vm40_vm0, %v4332_v2  ;;  %107 = vst.msk [vmem:[#allocation3 + $0x108] sm:$0xff] %vm40_vm0, %v4332_v2  ;;  %s6614_s24 = sld [smem:[#allocation89_spill]] }
  0x81   :  { %108 = vst.msk [vmem:[#allocation3 + $0x110] sm:$0xff] %vm40_vm0, %v4332_v2  ;;  %141 = vst.msk [vmem:[#allocation3 + $0x80] sm:$0xff] %vm40_vm0, %v4347_v56 }
  0x82   :  { %140 = vst.msk [vmem:[#allocation3 + $0x78] sm:$0xff] %vm40_vm0, %v4347_v56  ;;  %143 = vst.msk [vmem:[#allocation3 + $0x138] sm:$0xff] %vm40_vm0, %v4347_v56 }
  0x83   :  { %144 = vst.msk [vmem:[#allocation3 + $0x140] sm:$0xff] %vm40_vm0, %v4347_v56  ;;  %177 = vst.msk [vmem:[#allocation3 + $0xb0] sm:$0xff] %vm40_vm0, %v4350_v55 }
  0x84   :  { %176 = vst.msk [vmem:[#allocation3 + $0xa8] sm:$0xff] %vm40_vm0, %v4350_v55  ;;  %179 = vst.msk [vmem:[#allocation3 + $0x168] sm:$0xff] %vm40_vm0, %v4350_v55 }
  0x85   :  { %180 = vst.msk [vmem:[#allocation3 + $0x170] sm:$0xff] %vm40_vm0, %v4350_v55 }
  0x86   :  { %169 = vst.msk [vmem:[#allocation2 + $0xb8] sm:$0x3] %vm43_vm1, %v4255_v39  ;;  %172 = vst.msk [vmem:[#allocation2 + $0x178] sm:$0x3] %vm43_vm1, %v4255_v39 }
  0x87   :  { %52 = vst.msk [vmem:[#allocation3 + $0x10] sm:$0x3] %vm43_vm1, %v4269_v43  ;;  %55 = vst.msk [vmem:[#allocation3 + $0xd0] sm:$0x3] %vm43_vm1, %v4269_v43 }
  0x88   :  { %88 = vst.msk [vmem:[#allocation3 + $0x40] sm:$0x3] %vm43_vm1, %v4281_v47  ;;  %91 = vst.msk [vmem:[#allocation3 + $0x100] sm:$0x3] %vm43_vm1, %v4281_v47 }
  0x89   :  { %163 = vst.msk [vmem:[#allocation3 + $0x160] sm:$0x3] %vm43_vm1, %v4309_v57  ;;  %70 = vst.msk [vmem:[#allocation3 + $0x28] sm:$0x3] %vm43_vm1, %v4329_v1  ;;  %v6504_v57 = vld [vmem:[#allocation54_spill] sm:$0xff] }
  0x8a   :  { %73 = vst.msk [vmem:[#allocation3 + $0xe8] sm:$0x3] %vm43_vm1, %v4329_v1  ;;  %106 = vst.msk [vmem:[#allocation3 + $0x58] sm:$0x3] %vm43_vm1, %v4332_v2 }
  0x8b   :  { %109 = vst.msk [vmem:[#allocation3 + $0x118] sm:$0x3] %vm43_vm1, %v4332_v2  ;;  %142 = vst.msk [vmem:[#allocation3 + $0x88] sm:$0x3] %vm43_vm1, %v4347_v56  ;;  %v6503_v2 = vld [vmem:[#allocation53_spill] sm:$0xff] }
  0x8c   :  { %145 = vst.msk [vmem:[#allocation3 + $0x148] sm:$0x3] %vm43_vm1, %v4347_v56  ;;  %178 = vst.msk [vmem:[#allocation3 + $0xb8] sm:$0x3] %vm43_vm1, %v4350_v55 }
  0x8d   :  { %181 = vst.msk [vmem:[#allocation3 + $0x178] sm:$0x3] %vm43_vm1, %v4350_v55  ;;  %v6502_v55 = vld [vmem:[#allocation52_spill] sm:$0xff] }
  0x9b   :  { %v4298_v53 = vpop.trf.xlu1  ;;  %v4300_v54 = vpop.trf.xlu0 }
  0x9c   :  { %v452_v59 = vmul.f32 %v4146_v8, %v4300_v54  ;;  %v464_v60 = vmul.f32 %v4151_v9, %v4298_v53  ;;  %v388_v61 = vmul.f32 %v4160_v12, %v4300_v54  ;;  %v400_v62 = vmul.f32 %v4165_v13, %v4298_v53 }
  0x9d   :  { %v644_v3 = vmul.f32 %v4174_v16, %v4300_v54  ;;  %v656_v4 = vmul.f32 %v4179_v17, %v4298_v53  ;;  %v516_v5 = vmul.f32 %v4188_v20, %v4300_v54  ;;  %v528_v6 = vmul.f32 %v4193_v21, %v4298_v53 }
  0x9e   :  { %v468_v0 = vadd.f32 %v464_v60, %v452_v59  ;;  %v404_v58 = vadd.f32 %v400_v62, %v388_v61  ;;  %v580_v52 = vmul.f32 %v4202_v24, %v4300_v54  ;;  %v592_v50 = vmul.f32 %v4207_v25, %v4298_v53 }
  0x9f   :  { %v4342_v7 = vpop.trf.xlu1  ;;  %v4344_v63 = vpop.trf.xlu0  ;;  %v772_v49 = vmul.f32 %v4216_v28, %v4300_v54  ;;  %v784_v48 = vmul.f32 %v4221_v29, %v4298_v53  ;;  %v660_v46 = vadd.f32 %v656_v4, %v644_v3  ;;  %v532_v45 = vadd.f32 %v528_v6, %v516_v5 }
  0xa0   :  { %v581_v59 = vmul.f32 %v4202_v24, %v4344_v63  ;;  %v593_v60 = vmul.f32 %v4207_v25, %v4342_v7  ;;  %v645_v61 = vmul.f32 %v4174_v16, %v4344_v63  ;;  %v657_v62 = vmul.f32 %v4179_v17, %v4342_v7 }
  0xa1   :  { %v389_v44 = vmul.f32 %v4160_v12, %v4344_v63  ;;  %v401_v42 = vmul.f32 %v4165_v13, %v4342_v7  ;;  %v453_v24 = vmul.f32 %v4146_v8, %v4344_v63  ;;  %v465_v25 = vmul.f32 %v4151_v9, %v4342_v7 }
  0xa2   :  { %v709_v16 = vmul.f32 %v4230_v32, %v4344_v63  ;;  %v721_v3 = vmul.f32 %v4235_v33, %v4342_v7  ;;  %v596_v8 = vadd.f32 %v592_v50, %v580_v52  ;;  %v597_v12 = vadd.f32 %v593_v60, %v581_v59 }
  0xa3   :  { %v4372_v41 = vpop.trf.xlu0  ;;  %v4390_v9 = vadd.f32 %v657_v62, %v645_v61  ;;  %v788_v13 = vadd.f32 %v784_v48, %v772_v49  ;;  %v4396_v33 = vadd.f32 %v401_v42, %v389_v44  ;;  %v4404_v52 = vadd.f32 %v465_v25, %v453_v24 }
  0xa4   :  { %v484_v4 = vmul.f32 %v4154_v10, %v4372_v41  ;;  %v420_v5 = vmul.f32 %v4168_v14, %v4372_v41  ;;  %v676_v6 = vmul.f32 %v4182_v18, %v4372_v41  ;;  %v548_v17 = vmul.f32 %v4196_v22, %v4372_v41 }
  0xa5   :  { %v612_v28 = vmul.f32 %v4210_v26, %v4372_v41  ;;  %v804_v50 = vmul.f32 %v4224_v30, %v4372_v41  ;;  %v4408_v48 = vmul.f32 %v4188_v20, %v4344_v63  ;;  %v4414_v44 = vadd.f32 %v721_v3, %v709_v16 }
  0xa6   :  { %v488_v40 = vadd.f32 %v484_v4, %v468_v0  ;;  %v424_v29 = vadd.f32 %v420_v5, %v404_v58  ;;  %v680_v38 = vadd.f32 %v676_v6, %v660_v46  ;;  %v4412_v42 = vadd.f32 %v548_v17, %v532_v45 }
  0xa7   :  { %v4400_v32 = vpop.trf.xlu0  ;;  %v4428_v25 = vmul.f32 %v4193_v21, %v4342_v7  ;;  %v4432_v16 = vadd.f32 %v612_v28, %v596_v8  ;;  %v4449_v59 = vadd.f32 %v804_v50, %v788_v13  ;;  %v4453_v8 = vmul.f32 %v4244_v36, %v4300_v54 }
  0xa8   :  { %v504_v49 = vadd.f32 %v4157_v11, %v488_v40  ;;  %v440_v58 = vadd.f32 %v4171_v15, %v424_v29  ;;  %v613_v46 = vmul.f32 %v4210_v26, %v4400_v32  ;;  %v4420_v0 = vmul.f32 %v4182_v18, %v4400_v32 }
  0xa9   :  { %v4424_v24 = vmul.f32 %v4168_v14, %v4400_v32  ;;  %v4436_v17 = vmul.f32 %v4154_v10, %v4400_v32  ;;  %v4440_v29 = vmul.f32 %v4238_v34, %v4400_v32  ;;  %v4445_v40 = vadd.f32 %v4185_v19, %v680_v38 }
  0xaa   :  { %934 = vrot.lane.b32.xlu0 %v504_v49, %s4029_s13  ;;  %930 = vrot.lane.b32.xlu1 %v440_v58, %s4029_s13  ;;  %v4447_v45 = vadd.f32 %v613_v46, %v597_v12  ;;  %v568_v12 = vadd.f32 %v4199_v23, %v4412_v42  ;;  %v681_v13 = vadd.f32 %v4420_v0, %v4390_v9  ;;  %v4608_v4 = vstv %s4398_s12  ;;  %v6494_v42 = vld [vmem:[#allocation42_spill] sm:$0xff]  ;;  %v6495_v46 = vld [vmem:[#allocation43_spill] sm:$0xff] }
  0xab   :  { %v425_v28 = vadd.f32 %v4424_v24, %v4396_v33  ;;  %v549_v38 = vmul.f32 %v4196_v22, %v4400_v32  ;;  %v489_v60 = vadd.f32 %v4436_v17, %v4404_v52  ;;  %v745_v61 = vadd.f32 %v4440_v29, %v4414_v44  ;;  %v6493_v52 = vld [vmem:[#allocation46_spill] sm:$0xff]  ;;  %v6496_v29 = vld [vmem:[#allocation39_spill] sm:$0xff] }
  0xac   :  { %v533_v62 = vadd.f32 %v4428_v25, %v4408_v48  ;;  %v848_v3 = vmul.f32 %v4249_v37, %v4298_v53  ;;  %v632_v9 = vadd.f32 %v4213_v27, %v4432_v16  ;;  %v4605_v33 = vstv %s4392_s2 }
  0xad   :  { %6492 = vst [vmem:[#allocation71_spill] sm:$0xff] %v4605_v33  ;;  %v633_v5 = vadd.f32 %v4213_v27, %v4447_v45  ;;  %v4616_v6 = vadd.f32 %v4227_v31, %v4449_v59  ;;  %v868_v48 = vmul.f32 %v6493_v52, %v4372_v41  ;;  %v697_v49 = vadd.f32 %v4185_v19, %v681_v13  ;;  %v6497_v45 = vld [vmem:[#allocation40_spill] sm:$0xff] }
  0xae   :  { %946 = vrot.lane.b32.xlu0 %v4445_v40, %s4029_s13  ;;  %938 = vrot.lane.b32.xlu1 %v568_v12, %s4029_s13  ;;  %v553_v50 = vadd.f32 %v549_v38, %v533_v62  ;;  %v441_v58 = vadd.f32 %v4171_v15, %v425_v28  ;;  %v708_v44 = vmul.f32 %v6494_v42, %v4300_v54  ;;  %v6498_v12 = vld [vmem:[#allocation48_spill] sm:$0xff]  ;;  %v4704_v28 = vstv %s4442_s14 }
  0xaf   :  { %v720_v0 = vmul.f32 %v6495_v46, %v4298_v53  ;;  %v505_v24 = vadd.f32 %v4157_v11, %v489_v60  ;;  %v761_v25 = vadd.f32 %v4241_v35, %v745_v61  ;;  %v852_v16 = vadd.f32 %v848_v3, %v4453_v8  ;;  %6499 = vst [vmem:[#allocation42_spill] sm:$0xff] %v4704_v28  ;;  %v6500_v61 = vld [vmem:[#allocation49_spill] sm:$0xff] }
  0xb0   :  { %v740_v17 = vmul.f32 %v4238_v34, %v4372_v41  ;;  %v773_v40 = vmul.f32 %v6496_v29, %v4344_v63  ;;  %v785_v59 = vmul.f32 %v6497_v45, %v4342_v7  ;;  %v394_v13 = vmul.f32 %v6498_v12, %v4300_v54 }
  0xb1   :  { %v569_v8 = vadd.f32 %v4199_v23, %v553_v50  ;;  %v872_v38 = vadd.f32 %v868_v48, %v852_v16  ;;  %v805_v60 = vmul.f32 %v4224_v30, %v4400_v32  ;;  %v410_v62 = vmul.f32 %v6500_v61, %v4298_v53 }
  0xb2   :  { %942 = vrot.lane.b32.xlu1 %v632_v9, %s4029_s13  ;;  %944 = vrot.lane.b32.xlu0 %v633_v5, %s4029_s13  ;;  %v724_v3 = vadd.f32 %v720_v0, %v708_v44  ;;  %v6501_v9 = vld [vmem:[#allocation50_spill] sm:$0xff]  ;;  %v523_v56 = vmul.f32 %v6502_v55, %v4344_v63  ;;  %v539_v1 = vmul.f32 %v6503_v2, %v4342_v7  ;;  %v4730_v23 = vstv %s4610_s16 }
  0xb3   :  { %v430_v5 = vmul.f32 %v6501_v9, %v4372_v41  ;;  %v837_v50 = vmul.f32 %v4244_v36, %v4344_v63  ;;  %v849_v48 = vmul.f32 %v4249_v37, %v4342_v7  ;;  %v414_v16 = vadd.f32 %v410_v62, %v394_v13  ;;  %6505 = vst [vmem:[#allocation39_spill] sm:$0xff] %v4730_v23  ;;  %v6508_v36 = vld [vmem:[#allocation58_spill] sm:$0xff] }
  0xb4   :  { %v559_v19 = vmul.f32 %v6504_v57, %v4400_v32  ;;  %v789_v44 = vadd.f32 %v785_v59, %v773_v40  ;;  %v543_v0 = vadd.f32 %v539_v1, %v523_v56  ;;  %v522_v18 = vmul.f32 %v6502_v55, %v4300_v54  ;;  %v6506_v1 = vld [vmem:[#allocation56_spill] sm:$0xff]  ;;  %v6507_v59 = vld [vmem:[#allocation57_spill] sm:$0xff] }
  0xb5   :  { %v869_v37 = vmul.f32 %v6493_v52, %v4400_v32  ;;  %v4736_v13 = vadd.f32 %v430_v5, %v414_v16  ;;  %v651_v40 = vmul.f32 %v6506_v1, %v4344_v63  ;;  %v667_v62 = vmul.f32 %v6507_v59, %v4342_v7 }
  0xb6   :  { %948 = vrot.lane.b32.xlu0 %v697_v49, %s4029_s13  ;;  %932 = vrot.lane.b32.xlu1 %v441_v58, %s4029_s13  ;;  %v538_v49 = vmul.f32 %v6503_v2, %v4298_v53  ;;  %v558_v58 = vmul.f32 %v6504_v57, %v4372_v41  ;;  %v4742_v56 = vadd.f32 %v559_v19, %v543_v0  ;;  %v4761_v30 = vstv %s4706_s17 }
  0xb7   :  { %v687_v52 = vmul.f32 %v6508_v36, %v4400_v32  ;;  %v888_v5 = vadd.f32 %v4255_v39, %v872_v38  ;;  %v650_v55 = vmul.f32 %v6506_v1, %v4300_v54  ;;  %v666_v57 = vmul.f32 %v6507_v59, %v4298_v53  ;;  %6509 = vst [vmem:[#allocation72_spill] sm:$0xff] %v4761_v30  ;;  %v6514_v1 = vld [vmem:[#allocation64_spill] sm:$0xff] }
  0xb8   :  { %v542_v16 = vadd.f32 %v538_v49, %v522_v18  ;;  %v744_v19 = vadd.f32 %v740_v17, %v724_v3  ;;  %v671_v0 = vadd.f32 %v667_v62, %v651_v40  ;;  %v686_v2 = vmul.f32 %v6508_v36, %v4372_v41  ;;  %v6510_v3 = vld [vmem:[#allocation60_spill] sm:$0xff]  ;;  %v6511_v62 = vld [vmem:[#allocation61_spill] sm:$0xff]  ;;  %v6513_v36 = vld [vmem:[#allocation62_spill] sm:$0xff] }
  0xb9   :  { %v670_v38 = vadd.f32 %v666_v57, %v650_v55  ;;  %v395_v49 = vmul.f32 %v6498_v12, %v4344_v63  ;;  %v431_v17 = vmul.f32 %v6501_v9, %v4400_v32  ;;  %v779_v40 = vmul.f32 %v6510_v3, %v4344_v63 }
  0xba   :  { %954 = vrot.lane.b32.xlu0 %v4616_v6, %s4029_s13  ;;  %936 = vrot.lane.b32.xlu1 %v505_v24, %s4029_s13  ;;  %v4765_v18 = vadd.f32 %v558_v58, %v542_v16  ;;  %v411_v6 = vmul.f32 %v6500_v61, %v4342_v7  ;;  %v4771_v24 = vadd.f32 %v687_v52, %v671_v0  ;;  %v4790_v12 = vstv %s4732_s18 }
  0xbb   :  { %v795_v58 = vmul.f32 %v6511_v62, %v4342_v7  ;;  %v853_v16 = vadd.f32 %v849_v48, %v837_v50  ;;  %v4779_v55 = vadd.f32 %v686_v2, %v670_v38  ;;  %v815_v59 = vmul.f32 %v6513_v36, %v4400_v32  ;;  %6515 = vst [vmem:[#allocation61_spill] sm:$0xff] %v4790_v12  ;;  %v6517_v48 = vld [vmem:[#allocation65_spill] sm:$0xff] }
  0xbc   :  { %v415_v57 = vadd.f32 %v411_v6, %v395_v49  ;;  %v809_v52 = vadd.f32 %v805_v60, %v789_v44  ;;  %v459_v9 = vmul.f32 %v6514_v1, %v4344_v63  ;;  %v760_v2 = vadd.f32 %v4241_v35, %v744_v19 }
  0xbd   :  { %6512 = vst [vmem:[#allocation60_spill] sm:$0xff] %v4779_v55  ;;  %v799_v0 = vadd.f32 %v795_v58, %v779_v40  ;;  %v475_v38 = vmul.f32 %v6517_v48, %v4342_v7  ;;  %v778_v44 = vmul.f32 %v6510_v3, %v4300_v54  ;;  %v794_v49 = vmul.f32 %v6511_v62, %v4298_v53 }
  0xbe   :  { %952 = vrot.lane.b32.xlu0 %v761_v25, %s4029_s13  ;;  %940 = vrot.lane.b32.xlu1 %v569_v8, %s4029_s13  ;;  %v4795_v50 = vadd.f32 %v431_v17, %v415_v57  ;;  %v6518_v25 = vld [vmem:[#allocation66_spill] sm:$0xff]  ;;  %v814_v19 = vmul.f32 %v6513_v36, %v4372_v41  ;;  %v873_v6 = vadd.f32 %v869_v37, %v853_v16 }
  0xbf   :  { %v495_v8 = vmul.f32 %v6518_v25, %v4400_v32  ;;  %v4801_v60 = vadd.f32 %v815_v59, %v799_v0  ;;  %v479_v17 = vadd.f32 %v475_v38, %v459_v9  ;;  %v458_v40 = vmul.f32 %v6514_v1, %v4300_v54 }
  0xc0   :  { %6516 = vst [vmem:[#allocation62_spill] sm:$0xff] %v4795_v50  ;;  %v474_v58 = vmul.f32 %v6517_v48, %v4298_v53  ;;  %v825_v59 = vadd.f32 %v4227_v31, %v809_v52  ;;  %v798_v57 = vadd.f32 %v794_v49, %v778_v44  ;;  %v494_v0 = vmul.f32 %v6518_v25, %v4372_v41 }
  0xc1   :  { %6519 = vst [vmem:[#allocation64_spill] sm:$0xff] %v4801_v60  ;;  %v4819_v60 = vstv %s4763_s19  ;;  %v4821_v37 = vadd.f32 %v495_v8, %v479_v17  ;;  %v587_v16 = vmul.f32 %v4605_v33, %v4344_v63  ;;  %v623_v52 = vmul.f32 %v4704_v28, %v4400_v32 }
  0xc2   :  { %958 = vrot.lane.b32.xlu0 %v888_v5, %s4029_s13  ;;  %950 = vrot.lane.b32.xlu1 %v760_v2, %s4029_s13  ;;  %6520 = vst [vmem:[#allocation65_spill] sm:$0xff] %v4819_v60  ;;  %v478_v9 = vadd.f32 %v474_v58, %v458_v40  ;;  %v603_v5 = vmul.f32 %v4608_v4, %v4342_v7  ;;  %v4840_v40 = vstv %s4783_s1 }
  0xc3   :  { %6521 = vst [vmem:[#allocation73_spill] sm:$0xff] %v4821_v37  ;;  %v4827_v2 = vadd.f32 %v814_v19, %v798_v57  ;;  %v586_v38 = vmul.f32 %v4605_v33, %v4300_v54  ;;  %v602_v8 = vmul.f32 %v4608_v4, %v4298_v53  ;;  %v622_v17 = vmul.f32 %v4704_v28, %v4372_v41 }
  0xc4   :  { %v4835_v44 = vadd.f32 %v494_v0, %v478_v9  ;;  %v607_v49 = vadd.f32 %v603_v5, %v587_v16  ;;  %6524 = vst [vmem:[#allocation76_spill] sm:$0xff] %v4840_v40  ;;  %v715_v58 = vmul.f32 %v4730_v23, %v4344_v63  ;;  %v731_v57 = vmul.f32 %v4761_v30, %v4342_v7 }
  0xc5   :  { %6522 = vst [vmem:[#allocation74_spill] sm:$0xff] %v4827_v2  ;;  %v606_v19 = vadd.f32 %v602_v8, %v586_v38  ;;  %v4848_v2 = vstv %s4792_s0  ;;  %v889_v0 = vadd.f32 %v4255_v39, %v873_v6  ;;  %v751_v16 = vmul.f32 %v4790_v12, %v4400_v32 }
  0xc6   :  { %6523 = vst [vmem:[#allocation75_spill] sm:$0xff] %v4835_v44  ;;  %956 = vrot.lane.b32.xlu0 %v825_v59, %s4029_s13  ;;  %6525 = vst [vmem:[#allocation77_spill] sm:$0xff] %v4848_v2  ;;  %v4851_v9 = vadd.f32 %v623_v52, %v607_v49  ;;  %v714_v5 = vmul.f32 %v4730_v23, %v4300_v54  ;;  %v735_v38 = vadd.f32 %v731_v57, %v715_v58 }
  0xc7   :  { %v4857_v59 = vadd.f32 %v622_v17, %v606_v19  ;;  %v730_v8 = vmul.f32 %v4761_v30, %v4298_v53  ;;  %v750_v44 = vmul.f32 %v4790_v12, %v4372_v41  ;;  %v843_v6 = vmul.f32 %v4819_v60, %v4344_v63  ;;  %v6543_v12 = vld [vmem:[#allocation29_spill] sm:$0xff] }
  0xc8   :  { %6526 = vst [vmem:[#allocation78_spill] sm:$0xff] %v4851_v9  ;;  %v859_v52 = vmul.f32 %v4840_v40, %v4342_v7  ;;  %v879_v49 = vmul.f32 %v4848_v2, %v4400_v32  ;;  %v4870_v17 = vadd.f32 %v751_v16, %v735_v38  ;;  %v842_v58 = vmul.f32 %v4819_v60, %v4300_v54  ;;  %v189_v16 = vld [vmem:[#allocation4 + $0x38] sm:$0xff]  ;;  %v4884_v38 = vpop.trf.xlu0 }
  0xc9   :  { %6527 = vst [vmem:[#allocation79_spill] sm:$0xff] %v4857_v59  ;;  %v734_v19 = vadd.f32 %v730_v8, %v714_v5  ;;  %v858_v59 = vmul.f32 %v4840_v40, %v4298_v53  ;;  %v878_v63 = vmul.f32 %v4848_v2, %v4372_v41  ;;  %v192_v5 = vld [vmem:[#allocation4 + $0x50] sm:$0xff]  ;;  %v193_v54 = vld [vmem:[#allocation4 + $0x58] sm:$0xff] }
  0xca   :  { %960 = vrot.lane.b32.xlu0 %v889_v0, %s4029_s13  ;;  %6528 = vst [vmem:[#allocation80_spill] sm:$0xff] %v4870_v17  ;;  %v863_v57 = vadd.f32 %v859_v52, %v843_v6  ;;  %v188_v0 = vld [vmem:[#allocation4 + $0x30] sm:$0xff] }
  0xcb   :  { %v4878_v9 = vadd.f32 %v750_v44, %v734_v19  ;;  %v862_v32 = vadd.f32 %v858_v59, %v842_v58 }
  0xcc   :  { %v4880_v7 = vadd.f32 %v879_v49, %v863_v57  ;;  %v4886_v53 = vpop.trf.xlu0 }
  0xcd   :  { %6529 = vst [vmem:[#allocation81_spill] sm:$0xff] %v4878_v9  ;;  %v4882_v39 = vadd.f32 %v878_v63, %v862_v32  ;;  %v5056_v30 = vmul.f32 %v6511_v62, %v4886_v53 }
  0xce   :  { %6530 = vst [vmem:[#allocation82_spill] sm:$0xff] %v4880_v7 }
  0xcf   :  { %6531 = vst [vmem:[#allocation83_spill] sm:$0xff] %v4882_v39 }
  0xeb   :  { %290 = vxpose.xlu1.b32.start [1/2] (short) (narrow) %v188_v0, 16 }
  0xef   :  { %291 = vxpose.xlu1.b32.end [2/2] (short) (narrow) %v189_v16, 16 }
  0xf3   :  { %354 = vxpose.xlu1.b32.start [1/2] (short) (narrow) %v192_v5, 16 }
  0xf7   :  { %355 = vxpose.xlu1.b32.end [2/2] (short) (narrow) %v193_v54, 16 }
 0x11c   :  { %v931_v41 = vpop.permute.xlu1 %930  ;;  %v935_v44 = vpop.permute.xlu0 %934 }
 0x11d   :  { %1027 = vst.msk [vmem:[#allocation2 + $0x1] sm:$0xff] %vm1026_vm2, %v931_v41  ;;  %1029 = vst.msk [vmem:[#allocation2 + $0x19] sm:$0xff] %vm1026_vm2, %v935_v44 }
 0x120   :  { %v939_v59 = vpop.permute.xlu1 %938  ;;  %v947_v8 = vpop.permute.xlu0 %946 }
 0x121   :  { %1031 = vst.msk [vmem:[#allocation2 + $0x31] sm:$0xff] %vm1026_vm2, %v939_v59  ;;  %1035 = vst.msk [vmem:[#allocation2 + $0x61] sm:$0xff] %vm1026_vm2, %v947_v8 }
 0x124   :  { %v943_v6 = vpop.permute.xlu1 %942  ;;  %v945_v52 = vpop.permute.xlu0 %944  ;;  %v1219_v63 = vld [vmem:[#allocation2] sm:$0xff]  ;;  %v1222_v32 = vld [vmem:[#allocation2 + $0x18] sm:$0xff] }
 0x125   :  { %1033 = vst.msk [vmem:[#allocation2 + $0x49] sm:$0xff] %vm1026_vm2, %v943_v6  ;;  %1034 = vst.msk [vmem:[#allocation2 + $0x51] sm:$0xff] %vm1026_vm2, %v945_v52  ;;  %v1267_v54 = vadd.f32 1.0, %v1219_v63  ;;  %v1270_v41 = vadd.f32 1.0, %v1222_v32 }
 0x128   :  { %v933_v49 = vpop.permute.xlu1 %932  ;;  %v949_v19 = vpop.permute.xlu0 %948  ;;  %v1225_v0 = vld [vmem:[#allocation2 + $0x30] sm:$0xff] }
 0x129   :  { %1028 = vst.msk [vmem:[#allocation2 + $0x9] sm:$0xff] %vm1026_vm2, %v933_v49  ;;  %1036 = vst.msk [vmem:[#allocation2 + $0x69] sm:$0xff] %vm1026_vm2, %v949_v19  ;;  %v1273_v59 = vadd.f32 1.0, %v1225_v0  ;;  %v1315_v49 = vsel %vm40_vm0, %v1267_v54, -inf  ;;  %v1316_v19 = vsel %vm40_vm0, %v1270_v41, -inf }
 0x12a   :  { %v1317_v63 = vmax.f32 %v1315_v49, %v1316_v19 }
 0x12c   :  { %v937_v58 = vpop.permute.xlu1 %936  ;;  %v955_v57 = vpop.permute.xlu0 %954  ;;  %v1228_v44 = vld [vmem:[#allocation2 + $0x48] sm:$0xff] }
 0x12d   :  { %1030 = vst.msk [vmem:[#allocation2 + $0x21] sm:$0xff] %vm1026_vm2, %v937_v58  ;;  %1039 = vst.msk [vmem:[#allocation2 + $0x91] sm:$0xff] %vm1026_vm2, %v955_v57  ;;  %v1276_v52 = vadd.f32 1.0, %v1228_v44  ;;  %v1318_v58 = vsel %vm40_vm0, %v1273_v59, -inf  ;;  %v1231_v57 = vld [vmem:[#allocation2 + $0x60] sm:$0xff] }
 0x12e   :  { %v1319_v0 = vmax.f32 %v1317_v63, %v1318_v58 }
 0x130   :  { %v941_v16 = vpop.permute.xlu1 %940  ;;  %v953_v5 = vpop.permute.xlu0 %952 }
 0x131   :  { %1032 = vst.msk [vmem:[#allocation2 + $0x39] sm:$0xff] %vm1026_vm2, %v941_v16  ;;  %1038 = vst.msk [vmem:[#allocation2 + $0x81] sm:$0xff] %vm1026_vm2, %v953_v5  ;;  %v1320_v16 = vsel %vm40_vm0, %v1276_v52, -inf  ;;  %v1279_v5 = vadd.f32 1.0, %v1231_v57 }
 0x132   :  { %v1321_v44 = vmax.f32 %v1319_v0, %v1320_v16 }
 0x134   :  { %v951_v8 = vpop.permute.xlu1 %950  ;;  %v959_v6 = vpop.permute.xlu0 %958  ;;  %v1237_v9 = vld [vmem:[#allocation2 + $0x90] sm:$0xff]  ;;  %v1224_v0 = vld [vmem:[#allocation2 + $0x28] sm:$0x3] }
 0x135   :  { %1037 = vst.msk [vmem:[#allocation2 + $0x79] sm:$0xff] %vm1026_vm2, %v951_v8  ;;  %1041 = vst.msk [vmem:[#allocation2 + $0xa9] sm:$0xff] %vm1026_vm2, %v959_v6  ;;  %v1322_v8 = vsel %vm40_vm0, %v1279_v5, -inf  ;;  %v1285_v49 = vadd.f32 1.0, %v1237_v9  ;;  %v1221_v9 = vld [vmem:[#allocation2 + $0x10] sm:$0x3] }
 0x136   :  { %v1323_v6 = vmax.f32 %v1321_v44, %v1322_v8 }
 0x137   :  { %v1326_v50 = vsel %vm40_vm0, %v1285_v49, -inf }
 0x138   :  { %v957_v32 = vpop.permute.xlu0 %956  ;;  %v1227_v8 = vld [vmem:[#allocation2 + $0x40] sm:$0x3]  ;;  %v1236_v55 = vld [vmem:[#allocation2 + $0x88] sm:$0x3] }
 0x139   :  { %1040 = vst.msk [vmem:[#allocation2 + $0x99] sm:$0xff] %vm1026_vm2, %v957_v32 }
 0x13c   :  { %v1234_v39 = vld [vmem:[#allocation2 + $0x78] sm:$0xff]  ;;  %v961_v7 = vpop.permute.xlu0 %960  ;;  %v1240_v19 = vld [vmem:[#allocation2 + $0xa8] sm:$0xff] }
 0x13d   :  { %v1282_v17 = vadd.f32 1.0, %v1234_v39  ;;  %1042 = vst.msk [vmem:[#allocation2 + $0xb1] sm:$0xff] %vm1026_vm2, %v961_v7  ;;  %v4911_v32 = vadd.f32 1.0, %v1240_v19 }
 0x13f   :  { %v1324_v37 = vsel %vm40_vm0, %v1282_v17, -inf  ;;  %v1328_v57 = vsel %vm40_vm0, %v4911_v32, -inf }
 0x140   :  { %v1325_v61 = vmax.f32 %v1323_v6, %v1324_v37  ;;  %v4920_v6 = vadd.f32 1.0, %v1224_v0 }
 0x142   :  { %v1327_v58 = vmax.f32 %v1325_v61, %v1326_v50  ;;  %v4922_v61 = vadd.f32 1.0, %v1221_v9  ;;  %v4924_v50 = vadd.f32 1.0, %v1227_v8 }
 0x144   :  { %v4915_v63 = vmax.f32 %v1327_v58, %v1328_v57  ;;  %v1230_v58 = vld [vmem:[#allocation2 + $0x58] sm:$0x3]  ;;  %v1345_v57 = vsel %vm43_vm1, %v4922_v61, -inf }
 0x145   :  { %v4934_v0 = vadd.f32 1.0, %v1230_v58 }
 0x146   :  { %v1405_v39 = vsub.f32 %v1267_v54, %v4915_v63  ;;  %v1408_v7 = vsub.f32 %v1270_v41, %v4915_v63  ;;  %v1411_v37 = vsub.f32 %v1273_v59, %v4915_v63  ;;  %v1414_v19 = vsub.f32 %v1276_v52, %v4915_v63 }
 0x147   :  { %v1346_v41 = vsel %vm43_vm1, %v4920_v6, -inf  ;;  %v1348_v59 = vsel %vm43_vm1, %v4924_v50, -inf  ;;  %v1420_v9 = vsub.f32 %v1282_v17, %v4915_v63  ;;  %v1350_v2 = vsel %vm43_vm1, %v4934_v0, -inf }
 0x148   :  { %v1453_v16 = vmul.f32 1.442695, %v1405_v39  ;;  %v1459_v44 = vmul.f32 1.442695, %v1408_v7  ;;  %v1465_v54 = vmul.f32 1.442695, %v1411_v37  ;;  %v1347_v7 = vmax.f32 %v1345_v57, %v1346_v41 }
 0x149   :  { %v1471_v39 = vmul.f32 1.442695, %v1414_v19  ;;  %v1483_v58 = vmul.f32 1.442695, %v1420_v9  ;;  %v4946_v57 = vadd.f32 1.0, %v1236_v55  ;;  %v1426_v55 = vsub.f32 %v4911_v32, %v4915_v63 }
 0x14a   :  { %3881 = vpow2.f32 %v1453_v16  ;;  %v1417_v16 = vsub.f32 %v1279_v5, %v4915_v63  ;;  %v1349_v52 = vmax.f32 %v1347_v7, %v1348_v59  ;;  %v1239_v5 = vld [vmem:[#allocation2 + $0xa0] sm:$0x3]  ;;  %v1242_v59 = vld [vmem:[#allocation2 + $0xb8] sm:$0x3]  ;;  %v4976_v32 = vadd.f32 %v4281_v47, %v4765_v18  ;;  %v6540_v18 = vld [vmem:[#allocation36_spill] sm:$0xff] }
 0x14b   :  { %3883 = vpow2.f32 %v1459_v44  ;;  %v1233_v44 = vld [vmem:[#allocation2 + $0x70] sm:$0x3]  ;;  %v4950_v7 = vadd.f32 1.0, %v1239_v5  ;;  %v1354_v9 = vsel %vm43_vm1, %v4946_v57, -inf  ;;  %v4972_v5 = vadd.f32 %v4281_v47, %v4742_v56 }
 0x14c   :  { %3885 = vpow2.f32 %v1465_v54  ;;  %v4937_v8 = vadd.f32 1.0, %v1233_v44  ;;  %v1477_v37 = vmul.f32 1.442695, %v1417_v16  ;;  %v1351_v60 = vmax.f32 %v1349_v52, %v1350_v2  ;;  %6536 = vst [vmem:[#allocation88_spill] sm:$0xff] %v4976_v32  ;;  %v6544_v32 = vld [vmem:[#allocation27_spill] sm:$0xff] }
 0x14d   :  { %3887 = vpow2.f32 %v1471_v39  ;;  %v1423_v54 = vsub.f32 %v1285_v49, %v4915_v63  ;;  %v4960_v52 = vadd.f32 1.0, %v1242_v59  ;;  %6535 = vst [vmem:[#allocation87_spill] sm:$0xff] %v4972_v5  ;;  %v6538_v59 = vld [vmem:[#allocation30_spill] sm:$0xff] }
 0x14e   :  { %3889 = vpow2.f32 %v1477_v37  ;;  %v1352_v17 = vsel %vm43_vm1, %v4937_v8, -inf  ;;  %v403_v28 = vmul.f32 %v6538_v59, %v4886_v53 }
 0x14f   :  { %v1353_v39 = vmax.f32 %v1351_v60, %v1352_v17  ;;  %3891 = vpow2.f32 %v1483_v58  ;;  %v1489_v49 = vmul.f32 1.442695, %v1423_v54  ;;  %v4964_v60 = vadd.f32 %v4269_v43, %v4736_v13  ;;  %v6537_v13 = vld [vmem:[#allocation37_spill] sm:$0xff] }
 0x150   :  { %v1356_v58 = vsel %vm43_vm1, %v4950_v7, -inf  ;;  %v594_v17 = vmul.f32 %v6537_v13, %v4884_v38  ;;  %v1358_v43 = vsel %vm43_vm1, %v4960_v52, -inf }
 0x151   :  { %v1355_v54 = vmax.f32 %v1353_v39, %v1354_v9  ;;  %v6541_v39 = vld [vmem:[#allocation28_spill] sm:$0xff]  ;;  %3893 = vpow2.f32 %v1489_v49 }
 0x152   :  { %v5014_v33 = vmul.f32 %v6541_v39, %v4886_v53 }
 0x157   :  { %v4941_v19 = vpop.eup %3881 }
 0x158   :  { %6532 = vst [vmem:[#allocation84_spill] sm:$0xff] %v4941_v19  ;;  %v4943_v41 = vpop.eup %3883  ;;  %v1549_v2 = vsel %vm40_vm0, %v4941_v19, 0.0  ;;  %v4986_v19 = vadd.f32 %v4293_v51, %v4771_v24  ;;  %v530_v24 = vmul.f32 %v4193_v21, %v4884_v38 }
 0x159   :  { %6533 = vst [vmem:[#allocation85_spill] sm:$0xff] %v4943_v41  ;;  %v1550_v16 = vsel %vm40_vm0, %v4943_v41, 0.0  ;;  %v4968_v37 = vpop.eup %3885  ;;  %v402_v41 = vmul.f32 %v6538_v59, %v4884_v38 }
 0x15a   :  { %6534 = vst [vmem:[#allocation86_spill] sm:$0xff] %v4968_v37  ;;  %v1551_v63 = vadd.f32 %v1550_v16, %v1549_v2  ;;  %6539 = vst [vmem:[#allocation37_spill] sm:$0xff] %v4986_v19  ;;  %v466_v2 = vmul.f32 %v6541_v39, %v4884_v38  ;;  %v1495_v16 = vmul.f32 1.442695, %v1426_v55  ;;  %v4994_v9 = vpop.eup %3887  ;;  %v1552_v51 = vsel %vm40_vm0, %v4968_v37, 0.0  ;;  %v6545_v37 = vld [vmem:[#allocation32_spill] sm:$0xff] }
 0x15b   :  { %6542 = vst [vmem:[#allocation30_spill] sm:$0xff] %v4994_v9  ;;  %v723_v19 = vmul.f32 %v6495_v46, %v4886_v53  ;;  %v787_v55 = vmul.f32 %v6497_v45, %v4886_v53  ;;  %v5018_v25 = vmul.f32 %v6545_v37, %v4884_v38  ;;  %v5032_v45 = vpop.eup %3889 }
 0x15c   :  { %v1553_v49 = vadd.f32 %v1552_v51, %v1551_v63  ;;  %3895 = vpow2.f32 %v1495_v16  ;;  %v1554_v51 = vsel %vm40_vm0, %v4994_v9, 0.0 }
 0x167   :  { %v4956_v44 = vpop.trf.xlu1 }
 0x168   :  { %v582_v47 = vmul.f32 %v6540_v18, %v4956_v44  ;;  %v390_v40 = vmul.f32 %v6543_v12, %v4956_v44  ;;  %v1357_v18 = vmax.f32 %v1355_v54, %v1356_v58  ;;  %v454_v23 = vmul.f32 %v6544_v32, %v4956_v44 }
 0x16a   :  { %v598_v5 = vadd.f32 %v594_v17, %v582_v47  ;;  %v5024_v63 = vmax.f32 %v1357_v18, %v1358_v43  ;;  %v406_v58 = vadd.f32 %v402_v41, %v390_v40  ;;  %v518_v47 = vmul.f32 %v4188_v20, %v4956_v44 }
 0x16b   :  { %v4988_v56 = vpop.trf.xlu1  ;;  %v5038_v17 = vmul.f32 %v4193_v21, %v4886_v53  ;;  %v5042_v43 = vmul.f32 %v6511_v62, %v4884_v38  ;;  %v1555_v40 = vadd.f32 %v1554_v51, %v1553_v49  ;;  %v470_v16 = vadd.f32 %v466_v2, %v454_v23  ;;  %v5060_v23 = vpop.eup %3891 }
 0x16c   :  { %v711_v9 = vmul.f32 %v6494_v42, %v4988_v56  ;;  %v5052_v21 = vmul.f32 %v6537_v13, %v4886_v53  ;;  %6546 = vst [vmem:[#allocation28_spill] sm:$0xff] %v5060_v23  ;;  %v1410_v62 = vsub.f32 %v4920_v6, %v5024_v63 }
 0x16f   :  { %v5020_v46 = vpop.trf.xlu1 }
 0x170   :  { %v614_v54 = vmul.f32 %v4210_v26, %v5020_v46  ;;  %v422_v59 = vmul.f32 %v4168_v14, %v5020_v46  ;;  %v486_v39 = vmul.f32 %v4154_v10, %v5020_v46  ;;  %v550_v26 = vmul.f32 %v4196_v22, %v5020_v46 }
 0x172   :  { %v618_v41 = vadd.f32 %v614_v54, %v598_v5  ;;  %v426_v18 = vadd.f32 %v422_v59, %v406_v58  ;;  %v1407_v5 = vsub.f32 %v4922_v61, %v5024_v63  ;;  %v490_v51 = vadd.f32 %v486_v39, %v470_v16 }
 0x173   :  { %v5046_v37 = vpop.trf.xlu1  ;;  %v1556_v54 = vsel %vm40_vm0, %v5032_v45, 0.0  ;;  %v534_v58 = vadd.f32 %v530_v24, %v518_v47  ;;  %v727_v61 = vadd.f32 %v723_v19, %v711_v9  ;;  %v391_v39 = vmul.f32 %v6543_v12, %v4988_v56  ;;  %v6548_v9 = vld [vmem:[#allocation41_spill] sm:$0xff] }
 0x174   :  { %v634_v2 = vadd.f32 %v4213_v27, %v618_v41  ;;  %v442_v49 = vadd.f32 %v4171_v15, %v426_v18  ;;  %v743_v13 = vmul.f32 %v4238_v34, %v5046_v37  ;;  %v1557_v59 = vadd.f32 %v1556_v54, %v1555_v40  ;;  %v5082_v40 = vpop.eup %3893 }
 0x175   :  { %v775_v41 = vmul.f32 %v6496_v29, %v4988_v56  ;;  %v554_v18 = vadd.f32 %v550_v26, %v534_v58  ;;  %v5078_v24 = vmul.f32 %v6517_v48, %v4884_v38  ;;  %v1558_v47 = vsel %vm40_vm0, %v5060_v23, 0.0  ;;  %6547 = vst [vmem:[#allocation29_spill] sm:$0xff] %v5082_v40 }
 0x176   :  { %974 = vrot.lane.b32.xlu1 %v634_v2, %s4029_s13  ;;  %962 = vrot.lane.b32.xlu0 %v442_v49, %s4029_s13  ;;  %v1457_v6 = vmul.f32 1.442695, %v1407_v5  ;;  %v506_v16 = vadd.f32 %v4157_v11, %v490_v51  ;;  %v747_v19 = vadd.f32 %v743_v13, %v727_v61  ;;  %v807_v2 = vmul.f32 %v6548_v9, %v5046_v37 }
 0x177   :  { %v423_v12 = vmul.f32 %v4168_v14, %v5046_v37  ;;  %v5091_v26 = vmul.f32 %v4608_v4, %v4884_v38  ;;  %v1559_v49 = vadd.f32 %v1558_v47, %v1557_v59  ;;  %v1413_v54 = vsub.f32 %v4924_v50, %v5024_v63  ;;  %v6549_v14 = vld [vmem:[#allocation35_spill] sm:$0xff]  ;;  %v5105_v50 = vpop.eup %3895 }
 0x178   :  { %v1463_v5 = vmul.f32 1.442695, %v1410_v62  ;;  %v791_v51 = vadd.f32 %v787_v55, %v775_v41  ;;  %v407_v58 = vadd.f32 %v403_v28, %v391_v39  ;;  %v455_v13 = vmul.f32 %v6544_v32, %v4988_v56 }
 0x179   :  { %v570_v61 = vadd.f32 %v6549_v14, %v554_v18  ;;  %v1560_v23 = vsel %vm40_vm0, %v5082_v40, 0.0  ;;  %v1416_v59 = vsub.f32 %v4934_v0, %v5024_v63  ;;  %3897 = vpow2.f32 %v1457_v6 }
 0x17a   :  { %1091 = vrot.lane.b32.xlu1 %v4964_v60, %s4029_s13  ;;  %966 = vrot.lane.b32.xlu0 %v506_v16, %s4029_s13  ;;  %v763_v60 = vadd.f32 %v4241_v35, %v747_v19  ;;  %v811_v62 = vadd.f32 %v807_v2, %v791_v51  ;;  %v427_v47 = vadd.f32 %v423_v12, %v407_v58  ;;  %3899 = vpow2.f32 %v1463_v5  ;;  %v6550_v2 = vld [vmem:[#allocation31_spill] sm:$0xff] }
 0x17b   :  { %v487_v28 = vmul.f32 %v4154_v10, %v5046_v37  ;;  %v519_v32 = vmul.f32 %v4188_v20, %v4988_v56  ;;  %v477_v55 = vmul.f32 %v6517_v48, %v4886_v53  ;;  %v1561_v41 = vadd.f32 %v1560_v23, %v1559_v49 }
 0x17c   :  { %v471_v0 = vadd.f32 %v5014_v33, %v455_v13  ;;  %v1419_v39 = vsub.f32 %v4937_v8, %v5024_v63  ;;  %v1422_v10 = vsub.f32 %v4946_v57, %v5024_v63  ;;  %v1469_v18 = vmul.f32 1.442695, %v1413_v54 }
 0x17d   :  { %v551_v20 = vmul.f32 %v4196_v22, %v5046_v37  ;;  %v605_v48 = vmul.f32 %v4608_v4, %v4886_v53  ;;  %v1425_v23 = vsub.f32 %v4950_v7, %v5024_v63  ;;  %v1475_v6 = vmul.f32 1.442695, %v1416_v59  ;;  %v6552_v59 = vld [vmem:[#allocation72_spill] sm:$0xff] }
 0x17e   :  { %970 = vrot.lane.b32.xlu0 %v570_v61, %s4029_s13  ;;  %984 = vrot.lane.b32.xlu1 %v763_v60, %s4029_s13  ;;  %v827_v16 = vadd.f32 %v4227_v31, %v811_v62  ;;  %v443_v33 = vadd.f32 %v4171_v15, %v427_v47  ;;  %v491_v19 = vadd.f32 %v487_v28, %v471_v0  ;;  %v1562_v8 = vsel %vm40_vm0, %v5105_v50, 0.0  ;;  %v6553_v62 = vld [vmem:[#allocation87_spill] sm:$0xff] }
 0x17f   :  { %v535_v57 = vadd.f32 %v5038_v17, %v519_v32  ;;  %v646_v22 = vmul.f32 %v6550_v2, %v4956_v44  ;;  %v781_v4 = vmul.f32 %v6510_v3, %v4988_v56  ;;  %v1563_v12 = vadd.f32 %v1562_v8, %v1561_v41  ;;  %v6551_v17 = vld [vmem:[#allocation33_spill] sm:$0xff]  ;;  %v6560_v8 = vld [vmem:[#allocation76_spill] sm:$0xff] }
 0x180   :  { %v1428_v15 = vsub.f32 %v4960_v52, %v5024_v63  ;;  %3901 = vpow2.f32 %v1469_v18  ;;  %v1481_v7 = vmul.f32 1.442695, %v1419_v39  ;;  %v1487_v49 = vmul.f32 1.442695, %v1422_v10 }
 0x181   :  { %v555_v54 = vadd.f32 %v551_v20, %v535_v57  ;;  %v678_v5 = vmul.f32 %v6551_v17, %v5020_v46  ;;  %v5143_v51 = vadd.f32 %v5056_v30, %v781_v4  ;;  %3903 = vpow2.f32 %v1475_v6  ;;  %v6556_v20 = vld [vmem:[#allocation42_spill] sm:$0xff]  ;;  %v6557_v6 = vld [vmem:[#allocation39_spill] sm:$0xff] }
 0x182   :  { %988 = vrot.lane.b32.xlu1 %v827_v16, %s4029_s13  ;;  %964 = vrot.lane.b32.xlu0 %v443_v33, %s4029_s13  ;;  %v507_v58 = vadd.f32 %v4157_v11, %v491_v19  ;;  %v780_v13 = vmul.f32 %v6510_v3, %v4956_v44  ;;  %v816_v61 = vmul.f32 %v6513_v36, %v5020_v46  ;;  %3905 = vrcp.f32 %v1563_v12  ;;  %v6559_v19 = vld [vmem:[#allocation88_spill] sm:$0xff] }
 0x183   :  { %v461_v52 = vmul.f32 %v6514_v1, %v4988_v56  ;;  %v662_v63 = vadd.f32 %v5018_v25, %v646_v22  ;;  %v733_v60 = vmul.f32 %v6552_v59, %v4886_v53  ;;  %v1493_v30 = vmul.f32 1.442695, %v1425_v23  ;;  %v6554_v25 = vld [vmem:[#allocation66_spill] sm:$0xff] }
 0x184   :  { %v800_v11 = vadd.f32 %v5042_v43, %v780_v13  ;;  %v460_v47 = vmul.f32 %v6514_v1, %v4956_v44  ;;  %3907 = vpow2.f32 %v1481_v7  ;;  %v496_v32 = vmul.f32 %v6554_v25, %v5020_v46  ;;  %v6561_v7 = vld [vmem:[#allocation34_spill] sm:$0xff]  ;;  %v6563_v13 = vld [vmem:[#allocation65_spill] sm:$0xff] }
 0x185   :  { %v5159_v3 = vadd.f32 %v477_v55, %v461_v52  ;;  %v682_v28 = vadd.f32 %v678_v5, %v662_v63  ;;  %3909 = vpow2.f32 %v1487_v49  ;;  %v1499_v41 = vmul.f32 1.442695, %v1428_v15  ;;  %v6555_v55 = vld [vmem:[#allocation71_spill] sm:$0xff]  ;;  %v6562_v5 = vld [vmem:[#allocation61_spill] sm:$0xff]  ;;  %v6564_v52 = vld [vmem:[#allocation36_spill] sm:$0xff] }
 0x186   :  { %1101 = vrot.lane.b32.xlu1 %v6553_v62, %s4029_s13  ;;  %968 = vrot.lane.b32.xlu0 %v507_v58, %s4029_s13  ;;  %v5165_v0 = vpop.eup %3897  ;;  %v571_v39 = vadd.f32 %v6549_v14, %v555_v54  ;;  %v5168_v10 = vadd.f32 %v816_v61, %v800_v11  ;;  %v480_v43 = vadd.f32 %v5078_v24, %v460_v47  ;;  %3911 = vpow2.f32 %v1493_v30 }
 0x187   :  { %v589_v18 = vmul.f32 %v6555_v55, %v4988_v56  ;;  %v588_v1 = vmul.f32 %v6555_v55, %v4956_v44  ;;  %v624_v23 = vmul.f32 %v6556_v20, %v5020_v46  ;;  %v717_v16 = vmul.f32 %v6557_v6, %v4988_v56  ;;  %v5181_v14 = vpop.eup %3899 }
 0x188   :  { %v732_v33 = vmul.f32 %v6552_v59, %v4884_v38  ;;  %6558 = vst [vmem:[#allocation27_spill] sm:$0xff] %v5181_v14  ;;  %v5186_v24 = vadd.f32 %v496_v32, %v480_v43  ;;  %v861_v57 = vmul.f32 %v6560_v8, %v4886_v53  ;;  %v860_v22 = vmul.f32 %v6560_v8, %v4884_v38  ;;  %v6567_v32 = vld [vmem:[#allocation59_spill] sm:$0xff] }
 0x189   :  { %v5192_v4 = vadd.f32 %v605_v48, %v589_v18  ;;  %v608_v12 = vadd.f32 %v5091_v26, %v588_v1  ;;  %v5195_v15 = vadd.f32 %v733_v60, %v717_v16  ;;  %3913 = vpow2.f32 %v1499_v41  ;;  %v6565_v60 = vld [vmem:[#allocation37_spill] sm:$0xff]  ;;  %v6569_v1 = vld [vmem:[#allocation62_spill] sm:$0xff] }
 0x18a   :  { %1099 = vrot.lane.b32.xlu1 %v6559_v19, %s4029_s13  ;;  %972 = vrot.lane.b32.xlu0 %v571_v39, %s4029_s13  ;;  %v698_v49 = vadd.f32 %v6561_v7, %v682_v28  ;;  %v716_v54 = vmul.f32 %v6557_v6, %v4956_v44  ;;  %v752_v58 = vmul.f32 %v6562_v5, %v5020_v46  ;;  %v1579_v26 = vsel %vm43_vm1, %v5165_v0, 0.0  ;;  %v6566_v28 = vld [vmem:[#allocation60_spill] sm:$0xff]  ;;  %v6568_v39 = vld [vmem:[#allocation77_spill] sm:$0xff]  ;;  %v6571_v16 = vld [vmem:[#allocation38_spill] sm:$0xff] }
 0x18b   :  { %v845_v61 = vmul.f32 %v6563_v13, %v4988_v56  ;;  %v583_v48 = vmul.f32 %v6564_v52, %v4988_v56  ;;  %v5206_v63 = vadd.f32 %v624_v23, %v608_v12  ;;  %v1580_v59 = vsel %vm43_vm1, %v5181_v14, 0.0  ;;  %v6570_v23 = vld [vmem:[#allocation51_spill] sm:$0xff] }
 0x18c   :  { %v736_v30 = vadd.f32 %v732_v33, %v716_v54  ;;  %v844_v11 = vmul.f32 %v6563_v13, %v4956_v44  ;;  %v702_v41 = vadd.f32 %v6567_v32, %v6566_v28  ;;  %v880_v43 = vmul.f32 %v6568_v39, %v5020_v46  ;;  %v6573_v54 = vld [vmem:[#allocation43_spill] sm:$0xff]  ;;  %v6575_v28 = vld [vmem:[#allocation64_spill] sm:$0xff] }
 0x18d   :  { %v5215_v62 = vadd.f32 %v861_v57, %v845_v61  ;;  %v5219_v47 = vpop.eup %3901  ;;  %v6409_v55 = vmov 0.0   ;;  %v447_v6 = vadd.f32 %v6570_v23, %v6569_v1  ;;  %v615_v33 = vmul.f32 %v6571_v16, %v5046_v37  ;;  %v6572_v57 = vld [vmem:[#allocation49_spill] sm:$0xff]  ;;  %v6578_v16 = vld [vmem:[#allocation67_spill] sm:$0xff] }
 0x18e   :  { %1109 = vrot.lane.b32.xlu1 %v6565_v60, %s4029_s13  ;;  %978 = vrot.lane.b32.xlu0 %v698_v49, %s4029_s13  ;;  %v5226_v18 = vpop.eup %3903  ;;  %v5232_v19 = vadd.f32 %v752_v58, %v736_v30  ;;  %v864_v8 = vadd.f32 %v860_v22, %v844_v11  ;;  %v413_v12 = vmul.f32 %v6572_v57, %v4886_v53  ;;  %v6574_v58 = vld [vmem:[#allocation48_spill] sm:$0xff]  ;;  %v6577_v1 = vld [vmem:[#allocation73_spill] sm:$0xff] }
 0x18f   :  { %3634 = vmatprep.subr.mxu0 %v6409_v55  ;;  %3649 = vmatprep.subr.mxu1 %v6409_v55  ;;  %v710_v49 = vmul.f32 %v6494_v42, %v4956_v44  ;;  %v722_v13 = vmul.f32 %v6573_v54, %v4884_v38  ;;  %v1581_v61 = vadd.f32 %v1580_v59, %v1579_v26  ;;  %v5241_v52 = vpop.eup %3905  ;;  %v1582_v42 = vsel %vm43_vm1, %v5219_v47, 0.0  ;;  %v6576_v26 = vld [vmem:[#allocation63_spill] sm:$0xff] }
 0x190   :  { %v599_v22 = vadd.f32 %v5052_v21, %v583_v48  ;;  %v397_v60 = vmul.f32 %v6574_v58, %v4988_v56  ;;  %v5248_v30 = vadd.f32 %v880_v43, %v864_v8  ;;  %v831_v59 = vadd.f32 %v6576_v26, %v6575_v28  ;;  %v6579_v43 = vld [vmem:[#allocation50_spill] sm:$0xff] }
 0x191   :  { %v5252_v11 = vpop.eup %3907  ;;  %v1583_v21 = vadd.f32 %v1582_v42, %v1581_v61  ;;  %v433_v8 = vmul.f32 %v6579_v43, %v5046_v37  ;;  %v412_v55 = vmul.f32 %v6572_v57, %v4884_v38  ;;  %v1584_v40 = vsel %vm43_vm1, %v5226_v18, 0.0  ;;  %v6581_v61 = vld [vmem:[#allocation32_spill] sm:$0xff] }
 0x192   :  { %1107 = vrot.lane.b32.xlu1 %v702_v41, %s4029_s13  ;;  %1093 = vrot.lane.b32.xlu0 %v447_v6, %s4029_s13  ;;  %v511_v41 = vadd.f32 %v6578_v16, %v6577_v1  ;;  %v742_v6 = vmul.f32 %v4238_v34, %v5020_v46  ;;  %v5260_v48 = vpop.eup %3909  ;;  %v619_v54 = vadd.f32 %v615_v33, %v599_v22 }
 0x193   :  { %v726_v28 = vadd.f32 %v722_v13, %v710_v49  ;;  %v396_v1 = vmul.f32 %v6574_v58, %v4956_v44  ;;  %v1585_v14 = vadd.f32 %v1584_v40, %v1583_v21  ;;  %v5272_v34 = vmul.f32 %v5241_v52, %v5105_v50  ;;  %v5282_v13 = vpop.eup %3911  ;;  %v6582_v40 = vld [vmem:[#allocation74_spill] sm:$0xff] }
 0x194   :  { %v417_v33 = vadd.f32 %v413_v12, %v397_v60  ;;  %v647_v57 = vmul.f32 %v6550_v2, %v4988_v56  ;;  %v659_v22 = vmul.f32 %v6581_v61, %v4886_v53  ;;  %v1586_v49 = vsel %vm43_vm1, %v5252_v11, 0.0 }
 0x195   :  { %6580 = vst [vmem:[#allocation41_spill] sm:$0xff] %v5272_v34  ;;  %v830_v50 = vadd.f32 %v6576_v26, %v6582_v40  ;;  %v746_v58 = vadd.f32 %v742_v6, %v726_v28  ;;  %v432_v42 = vmul.f32 %v6579_v43, %v5020_v46  ;;  %v635_v2 = vadd.f32 %v4213_v27, %v619_v54  ;;  %v6583_v34 = vld [vmem:[#allocation53_spill] sm:$0xff]  ;;  %v6584_v6 = vld [vmem:[#allocation40_spill] sm:$0xff] }
 0x196   :  { %1117 = vrot.lane.b32.xlu1 %v831_v59, %s4029_s13  ;;  %1097 = vrot.lane.b32.xlu0 %v511_v41, %s4029_s13  ;;  %v1587_v59 = vadd.f32 %v1586_v49, %v1585_v14  ;;  %v5288_v12 = vpop.eup %3913  ;;  %v437_v60 = vadd.f32 %v433_v8, %v417_v33  ;;  %v679_v41 = vmul.f32 %v6551_v17, %v5046_v37  ;;  %v1588_v21 = vsel %vm43_vm1, %v5260_v48, 0.0  ;;  %v6585_v14 = vld [vmem:[#allocation52_spill] sm:$0xff]  ;;  %v6586_v33 = vld [vmem:[#allocation54_spill] sm:$0xff] }
 0x197   :  { %v416_v61 = vadd.f32 %v412_v55, %v396_v1  ;;  %v541_v40 = vmul.f32 %v6583_v34, %v4886_v53  ;;  %v786_v28 = vmul.f32 %v6584_v6, %v4884_v38  ;;  %v663_v27 = vadd.f32 %v659_v22, %v647_v57  ;;  %v6588_v6 = vld [vmem:[#allocation56_spill] sm:$0xff] }
 0x198   :  { %v1589_v43 = vadd.f32 %v1588_v21, %v1587_v59  ;;  %v525_v54 = vmul.f32 %v6585_v14, %v4988_v56  ;;  %v774_v17 = vmul.f32 %v6496_v29, %v4956_v44  ;;  %v1590_v55 = vsel %vm43_vm1, %v5282_v13, 0.0 }
 0x199   :  { %v762_v8 = vadd.f32 %v4241_v35, %v746_v58  ;;  %v436_v1 = vadd.f32 %v432_v42, %v416_v61  ;;  %v561_v49 = vmul.f32 %v6586_v33, %v5046_v37  ;;  %v806_v57 = vmul.f32 %v6548_v9, %v5020_v46 }
 0x19a   :  { %1115 = vrot.lane.b32.xlu1 %v830_v50, %s4029_s13  ;;  %976 = vrot.lane.b32.xlu0 %v635_v2, %s4029_s13  ;;  %v1591_v59 = vadd.f32 %v1590_v55, %v1589_v43  ;;  %v449_v50 = vadd.f32 %v6570_v23, %v437_v60  ;;  %v683_v2 = vadd.f32 %v679_v41, %v663_v27  ;;  %v1592_v22 = vsel %vm43_vm1, %v5288_v12, 0.0  ;;  %v6592_v55 = vld [vmem:[#allocation58_spill] sm:$0xff] }
 0x19b   :  { %v540_v29 = vmul.f32 %v6583_v34, %v4884_v38  ;;  %v545_v35 = vadd.f32 %v541_v40, %v525_v54  ;;  %v790_v58 = vadd.f32 %v786_v28, %v774_v17  ;;  %v524_v42 = vmul.f32 %v6585_v14, %v4956_v44  ;;  %v6590_v14 = vld [vmem:[#allocation44_spill] sm:$0xff] }
 0x19c   :  { %v1593_v21 = vadd.f32 %v1592_v22, %v1591_v59  ;;  %v448_v60 = vadd.f32 %v6570_v23, %v436_v1  ;;  %v6587_v9 = vmov 0.0   ;;  %v699_v34 = vadd.f32 %v6561_v7, %v683_v2  ;;  %v6589_v23 = vld [vmem:[#allocation57_spill] sm:$0xff]  ;;  %v6593_v1 = vld [vmem:[#allocation55_spill] sm:$0xff] }
 0x19d   :  { %3640 = vmatprep.mubr.msk.f32.mxu0 %vm4031_vm3, %v6587_v9  ;;  %3655 = vmatprep.mubr.msk.f32.mxu1 %vm4031_vm3, %v6587_v9  ;;  %v565_v41 = vadd.f32 %v561_v49, %v545_v35  ;;  %v810_v61 = vadd.f32 %v806_v57, %v790_v58  ;;  %v560_v40 = vmul.f32 %v6586_v33, %v5020_v46  ;;  %v6591_v7 = vld [vmem:[#allocation45_spill] sm:$0xff]  ;;  %v6595_v58 = vld [vmem:[#allocation75_spill] sm:$0xff] }
 0x19e   :  { %1125 = vrot.lane.b32.xlu1 %v449_v50, %s4029_s13  ;;  %982 = vrot.lane.b32.xlu0 %v762_v8, %s4029_s13  ;;  %3915 = vrcp.f32 %v1593_v21  ;;  %v653_v28 = vmul.f32 %v6588_v6, %v4988_v56  ;;  %v669_v43 = vmul.f32 %v6589_v23, %v4886_v53  ;;  %v544_v27 = vadd.f32 %v540_v29, %v524_v42  ;;  %v6594_v50 = vld [vmem:[#allocation46_spill] sm:$0xff] }
 0x19f   :  { %v838_v54 = vmul.f32 %v6590_v14, %v4956_v44  ;;  %v850_v17 = vmul.f32 %v6591_v7, %v4884_v38  ;;  %v689_v8 = vmul.f32 %v6592_v55, %v5046_v37  ;;  %v577_v33 = vadd.f32 %v6593_v1, %v565_v41 }
 0x1a0   :  { %v826_v49 = vadd.f32 %v4227_v31, %v810_v61  ;;  %v564_v59 = vadd.f32 %v560_v40, %v544_v27  ;;  %v870_v2 = vmul.f32 %v6594_v50, %v5020_v46  ;;  %v673_v57 = vadd.f32 %v669_v43, %v653_v28 }
 0x1a1   :  { %v668_v22 = vmul.f32 %v6589_v23, %v4884_v38  ;;  %v851_v29 = vmul.f32 %v6591_v7, %v4886_v53  ;;  %v854_v21 = vadd.f32 %v850_v17, %v838_v54  ;;  %v652_v35 = vmul.f32 %v6588_v6, %v4956_v44  ;;  %v6596_v6 = vld [vmem:[#allocation47_spill] sm:$0xff] }
 0x1a2   :  { %1123 = vrot.lane.b32.xlu1 %v448_v60, %s4029_s13  ;;  %980 = vrot.lane.b32.xlu0 %v699_v34, %s4029_s13  ;;  %v839_v31 = vmul.f32 %v6590_v14, %v4988_v56  ;;  %v510_v42 = vadd.f32 %v6578_v16, %v6595_v58  ;;  %v693_v60 = vadd.f32 %v689_v8, %v673_v57  ;;  %v1223_v17 = vld [vmem:[#allocation2 + $0x20] sm:$0xff]  ;;  %v1232_v58 = vld [vmem:[#allocation2 + $0x68] sm:$0xff] }
 0x1a3   :  { %v576_v38 = vadd.f32 %v6593_v1, %v564_v59  ;;  %v874_v34 = vadd.f32 %v870_v2, %v854_v21  ;;  %v688_v53 = vmul.f32 %v6592_v55, %v5020_v46  ;;  %v871_v41 = vmul.f32 %v6594_v50, %v5046_v37  ;;  %v1226_v55 = vld [vmem:[#allocation2 + $0x38] sm:$0xff]  ;;  %v6599_v2 = vld [vmem:[#allocation79_spill] sm:$0xff] }
 0x1a4   :  { %v672_v44 = vadd.f32 %v668_v22, %v652_v35  ;;  %v855_v61 = vadd.f32 %v851_v29, %v839_v31  ;;  %v705_v56 = vadd.f32 %v6567_v32, %v693_v60  ;;  %v817_v46 = vmul.f32 %v6513_v36, %v5046_v37  ;;  %v1220_v36 = vld [vmem:[#allocation2 + $0x8] sm:$0xff]  ;;  %v1229_v22 = vld [vmem:[#allocation2 + $0x50] sm:$0xff] }
 0x1a5   :  { %v890_v28 = vadd.f32 %v6596_v6, %v874_v34  ;;  %v1271_v8 = vadd.f32 1.0, %v1223_v17  ;;  %v1268_v59 = vadd.f32 1.0, %v1220_v36  ;;  %v5384_v50 = vadd.f32 1.0, %v1226_v55  ;;  %v6601_v60 = vld [vmem:[#allocation69_spill] sm:$0xff] }
 0x1a6   :  { %1133 = vrot.lane.b32.xlu1 %v577_v33, %s4029_s13  ;;  %986 = vrot.lane.b32.xlu0 %v826_v49, %s4029_s13  ;;  %v692_v23 = vadd.f32 %v688_v53, %v672_v44  ;;  %v875_v43 = vadd.f32 %v871_v41, %v855_v61  ;;  %v821_v7 = vadd.f32 %v817_v46, %v5143_v51  ;;  %v6597_v33 = vld [vmem:[#allocation78_spill] sm:$0xff]  ;;  %v6598_v49 = vld [vmem:[#allocation68_spill] sm:$0xff]  ;;  %v1277_v31 = vadd.f32 1.0, %v1229_v22  ;;  %v1235_v53 = vld [vmem:[#allocation2 + $0x80] sm:$0xff] }
 0x1a7   :  { %v1331_v51 = vsel %vm40_vm0, %v1271_v8, -inf  ;;  %v638_v57 = vadd.f32 %v6598_v49, %v6599_v2  ;;  %v1330_v29 = vsel %vm40_vm0, %v1268_v59, -inf  ;;  %v1333_v21 = vsel %vm40_vm0, %v5384_v50, -inf  ;;  %v6602_v41 = vld [vmem:[#allocation81_spill] sm:$0xff]  ;;  %v6604_v46 = vld [vmem:[#allocation70_spill] sm:$0xff] }
 0x1a8   :  { %v704_v14 = vadd.f32 %v6567_v32, %v692_v23  ;;  %v891_v54 = vadd.f32 %v6596_v6, %v875_v43  ;;  %v833_v1 = vadd.f32 %v6576_v26, %v821_v7  ;;  %v832_v32 = vadd.f32 %v6576_v26, %v5168_v10  ;;  %v1241_v23 = vld [vmem:[#allocation2 + $0xb0] sm:$0xff]  ;;  %v6603_v43 = vld [vmem:[#allocation82_spill] sm:$0xff] }
 0x1a9   :  { %v1332_v35 = vmax.f32 %v1330_v29, %v1331_v51  ;;  %v1280_v26 = vadd.f32 1.0, %v1232_v58  ;;  %v1335_v34 = vsel %vm40_vm0, %v1277_v31, -inf  ;;  %v766_v44 = vadd.f32 %v6601_v60, %v6602_v41 }
 0x1aa   :  { %1131 = vrot.lane.b32.xlu1 %v576_v38, %s4029_s13  ;;  %1095 = vrot.lane.b32.xlu0 %v510_v42, %s4029_s13  ;;  %v6600_v42 = vld [vmem:[#allocation80_spill] sm:$0xff]  ;;  %v1283_v6 = vadd.f32 1.0, %v1235_v53  ;;  %v5413_v36 = vadd.f32 1.0, %v1241_v23 }
 0x1ab   :  { %v5365_v40 = vpop.eup %3915  ;;  %v767_v38 = vadd.f32 %v6601_v60, %v6600_v42  ;;  %v1334_v10 = vmax.f32 %v1332_v35, %v1333_v21 }
 0x1ac   :  { %v5374_v27 = vmul.f32 %v5365_v40, %v5288_v12  ;;  %v639_v12 = vadd.f32 %v6598_v49, %v6597_v33  ;;  %v1339_v55 = vsel %vm40_vm0, %v1283_v6, -inf }
 0x1ad   :  { %v1336_v61 = vmax.f32 %v1334_v10, %v1335_v34  ;;  %v640_v34 = vadd.f32 %v6598_v49, %v5206_v63  ;;  %v768_v63 = vadd.f32 %v6601_v60, %v5232_v19 }
 0x1ae   :  { %1141 = vrot.lane.b32.xlu1 %v705_v56, %s4029_s13  ;;  %990 = vrot.lane.b32.xlu0 %v890_v28, %s4029_s13  ;;  %v1238_v56 = vld [vmem:[#allocation2 + $0x98] sm:$0xff]  ;;  %v1337_v28 = vsel %vm40_vm0, %v1280_v26, -inf }
 0x1af   :  { %v1338_v7 = vmax.f32 %v1336_v61, %v1337_v28  ;;  %v5410_v17 = vadd.f32 1.0, %v1238_v56 }
 0x1b1   :  { %v1340_v51 = vmax.f32 %v1338_v7, %v1339_v55 }
 0x1b2   :  { %1139 = vrot.lane.b32.xlu1 %v704_v14, %s4029_s13  ;;  %992 = vrot.lane.b32.xlu0 %v891_v54, %s4029_s13  ;;  %v895_v14 = vadd.f32 %v6604_v46, %v6603_v43  ;;  %v497_v54 = vmul.f32 %v6554_v25, %v5046_v37  ;;  %v1343_v25 = vsel %vm40_vm0, %v5413_v36, -inf }
 0x1b6   :  { %1149 = vrot.lane.b32.xlu1 %v833_v1, %s4029_s13  ;;  %1105 = vrot.lane.b32.xlu0 %v639_v12, %s4029_s13  ;;  %v6605_v1 = vld [vmem:[#allocation83_spill] sm:$0xff]  ;;  %v501_v12 = vadd.f32 %v497_v54, %v5159_v3  ;;  %v512_v3 = vadd.f32 %v6578_v16, %v5186_v24 }
 0x1b7   :  { %v894_v33 = vadd.f32 %v6604_v46, %v6605_v1 }
 0x1b8   :  { %v513_v2 = vadd.f32 %v6578_v16, %v501_v12 }
 0x1ba   :  { %1147 = vrot.lane.b32.xlu1 %v832_v32, %s4029_s13  ;;  %1103 = vrot.lane.b32.xlu0 %v638_v57, %s4029_s13  ;;  %v1341_v32 = vsel %vm40_vm0, %v5410_v17, -inf  ;;  %v625_v57 = vmul.f32 %v6556_v20, %v5046_v37 }
 0x1bb   :  { %v1342_v22 = vmax.f32 %v1340_v51, %v1341_v32 }
 0x1bc   :  { %v629_v21 = vadd.f32 %v625_v57, %v5192_v4 }
 0x1bd   :  { %v1344_v29 = vmax.f32 %v1342_v22, %v1343_v25 }
 0x1be   :  { %1113 = vrot.lane.b32.xlu0 %v767_v38, %s4029_s13  ;;  %v641_v42 = vadd.f32 %v6598_v49, %v629_v21  ;;  %v753_v38 = vmul.f32 %v6562_v5, %v5046_v37  ;;  %v881_v5 = vmul.f32 %v6568_v39, %v5046_v37 }
 0x1bf   :  { %v1406_v35 = vsub.f32 %v1268_v59, %v1344_v29  ;;  %v1409_v58 = vsub.f32 %v1271_v8, %v1344_v29  ;;  %v1412_v4 = vsub.f32 %v5384_v50, %v1344_v29  ;;  %v1415_v8 = vsub.f32 %v1277_v31, %v1344_v29 }
 0x1c0   :  { %v757_v24 = vadd.f32 %v753_v38, %v5195_v15  ;;  %v885_v15 = vadd.f32 %v881_v5, %v5215_v62  ;;  %v1418_v49 = vsub.f32 %v1280_v26, %v1344_v29  ;;  %v1421_v41 = vsub.f32 %v1283_v6, %v1344_v29 }
 0x1c1   :  { %v1455_v20 = vmul.f32 1.442695, %v1406_v35  ;;  %v1461_v10 = vmul.f32 1.442695, %v1409_v58  ;;  %v1467_v59 = vmul.f32 1.442695, %v1412_v4  ;;  %v896_v62 = vadd.f32 %v6604_v46, %v5248_v30 }
 0x1c2   :  { %1111 = vrot.lane.b32.xlu0 %v766_v44, %s4029_s13  ;;  %v769_v16 = vadd.f32 %v6601_v60, %v757_v24  ;;  %v1473_v50 = vmul.f32 1.442695, %v1415_v8  ;;  %v897_v53 = vadd.f32 %v6604_v46, %v885_v15  ;;  %v1479_v44 = vmul.f32 1.442695, %v1418_v49 }
 0x1c3   :  { %3917 = vpow2.f32 %v1455_v20  ;;  %v1424_v60 = vsub.f32 %v5410_v17, %v1344_v29  ;;  %v1485_v26 = vmul.f32 1.442695, %v1421_v41  ;;  %v1427_v30 = vsub.f32 %v5413_v36, %v1344_v29 }
 0x1c4   :  { %3919 = vpow2.f32 %v1461_v10 }
 0x1c5   :  { %3921 = vpow2.f32 %v1467_v59  ;;  %v1491_v23 = vmul.f32 1.442695, %v1424_v60  ;;  %v1497_v7 = vmul.f32 1.442695, %v1427_v30 }
 0x1c6   :  { %1121 = vrot.lane.b32.xlu0 %v895_v14, %s4029_s13  ;;  %3923 = vpow2.f32 %v1473_v50 }
 0x1c7   :  { %3925 = vpow2.f32 %v1479_v44 }
 0x1c8   :  { %3927 = vpow2.f32 %v1485_v26 }
 0x1c9   :  { %3929 = vpow2.f32 %v1491_v23 }
 0x1ca   :  { %1119 = vrot.lane.b32.xlu0 %v894_v33, %s4029_s13  ;;  %3931 = vpow2.f32 %v1497_v7 }
 0x1ce   :  { %1129 = vrot.lane.b32.xlu0 %v513_v2, %s4029_s13 }
 0x1d0   :  { %v5451_v37 = vpop.eup %3917 }
 0x1d1   :  { %v5453_v39 = vpop.eup %3919  ;;  %v1564_v61 = vsel %vm40_vm0, %v5451_v37, 0.0 }
 0x1d2   :  { %1127 = vrot.lane.b32.xlu0 %v512_v3, %s4029_s13  ;;  %v1565_v56 = vsel %vm40_vm0, %v5453_v39, 0.0  ;;  %v5468_v43 = vpop.eup %3921 }
 0x1d3   :  { %v1566_v46 = vadd.f32 %v1565_v56, %v1564_v61  ;;  %v1567_v17 = vsel %vm40_vm0, %v5468_v43, 0.0  ;;  %v5474_v55 = vpop.eup %3923 }
 0x1d4   :  { %v1569_v12 = vsel %vm40_vm0, %v5474_v55, 0.0  ;;  %v5480_v51 = vpop.eup %3925 }
 0x1d5   :  { %v1568_v1 = vadd.f32 %v1567_v17, %v1566_v46  ;;  %v1571_v57 = vsel %vm40_vm0, %v5480_v51, 0.0  ;;  %v5486_v22 = vpop.eup %3927 }
 0x1d6   :  { %1137 = vrot.lane.b32.xlu0 %v641_v42, %s4029_s13  ;;  %v1573_v35 = vsel %vm40_vm0, %v5486_v22, 0.0  ;;  %v5492_v58 = vpop.eup %3929 }
 0x1d7   :  { %v1570_v32 = vadd.f32 %v1569_v12, %v1568_v1  ;;  %v1575_v10 = vsel %vm40_vm0, %v5492_v58, 0.0 }
 0x1d9   :  { %v1572_v29 = vadd.f32 %v1571_v57, %v1570_v32 }
 0x1da   :  { %1135 = vrot.lane.b32.xlu0 %v640_v34, %s4029_s13  ;;  %v5498_v34 = vpop.eup %3931 }
 0x1db   :  { %v1574_v42 = vadd.f32 %v1573_v35, %v1572_v29  ;;  %v1577_v5 = vsel %vm40_vm0, %v5498_v34, 0.0 }
 0x1dd   :  { %v1576_v24 = vadd.f32 %v1575_v10, %v1574_v42 }
 0x1de   :  { %1145 = vrot.lane.b32.xlu0 %v769_v16, %s4029_s13 }
 0x1df   :  { %v1578_v8 = vadd.f32 %v1577_v5, %v1576_v24 }
 0x1e1   :  { %3933 = vrcp.f32 %v1578_v8 }
 0x1e2   :  { %1143 = vrot.lane.b32.xlu0 %v768_v63, %s4029_s13 }
 0x1e6   :  { %1153 = vrot.lane.b32.xlu0 %v897_v53, %s4029_s13 }
 0x1e8   :  { %v975_v31 = vpop.permute.xlu1 %974  ;;  %v963_v19 = vpop.permute.xlu0 %962 }
 0x1e9   :  { %1049 = vst.msk [vmem:[#allocation2 + $0x109] sm:$0xff] %vm1026_vm2, %v975_v31  ;;  %1043 = vst.msk [vmem:[#allocation2 + $0xc1] sm:$0xff] %vm1026_vm2, %v963_v19 }
 0x1ea   :  { %1151 = vrot.lane.b32.xlu0 %v896_v62, %s4029_s13 }
 0x1ec   :  { %v1092_v6 = vpop.permute.xlu1 %1091  ;;  %v967_v28 = vpop.permute.xlu0 %966 }
 0x1ed   :  { %1187 = vst.msk [vmem:[#allocation3 + $0x1] sm:$0xff] %vm1026_vm2, %v1092_v6  ;;  %1045 = vst.msk [vmem:[#allocation2 + $0xd9] sm:$0xff] %vm1026_vm2, %v967_v28  ;;  %v6606_v6 = vld [vmem:[#allocation84_spill] sm:$0xff] }
 0x1ee   :  { %v1645_v28 = vmul.f32 %v5241_v52, %v6606_v6  ;;  %v5522_v23 = vpop.eup %3933 }
 0x1f0   :  { %v985_v14 = vpop.permute.xlu1 %984  ;;  %v971_v54 = vpop.permute.xlu0 %970  ;;  %v1243_v30 = vld [vmem:[#allocation2 + $0xc0] sm:$0xff]  ;;  %v1252_v29 = vld [vmem:[#allocation2 + $0x108] sm:$0xff] }
 0x1f1   :  { %1054 = vst.msk [vmem:[#allocation2 + $0x141] sm:$0xff] %vm1026_vm2, %v985_v14  ;;  %1047 = vst.msk [vmem:[#allocation2 + $0xf1] sm:$0xff] %vm1026_vm2, %v971_v54  ;;  %v5536_v12 = vadd.f32 1.0, %v1243_v30 }
 0x1f4   :  { %v989_v36 = vpop.permute.xlu1 %988  ;;  %v965_v33 = vpop.permute.xlu0 %964  ;;  %v1246_v19 = vld [vmem:[#allocation2 + $0xd8] sm:$0xff]  ;;  %v1693_v26 = vld [vmem:[#allocation3] sm:$0xff] }
 0x1f5   :  { %1056 = vst.msk [vmem:[#allocation2 + $0x159] sm:$0xff] %vm1026_vm2, %v989_v36  ;;  %1044 = vst.msk [vmem:[#allocation2 + $0xc9] sm:$0xff] %vm1026_vm2, %v965_v33  ;;  %v5524_v46 = vadd.f32 1.0, %v1246_v19 }
 0x1f8   :  { %v1102_v25 = vpop.permute.xlu1 %1101  ;;  %v969_v2 = vpop.permute.xlu0 %968  ;;  %v1249_v56 = vld [vmem:[#allocation2 + $0xf0] sm:$0xff] }
 0x1f9   :  { %1192 = vst.msk [vmem:[#allocation3 + $0x39] sm:$0xff] %vm1026_vm2, %v1102_v25  ;;  %1046 = vst.msk [vmem:[#allocation2 + $0xe1] sm:$0xff] %vm1026_vm2, %v969_v2  ;;  %v5529_v33 = vadd.f32 1.0, %v1249_v56  ;;  %v1646_v25 = vmul.f32 %v5522_v23, %v5451_v37 }
 0x1fb   :  { %v1363_v24 = vsel %vm40_vm0, %v5529_v33, -inf }
 0x1fc   :  { %v1100_v3 = vpop.permute.xlu1 %1099  ;;  %v973_v21 = vpop.permute.xlu0 %972  ;;  %v1244_v14 = vld [vmem:[#allocation2 + $0xc8] sm:$0xff] }
 0x1fd   :  { %1191 = vst.msk [vmem:[#allocation3 + $0x31] sm:$0xff] %vm1026_vm2, %v1100_v3  ;;  %1048 = vst.msk [vmem:[#allocation2 + $0xf9] sm:$0xff] %vm1026_vm2, %v973_v21  ;;  %v5541_v2 = vadd.f32 1.0, %v1244_v14  ;;  %v1361_v3 = vsel %vm40_vm0, %v5524_v46, -inf }
 0x200   :  { %v1110_v38 = vpop.permute.xlu1 %1109  ;;  %v979_v20 = vpop.permute.xlu0 %978  ;;  %v1247_v61 = vld [vmem:[#allocation2 + $0xe0] sm:$0xff]  ;;  %v1248_v5 = vld [vmem:[#allocation2 + $0xe8] sm:$0x3] }
 0x201   :  { %1196 = vst.msk [vmem:[#allocation3 + $0x69] sm:$0xff] %vm1026_vm2, %v1110_v38  ;;  %1051 = vst.msk [vmem:[#allocation2 + $0x121] sm:$0xff] %vm1026_vm2, %v979_v20  ;;  %v1701_v1 = vld [vmem:[#allocation3 + $0x40] sm:$0x3]  ;;  %v5527_v36 = vadd.f32 1.0, %v1247_v61  ;;  %v5577_v56 = vadd.f32 1.0, %v1248_v5 }
 0x203   :  { %v1376_v37 = vsel %vm40_vm0, %v5527_v36, -inf }
 0x204   :  { %v1108_v4 = vpop.permute.xlu1 %1107  ;;  %v1094_v16 = vpop.permute.xlu0 %1093  ;;  %v1250_v54 = vld [vmem:[#allocation2 + $0xf8] sm:$0xff] }
 0x205   :  { %1195 = vst.msk [vmem:[#allocation3 + $0x61] sm:$0xff] %vm1026_vm2, %v1108_v4  ;;  %1188 = vst.msk [vmem:[#allocation3 + $0x9] sm:$0xff] %vm1026_vm2, %v1094_v16  ;;  %v5543_v57 = vadd.f32 1.0, %v1250_v54  ;;  %v1700_v20 = vld [vmem:[#allocation3 + $0x38] sm:$0xff]  ;;  %v1647_v4 = vmul.f32 %v5365_v40, %v5165_v0  ;;  %v1360_v16 = vsel %vm40_vm0, %v5536_v12, -inf }
 0x208   :  { %v1118_v59 = vpop.permute.xlu1 %1117  ;;  %v1098_v63 = vpop.permute.xlu0 %1097  ;;  %v1255_v21 = vld [vmem:[#allocation2 + $0x120] sm:$0xff] }
 0x209   :  { %1200 = vst.msk [vmem:[#allocation3 + $0x99] sm:$0xff] %vm1026_vm2, %v1118_v59  ;;  %1190 = vst.msk [vmem:[#allocation3 + $0x21] sm:$0xff] %vm1026_vm2, %v1098_v63  ;;  %v1362_v63 = vmax.f32 %v1360_v16, %v1361_v3  ;;  %v5572_v0 = vadd.f32 1.0, %v1255_v21 }
 0x20c   :  { %v1116_v15 = vpop.permute.xlu1 %1115  ;;  %v977_v49 = vpop.permute.xlu0 %976  ;;  %v1695_v50 = vld [vmem:[#allocation3 + $0x10] sm:$0x3]  ;;  %v1694_v44 = vld [vmem:[#allocation3 + $0x8] sm:$0xff] }
 0x20d   :  { %1199 = vst.msk [vmem:[#allocation3 + $0x91] sm:$0xff] %vm1026_vm2, %v1116_v15  ;;  %1050 = vst.msk [vmem:[#allocation2 + $0x111] sm:$0xff] %vm1026_vm2, %v977_v49  ;;  %3635 = vmatpush3.xpose.msk.msra.mxu0 %vm40_vm0, %v1695_v50  ;;  %v1375_v15 = vsel %vm40_vm0, %v5541_v2, -inf  ;;  %v1378_v49 = vsel %vm40_vm0, %v5543_v57, -inf  ;;  %v1245_v50 = vld [vmem:[#allocation2 + $0xd0] sm:$0x3] }
 0x20e   :  { %3636 = vmatprep.subr.mxu0 %v6587_v9  ;;  %v5586_v54 = vadd.f32 1.0, %v1245_v50 }
 0x210   :  { %v1126_v53 = vpop.permute.xlu1 %1125  ;;  %v983_v41 = vpop.permute.xlu0 %982  ;;  %v1698_v31 = vld [vmem:[#allocation3 + $0x28] sm:$0x3]  ;;  %v1390_v50 = vsel %vm43_vm1, %v5586_v54, -inf }
 0x211   :  { %1204 = vst.msk [vmem:[#allocation3 + $0xc9] sm:$0xff] %vm1026_vm2, %v1126_v53  ;;  %1053 = vst.msk [vmem:[#allocation2 + $0x139] sm:$0xff] %vm1026_vm2, %v983_v41  ;;  %3637 = vmatpush3.xpose.msk.msra.mxu0 %vm40_vm0, %v1694_v44  ;;  %3650 = vmatpush3.xpose.msk.msra.mxu1 %vm40_vm0, %v1698_v31  ;;  %v5570_v53 = vadd.f32 1.0, %v1252_v29  ;;  %v1377_v41 = vmax.f32 %v1375_v15, %v1376_v37  ;;  %v1251_v44 = vld [vmem:[#allocation2 + $0x100] sm:$0x3]  ;;  %v1367_v29 = vsel %vm40_vm0, %v5572_v0, -inf }
 0x212   :  { %3638 = vmatprep.subr.mxu0 %v6587_v9  ;;  %3651 = vmatprep.subr.mxu1 %v6587_v9  ;;  %v1652_v15 = vmul.f32 %v5522_v23, %v5468_v43 }
 0x213   :  { %v1379_v30 = vmax.f32 %v1377_v41, %v1378_v49  ;;  %v1260_v41 = vld [vmem:[#allocation2 + $0x148] sm:$0x3] }
 0x214   :  { %v1124_v62 = vpop.permute.xlu1 %1123  ;;  %v981_v60 = vpop.permute.xlu0 %980  ;;  %v1253_v32 = vld [vmem:[#allocation2 + $0x110] sm:$0xff]  ;;  %v1254_v14 = vld [vmem:[#allocation2 + $0x118] sm:$0x3] }
 0x215   :  { %1203 = vst.msk [vmem:[#allocation3 + $0xc1] sm:$0xff] %vm1026_vm2, %v1124_v62  ;;  %1052 = vst.msk [vmem:[#allocation2 + $0x129] sm:$0xff] %vm1026_vm2, %v981_v60  ;;  %3639 = vmatpush3.xpose.msk.msra.mxu0 %vm40_vm0, %v1693_v26  ;;  %v5548_v10 = vadd.f32 1.0, %v1253_v32  ;;  %v1699_v60 = vld [vmem:[#allocation3 + $0x30] sm:$0xff]  ;;  %v1364_v26 = vmax.f32 %v1362_v63, %v1363_v24  ;;  %v5593_v32 = vadd.f32 1.0, %v1251_v44  ;;  %v5604_v5 = vadd.f32 1.0, %v1254_v14 }
 0x216   :  { %3664 = vmatprep.subr.mxu0 %v6587_v9  ;;  %v1706_v14 = vld [vmem:[#allocation3 + $0x68] sm:$0xff] }
 0x217   :  { %v1380_v61 = vsel %vm40_vm0, %v5548_v10, -inf }
 0x218   :  { %v1134_v7 = vpop.permute.xlu1 %1133  ;;  %v987_v17 = vpop.permute.xlu0 %986  ;;  %3641 = vmatmul.mubr.msk.f32.vlgmr.msra.gmra.mxu0 %vm40_vm0, %v1645_v28  ;;  %v1258_v8 = vld [vmem:[#allocation2 + $0x138] sm:$0xff]  ;;  %v1259_v6 = vld [vmem:[#allocation2 + $0x140] sm:$0xff] }
 0x219   :  { %1208 = vst.msk [vmem:[#allocation3 + $0xf9] sm:$0xff] %vm1026_vm2, %v1134_v7  ;;  %1055 = vst.msk [vmem:[#allocation2 + $0x151] sm:$0xff] %vm1026_vm2, %v987_v17  ;;  %3665 = vmatpush3.xpose.msk.msra.mxu0 %vm40_vm0, %v1701_v1  ;;  %3643 = vmatprep.mubr.msk.f32.mxu0 %vm4031_vm3, %v6587_v9  ;;  %v5579_v28 = vadd.f32 1.0, %v1258_v8  ;;  %v6607_v7 = vld [vmem:[#allocation86_spill] sm:$0xff]  ;;  %v1391_v8 = vsel %vm43_vm1, %v5577_v56, -inf }
 0x21a   :  { %3666 = vmatprep.subr.mxu0 %v6587_v9  ;;  %v1651_v17 = vmul.f32 %v5241_v52, %v6607_v7  ;;  %v6608_v7 = vld [vmem:[#allocation85_spill] sm:$0xff] }
 0x21b   :  { %v1369_v63 = vsel %vm40_vm0, %v5579_v28, -inf }
 0x21c   :  { %v1256_v35 = vld [vmem:[#allocation2 + $0x128] sm:$0xff]  ;;  %v1132_v42 = vpop.permute.xlu1 %1131  ;;  %v1096_v38 = vpop.permute.xlu0 %1095  ;;  %3644 = vmatmul.mubr.msk.f32.gmra.mxu0 %vm40_vm0, %v1646_v25  ;;  %v1365_v25 = vsel %vm40_vm0, %v5570_v53, -inf  ;;  %v1257_v3 = vld [vmem:[#allocation2 + $0x130] sm:$0x3] }
 0x21d   :  { %1207 = vst.msk [vmem:[#allocation3 + $0xf1] sm:$0xff] %vm1026_vm2, %v1132_v42  ;;  %1189 = vst.msk [vmem:[#allocation3 + $0x19] sm:$0xff] %vm1026_vm2, %v1096_v38  ;;  %3667 = vmatpush3.xpose.msk.msra.mxu0 %vm40_vm0, %v1700_v20  ;;  %3646 = vmatprep.mubr.msk.f32.mxu0 %vm4031_vm3, %v6587_v9  ;;  %v5563_v59 = vadd.f32 1.0, %v1256_v35  ;;  %v1381_v42 = vmax.f32 %v1379_v30, %v1380_v61  ;;  %v5601_v38 = vadd.f32 1.0, %v1259_v6  ;;  %v5618_v44 = vadd.f32 1.0, %v1257_v3 }
 0x21e   :  { %3668 = vmatprep.subr.mxu0 %v6587_v9  ;;  %v1366_v16 = vmax.f32 %v1364_v26, %v1365_v25  ;;  %v5637_v3 = vadd.f32 1.0, %v1260_v41 }
 0x21f   :  { %v1382_v1 = vsel %vm40_vm0, %v5563_v59, -inf  ;;  %v1384_v25 = vsel %vm40_vm0, %v5601_v38, -inf }
 0x220   :  { %v1261_v31 = vld [vmem:[#allocation2 + $0x150] sm:$0xff]  ;;  %v1142_v19 = vpop.permute.xlu1 %1141  ;;  %v991_v62 = vpop.permute.xlu0 %990  ;;  %3647 = vmatmul.mubr.msk.f32.gmra.mxu0 %vm40_vm0, %v1647_v4  ;;  %v1262_v21 = vld [vmem:[#allocation2 + $0x158] sm:$0xff]  ;;  %v1383_v49 = vmax.f32 %v1381_v42, %v1382_v1 }
 0x221   :  { %1212 = vst.msk [vmem:[#allocation3 + $0x129] sm:$0xff] %vm1026_vm2, %v1142_v19  ;;  %1057 = vst.msk [vmem:[#allocation2 + $0x169] sm:$0xff] %vm1026_vm2, %v991_v62  ;;  %3669 = vmatpush3.xpose.msk.msra.mxu0 %vm40_vm0, %v1699_v60  ;;  %3670 = vmatprep.mubr.msk.f32.mxu0 %vm4031_vm3, %v6587_v9  ;;  %v5599_v35 = vadd.f32 1.0, %v1261_v31  ;;  %v1707_v4 = vld [vmem:[#allocation3 + $0x70] sm:$0x3]  ;;  %v5620_v31 = vadd.f32 1.0, %v1262_v21  ;;  %v1368_v19 = vmax.f32 %v1366_v16, %v1367_v29 }
 0x222   :  { %3694 = vmatprep.subr.mxu0 %v6587_v9  ;;  %v1393_v62 = vsel %vm43_vm1, %v5593_v32, -inf  ;;  %v1392_v60 = vmax.f32 %v1390_v50, %v1391_v8  ;;  %v1395_v29 = vsel %vm43_vm1, %v5604_v5, -inf  ;;  %v1385_v42 = vmax.f32 %v1383_v49, %v1384_v25  ;;  %v1263_v8 = vld [vmem:[#allocation2 + $0x160] sm:$0x3] }
 0x223   :  { %v1371_v43 = vsel %vm40_vm0, %v5599_v35, -inf  ;;  %v1370_v1 = vmax.f32 %v1368_v19, %v1369_v63  ;;  %v1397_v16 = vsel %vm43_vm1, %v5618_v44, -inf  ;;  %v1657_v49 = vmul.f32 %v5241_v52, %v5032_v45 }
 0x224   :  { %v1140_v20 = vpop.permute.xlu1 %1139  ;;  %v993_v37 = vpop.permute.xlu0 %992  ;;  %3671 = vmatmul.mubr.msk.f32.vlgmr.msra.gmra.mxu0 %vm40_vm0, %v1651_v17  ;;  %v1697_v24 = vld [vmem:[#allocation3 + $0x20] sm:$0xff]  ;;  %v1696_v30 = vld [vmem:[#allocation3 + $0x18] sm:$0xff]  ;;  %v1648_v17 = vmul.f32 %v5241_v52, %v6608_v7  ;;  %v5676_v7 = vadd.f32 1.0, %v1263_v8 }
 0x225   :  { %1211 = vst.msk [vmem:[#allocation3 + $0x121] sm:$0xff] %vm1026_vm2, %v1140_v20  ;;  %1058 = vst.msk [vmem:[#allocation2 + $0x171] sm:$0xff] %vm1026_vm2, %v993_v37  ;;  %3652 = vmatpush3.xpose.msk.msra.mxu1 %vm40_vm0, %v1697_v24  ;;  %3695 = vmatpush3.xpose.msk.msra.mxu0 %vm40_vm0, %v1707_v4  ;;  %v1394_v20 = vmax.f32 %v1392_v60, %v1393_v62  ;;  %v1386_v37 = vsel %vm40_vm0, %v5620_v31, -inf  ;;  %v1653_v24 = vmul.f32 %v5365_v40, %v5219_v47  ;;  %v6609_v60 = vld [vmem:[#allocation27_spill] sm:$0xff] }
 0x226   :  { %3673 = vmatprep.mubr.msk.f32.mxu0 %vm4031_vm3, %v6587_v9  ;;  %3653 = vmatprep.subr.mxu1 %v6587_v9  ;;  %v1372_v4 = vmax.f32 %v1370_v1, %v1371_v43  ;;  %v1705_v43 = vld [vmem:[#allocation3 + $0x60] sm:$0xff]  ;;  %v1387_v45 = vmax.f32 %v1385_v42, %v1386_v37 }
 0x227   :  { %3696 = vmatprep.subr.mxu0 %v6587_v9  ;;  %v1396_v50 = vmax.f32 %v1394_v20, %v1395_v29 }
 0x228   :  { %v1264_v26 = vld [vmem:[#allocation2 + $0x168] sm:$0xff]  ;;  %v1150_v61 = vpop.permute.xlu1 %1149  ;;  %v1106_v6 = vpop.permute.xlu0 %1105  ;;  %3674 = vmatmul.mubr.msk.f32.gmra.mxu0 %vm40_vm0, %v1652_v15  ;;  %v1649_v15 = vmul.f32 %v5522_v23, %v5453_v39  ;;  %v1658_v39 = vmul.f32 %v5522_v23, %v5480_v51 }
 0x229   :  { %v5639_v21 = vadd.f32 1.0, %v1264_v26  ;;  %1216 = vst.msk [vmem:[#allocation3 + $0x159] sm:$0xff] %vm1026_vm2, %v1150_v61  ;;  %1194 = vst.msk [vmem:[#allocation3 + $0x51] sm:$0xff] %vm1026_vm2, %v1106_v6  ;;  %3654 = vmatpush3.xpose.msk.msra.mxu1 %vm40_vm0, %v1696_v30  ;;  %3697 = vmatpush3.xpose.msk.msra.mxu0 %vm40_vm0, %v1706_v14  ;;  %v1650_v26 = vmul.f32 %v5365_v40, %v6609_v60  ;;  %v1398_v30 = vmax.f32 %v1396_v50, %v1397_v16 }
 0x22a   :  { %3676 = vmatprep.mubr.msk.f32.mxu0 %vm4031_vm3, %v6587_v9  ;;  %3698 = vmatprep.subr.mxu0 %v6587_v9  ;;  %v1399_v14 = vsel %vm43_vm1, %v5637_v3, -inf }
 0x22b   :  { %v1373_v63 = vsel %vm40_vm0, %v5639_v21, -inf  ;;  %3679 = vmatprep.subr.mxu1 %v6587_v9 }
 0x22c   :  { %v1265_v47 = vld [vmem:[#allocation2 + $0x170] sm:$0xff]  ;;  %v1266_v41 = vld [vmem:[#allocation2 + $0x178] sm:$0x3]  ;;  %v1148_v19 = vpop.permute.xlu1 %1147  ;;  %v1104_v62 = vpop.permute.xlu0 %1103  ;;  %3656 = vmatmul.mubr.msk.f32.vlgmr.msra.gmra.mxu1 %vm40_vm0, %v1648_v17  ;;  %3677 = vmatmul.mubr.msk.f32.gmra.mxu0 %vm40_vm0, %v1653_v24  ;;  %v1374_v61 = vmax.f32 %v1372_v4, %v1373_v63 }
 0x22d   :  { %v5667_v6 = vadd.f32 1.0, %v1265_v47  ;;  %1215 = vst.msk [vmem:[#allocation3 + $0x151] sm:$0xff] %vm1026_vm2, %v1148_v19  ;;  %1193 = vst.msk [vmem:[#allocation3 + $0x49] sm:$0xff] %vm1026_vm2, %v1104_v62  ;;  %3699 = vmatpush3.xpose.msk.msra.mxu0 %vm40_vm0, %v1705_v43  ;;  %3658 = vmatprep.mubr.msk.f32.mxu1 %vm4031_vm3, %v6587_v9  ;;  %v5684_v25 = vadd.f32 1.0, %v1266_v41  ;;  %v1401_v47 = vsel %vm43_vm1, %v5676_v7, -inf  ;;  %v1712_v19 = vld [vmem:[#allocation3 + $0x98] sm:$0xff] }
 0x22e   :  { %3700 = vmatprep.mubr.msk.f32.mxu0 %vm4031_vm3, %v6587_v9  ;;  %3724 = vmatprep.subr.mxu0 %v6587_v9  ;;  %v1429_v51 = vsub.f32 %v5536_v12, %v1374_v61  ;;  %v1432_v17 = vsub.f32 %v5524_v46, %v1374_v61  ;;  %v1435_v1 = vsub.f32 %v5529_v33, %v1374_v61  ;;  %v1713_v12 = vld [vmem:[#allocation3 + $0xa0] sm:$0x3] }
 0x22f   :  { %v1388_v29 = vsel %vm40_vm0, %v5667_v6, -inf  ;;  %v1438_v42 = vsub.f32 %v5570_v53, %v1374_v61  ;;  %v1441_v20 = vsub.f32 %v5572_v0, %v1374_v61  ;;  %v1444_v46 = vsub.f32 %v5579_v28, %v1374_v61 }
 0x230   :  { %v1114_v37 = vpop.permute.xlu0 %1113  ;;  %3659 = vmatmul.mubr.msk.f32.gmra.mxu1 %vm40_vm0, %v1649_v15  ;;  %3701 = vmatmul.mubr.msk.f32.vlgmr.msra.gmra.mxu0 %vm40_vm0, %v1657_v49  ;;  %v1704_v24 = vld [vmem:[#allocation3 + $0x58] sm:$0x3]  ;;  %v1447_v33 = vsub.f32 %v5599_v35, %v1374_v61  ;;  %v1450_v4 = vsub.f32 %v5639_v21, %v1374_v61  ;;  %v1501_v16 = vmul.f32 1.442695, %v1429_v51  ;;  %v1507_v53 = vmul.f32 1.442695, %v1432_v17 }
 0x231   :  { %1198 = vst.msk [vmem:[#allocation3 + $0x81] sm:$0xff] %vm1026_vm2, %v1114_v37  ;;  %3680 = vmatpush3.xpose.msk.msra.mxu1 %vm40_vm0, %v1704_v24  ;;  %3725 = vmatpush3.xpose.msk.msra.mxu0 %vm40_vm0, %v1713_v12  ;;  %v1513_v0 = vmul.f32 1.442695, %v1435_v1  ;;  %v1519_v8 = vmul.f32 1.442695, %v1438_v42  ;;  %v5698_v63 = vmax.f32 %v1387_v45, %v1388_v29  ;;  %v1659_v28 = vmul.f32 %v5365_v40, %v5252_v11 }
 0x232   :  { %3661 = vmatprep.mubr.msk.f32.mxu1 %vm4031_vm3, %v6587_v9  ;;  %3703 = vmatprep.mubr.msk.f32.mxu0 %vm4031_vm3, %v6587_v9  ;;  %3935 = vpow2.f32 %v1501_v16  ;;  %v1525_v35 = vmul.f32 1.442695, %v1441_v20  ;;  %v1400_v21 = vmax.f32 %v1398_v30, %v1399_v14  ;;  %v1531_v15 = vmul.f32 1.442695, %v1444_v46  ;;  %v1711_v14 = vld [vmem:[#allocation3 + $0x90] sm:$0xff] }
 0x233   :  { %3681 = vmatprep.subr.mxu1 %v6587_v9  ;;  %3726 = vmatprep.subr.mxu0 %v6587_v9  ;;  %3937 = vpow2.f32 %v1507_v53  ;;  %v1430_v49 = vsub.f32 %v5541_v2, %v5698_v63  ;;  %v1433_v50 = vsub.f32 %v5527_v36, %v5698_v63  ;;  %v1537_v62 = vmul.f32 1.442695, %v1447_v33 }
 0x234   :  { %v1112_v41 = vpop.permute.xlu0 %1111  ;;  %3662 = vmatmul.mubr.msk.f32.gmra.mxu1 %vm40_vm0, %v1650_v26  ;;  %3704 = vmatmul.mubr.msk.f32.gmra.mxu0 %vm40_vm0, %v1658_v39  ;;  %v1703_v11 = vld [vmem:[#allocation3 + $0x50] sm:$0xff]  ;;  %3939 = vpow2.f32 %v1513_v0  ;;  %v1436_v43 = vsub.f32 %v5543_v57, %v5698_v63  ;;  %v1403_v2 = vsel %vm43_vm1, %v5684_v25, -inf  ;;  %v1543_v36 = vmul.f32 1.442695, %v1450_v4  ;;  %v1702_v30 = vld [vmem:[#allocation3 + $0x48] sm:$0xff] }
 0x235   :  { %1197 = vst.msk [vmem:[#allocation3 + $0x79] sm:$0xff] %vm1026_vm2, %v1112_v41  ;;  %3682 = vmatpush3.xpose.msk.msra.mxu1 %vm40_vm0, %v1703_v11  ;;  %3727 = vmatpush3.xpose.msk.msra.mxu0 %vm40_vm0, %v1712_v19  ;;  %3941 = vpow2.f32 %v1519_v8  ;;  %v1439_v60 = vsub.f32 %v5548_v10, %v5698_v63  ;;  %v1442_v57 = vsub.f32 %v5563_v59, %v5698_v63  ;;  %v1503_v26 = vmul.f32 1.442695, %v1430_v49  ;;  %v1719_v4 = vld [vmem:[#allocation3 + $0xd0] sm:$0x3] }
 0x236   :  { %3706 = vmatprep.mubr.msk.f32.mxu0 %vm4031_vm3, %v6587_v9  ;;  %3683 = vmatprep.subr.mxu1 %v6587_v9  ;;  %3943 = vpow2.f32 %v1525_v35  ;;  %v1402_v39 = vmax.f32 %v1400_v21, %v1401_v47  ;;  %v1445_v10 = vsub.f32 %v5601_v38, %v5698_v63  ;;  %v1509_v61 = vmul.f32 1.442695, %v1433_v50  ;;  %v6610_v38 = vld [vmem:[#allocation30_spill] sm:$0xff] }
 0x237   :  { %3728 = vmatprep.subr.mxu0 %v6587_v9  ;;  %3685 = vmatprep.mubr.msk.f32.mxu1 %vm4031_vm3, %v6587_v9  ;;  %3945 = vpow2.f32 %v1531_v15  ;;  %v1448_v59 = vsub.f32 %v5620_v31, %v5698_v63  ;;  %v1515_v51 = vmul.f32 1.442695, %v1436_v43  ;;  %v1654_v1 = vmul.f32 %v5241_v52, %v6610_v38  ;;  %v6611_v31 = vld [vmem:[#allocation29_spill] sm:$0xff] }
 0x238   :  { %v1122_v45 = vpop.permute.xlu0 %1121  ;;  %3707 = vmatmul.mubr.msk.f32.gmra.mxu0 %vm40_vm0, %v1659_v28  ;;  %3947 = vpow2.f32 %v1537_v62  ;;  %v5738_v17 = vmax.f32 %v1402_v39, %v1403_v2  ;;  %v1451_v29 = vsub.f32 %v5667_v6, %v5698_v63  ;;  %v1521_v42 = vmul.f32 1.442695, %v1439_v60  ;;  %v1710_v33 = vld [vmem:[#allocation3 + $0x88] sm:$0x3] }
 0x239   :  { %1202 = vst.msk [vmem:[#allocation3 + $0xb1] sm:$0xff] %vm1026_vm2, %v1122_v45  ;;  %3684 = vmatpush3.xpose.msk.msra.mxu1 %vm40_vm0, %v1702_v30  ;;  %3729 = vmatpush3.xpose.msk.msra.mxu0 %vm40_vm0, %v1711_v14  ;;  %3949 = vpow2.f32 %v1543_v36  ;;  %v1663_v20 = vmul.f32 %v5241_v52, %v6611_v31  ;;  %v1527_v37 = vmul.f32 1.442695, %v1442_v57  ;;  %v1533_v12 = vmul.f32 1.442695, %v1445_v10  ;;  %v6612_v14 = vld [vmem:[#allocation28_spill] sm:$0xff] }
 0x23a   :  { %3730 = vmatprep.mubr.msk.f32.mxu0 %vm4031_vm3, %v6587_v9  ;;  %3709 = vmatprep.subr.mxu1 %v6587_v9  ;;  %3951 = vpow2.f32 %v1503_v26  ;;  %v1431_v24 = vsub.f32 %v5586_v54, %v5738_v17  ;;  %v1434_v6 = vsub.f32 %v5577_v56, %v5738_v17  ;;  %v1539_v16 = vmul.f32 1.442695, %v1448_v59  ;;  %v1717_v26 = vld [vmem:[#allocation3 + $0xc0] sm:$0xff] }
 0x23b   :  { %3754 = vmatprep.subr.mxu0 %v6587_v9  ;;  %3953 = vpow2.f32 %v1509_v61  ;;  %v1437_v53 = vsub.f32 %v5593_v32, %v5738_v17  ;;  %v1545_v56 = vmul.f32 1.442695, %v1451_v29  ;;  %v1440_v54 = vsub.f32 %v5604_v5, %v5738_v17 }
 0x23c   :  { %v1120_v46 = vpop.permute.xlu0 %1119  ;;  %3686 = vmatmul.mubr.msk.f32.vlgmr.msra.gmra.mxu1 %vm40_vm0, %v1654_v1  ;;  %3731 = vmatmul.mubr.msk.f32.vlgmr.msra.gmra.mxu0 %vm40_vm0, %v1663_v20  ;;  %3955 = vpow2.f32 %v1515_v51  ;;  %v1655_v32 = vmul.f32 %v5522_v23, %v5474_v55  ;;  %v1664_v0 = vmul.f32 %v5522_v23, %v5492_v58  ;;  %v1505_v8 = vmul.f32 1.442695, %v1431_v24  ;;  %v1709_v55 = vld [vmem:[#allocation3 + $0x80] sm:$0xff]  ;;  %v1718_v58 = vld [vmem:[#allocation3 + $0xc8] sm:$0xff] }
 0x23d   :  { %1201 = vst.msk [vmem:[#allocation3 + $0xa9] sm:$0xff] %vm1026_vm2, %v1120_v46  ;;  %3710 = vmatpush3.xpose.msk.msra.mxu1 %vm40_vm0, %v1710_v33  ;;  %3755 = vmatpush3.xpose.msk.msra.mxu0 %vm40_vm0, %v1719_v4  ;;  %3957 = vpow2.f32 %v1521_v42  ;;  %v1443_v5 = vsub.f32 %v5618_v44, %v5738_v17  ;;  %v1511_v28 = vmul.f32 1.442695, %v1434_v6  ;;  %v1517_v49 = vmul.f32 1.442695, %v1437_v53 }
 0x23e   :  { %3688 = vmatprep.mubr.msk.f32.mxu1 %vm4031_vm3, %v6587_v9  ;;  %3733 = vmatprep.mubr.msk.f32.mxu0 %vm4031_vm3, %v6587_v9  ;;  %3959 = vpow2.f32 %v1527_v37  ;;  %v1446_v47 = vsub.f32 %v5637_v3, %v5738_v17  ;;  %v1523_v41 = vmul.f32 1.442695, %v1440_v54  ;;  %v1656_v19 = vmul.f32 %v5365_v40, %v5226_v18 }
 0x23f   :  { %v5774_v63 = vpop.eup %3935  ;;  %3711 = vmatprep.subr.mxu1 %v6587_v9  ;;  %3756 = vmatprep.subr.mxu0 %v6587_v9  ;;  %3961 = vpow2.f32 %v1533_v12  ;;  %v1665_v62 = vmul.f32 %v5365_v40, %v5282_v13  ;;  %v1449_v36 = vsub.f32 %v5676_v7, %v5738_v17  ;;  %v1529_v60 = vmul.f32 1.442695, %v1443_v5  ;;  %v1708_v13 = vld [vmem:[#allocation3 + $0x78] sm:$0xff] }
 0x240   :  { %v5780_v35 = vpop.eup %3937  ;;  %v1130_v21 = vpop.permute.xlu0 %1129  ;;  %3689 = vmatmul.mubr.msk.f32.gmra.mxu1 %vm40_vm0, %v1655_v32  ;;  %3734 = vmatmul.mubr.msk.f32.gmra.mxu0 %vm40_vm0, %v1664_v0  ;;  %v1594_v15 = vsel %vm40_vm0, %v5774_v63, 0.0  ;;  %3963 = vpow2.f32 %v1539_v16  ;;  %v1452_v61 = vsub.f32 %v5684_v25, %v5738_v17  ;;  %v1535_v45 = vmul.f32 1.442695, %v1446_v47 }
 0x241   :  { %v5786_v50 = vpop.eup %3939  ;;  %1206 = vst.msk [vmem:[#allocation3 + $0xe1] sm:$0xff] %vm1026_vm2, %v1130_v21  ;;  %3712 = vmatpush3.xpose.msk.msra.mxu1 %vm40_vm0, %v1709_v55  ;;  %3757 = vmatpush3.xpose.msk.msra.mxu0 %vm40_vm0, %v1718_v58  ;;  %v1595_v44 = vsel %vm40_vm0, %v5780_v35, 0.0  ;;  %3965 = vpow2.f32 %v1545_v56  ;;  %v1660_v59 = vmul.f32 %v5241_v52, %v6612_v14  ;;  %v1541_v17 = vmul.f32 1.442695, %v1449_v36  ;;  %v1716_v52 = vld [vmem:[#allocation3 + $0xb8] sm:$0x3] }
 0x242   :  { %v5795_v11 = vpop.eup %3941  ;;  %3691 = vmatprep.mubr.msk.f32.mxu1 %vm4031_vm3, %v6587_v9  ;;  %3736 = vmatprep.mubr.msk.f32.mxu0 %vm4031_vm3, %v6587_v9  ;;  %v1596_v43 = vadd.f32 %v1595_v44, %v1594_v15  ;;  %3967 = vpow2.f32 %v1505_v8  ;;  %v1597_v3 = vsel %vm40_vm0, %v5786_v50, 0.0  ;;  %v1547_v12 = vmul.f32 1.442695, %v1452_v61 }
 0x243   :  { %v5805_v2 = vpop.eup %3943  ;;  %3713 = vmatprep.subr.mxu1 %v6587_v9  ;;  %3758 = vmatprep.subr.mxu0 %v6587_v9  ;;  %3969 = vpow2.f32 %v1511_v28  ;;  %v1599_v7 = vsel %vm40_vm0, %v5795_v11, 0.0  ;;  %v1661_v46 = vmul.f32 %v5522_v23, %v5486_v22  ;;  %v1662_v58 = vmul.f32 %v5365_v40, %v5260_v48 }
 0x244   :  { %v5813_v18 = vpop.eup %3945  ;;  %v1128_v57 = vpop.permute.xlu0 %1127  ;;  %3692 = vmatmul.mubr.msk.f32.gmra.mxu1 %vm40_vm0, %v1656_v19  ;;  %3737 = vmatmul.mubr.msk.f32.gmra.mxu0 %vm40_vm0, %v1665_v62  ;;  %v1598_v39 = vadd.f32 %v1597_v3, %v1596_v43  ;;  %3971 = vpow2.f32 %v1517_v49  ;;  %v1601_v25 = vsel %vm40_vm0, %v5805_v2, 0.0  ;;  %v1715_v0 = vld [vmem:[#allocation3 + $0xb0] sm:$0xff]  ;;  %v1714_v62 = vld [vmem:[#allocation3 + $0xa8] sm:$0xff] }
 0x245   :  { %v5817_v10 = vpop.eup %3947  ;;  %1205 = vst.msk [vmem:[#allocation3 + $0xd9] sm:$0xff] %vm1026_vm2, %v1128_v57  ;;  %3714 = vmatpush3.xpose.msk.msra.mxu1 %vm40_vm0, %v1708_v13  ;;  %3759 = vmatpush3.xpose.msk.msra.mxu0 %vm40_vm0, %v1717_v26  ;;  %3973 = vpow2.f32 %v1523_v41  ;;  %v1603_v37 = vsel %vm40_vm0, %v5813_v18, 0.0 }
 0x246   :  { %v5826_v30 = vpop.eup %3949  ;;  %3715 = vmatprep.mubr.msk.f32.mxu1 %vm4031_vm3, %v6587_v9  ;;  %3739 = vmatprep.subr.mxu1 %v6587_v9  ;;  %v1600_v51 = vadd.f32 %v1599_v7, %v1598_v39  ;;  %3975 = vpow2.f32 %v1529_v60  ;;  %v1605_v53 = vsel %vm40_vm0, %v5817_v10, 0.0 }
 0x247   :  { %v5833_v38 = vpop.eup %3951  ;;  %3760 = vmatprep.mubr.msk.f32.mxu0 %vm4031_vm3, %v6587_v9  ;;  %3784 = vmatprep.subr.mxu0 %v6587_v9  ;;  %3977 = vpow2.f32 %v1535_v45  ;;  %v1607_v28 = vsel %vm40_vm0, %v5826_v30, 0.0  ;;  %v6613_v45 = vld [vmem:[#allocation41_spill] sm:$0xff] }
 0x248   :  { %v5840_v1 = vpop.eup %3953  ;;  %v1138_v29 = vpop.permute.xlu0 %1137  ;;  %3716 = vmatmul.mubr.msk.f32.vlgmr.msra.gmra.mxu1 %vm40_vm0, %v1660_v59  ;;  %v1602_v42 = vadd.f32 %v1601_v25, %v1600_v51  ;;  %v1609_v31 = vsel %vm40_vm0, %v5833_v38, 0.0  ;;  %3979 = vpow2.f32 %v1541_v17  ;;  %v1722_v14 = vld [vmem:[#allocation3 + $0xe8] sm:$0x3] }
 0x249   :  { %v5845_v20 = vpop.eup %3955  ;;  %1210 = vst.msk [vmem:[#allocation3 + $0x111] sm:$0xff] %vm1026_vm2, %v1138_v29  ;;  %3740 = vmatpush3.xpose.msk.msra.mxu1 %vm40_vm0, %v1716_v52  ;;  %3718 = vmatprep.mubr.msk.f32.mxu1 %vm4031_vm3, %v6587_v9  ;;  %v1610_v24 = vsel %vm40_vm0, %v5840_v1, 0.0  ;;  %3981 = vpow2.f32 %v1547_v12  ;;  %v1667_v52 = vmul.f32 %v5522_v23, %v5498_v34 }
 0x24a   :  { %v5855_v6 = vpop.eup %3957  ;;  %3741 = vmatprep.subr.mxu1 %v6587_v9  ;;  %v1604_v33 = vadd.f32 %v1603_v37, %v1602_v42  ;;  %v1611_v4 = vadd.f32 %v1610_v24, %v1609_v31  ;;  %v1612_v56 = vsel %vm40_vm0, %v5845_v20, 0.0 }
 0x24b   :  { %v5860_v16 = vpop.eup %3959  ;;  %v1614_v21 = vsel %vm40_vm0, %v5855_v6, 0.0 }
 0x24c   :  { %v5866_v54 = vpop.eup %3961  ;;  %v1136_v32 = vpop.permute.xlu0 %1135  ;;  %3719 = vmatmul.mubr.msk.f32.gmra.mxu1 %vm40_vm0, %v1661_v46  ;;  %v1606_v22 = vadd.f32 %v1605_v53, %v1604_v33  ;;  %v1613_v8 = vadd.f32 %v1612_v56, %v1611_v4  ;;  %v1616_v47 = vsel %vm40_vm0, %v5860_v16, 0.0  ;;  %v1721_v46 = vld [vmem:[#allocation3 + $0xe0] sm:$0xff] }
 0x24d   :  { %v5869_v5 = vpop.eup %3963  ;;  %1209 = vst.msk [vmem:[#allocation3 + $0x109] sm:$0xff] %vm1026_vm2, %v1136_v32  ;;  %3742 = vmatpush3.xpose.msk.msra.mxu1 %vm40_vm0, %v1715_v0  ;;  %3721 = vmatprep.mubr.msk.f32.mxu1 %vm4031_vm3, %v6587_v9  ;;  %v1618_v3 = vsel %vm40_vm0, %v5866_v54, 0.0  ;;  %v1720_v32 = vld [vmem:[#allocation3 + $0xd8] sm:$0xff] }
 0x24e   :  { %v5879_v55 = vpop.eup %3965  ;;  %3743 = vmatprep.subr.mxu1 %v6587_v9  ;;  %v1608_v15 = vadd.f32 %v1607_v28, %v1606_v22  ;;  %v1615_v49 = vadd.f32 %v1614_v21, %v1613_v8  ;;  %v1620_v26 = vsel %vm40_vm0, %v5869_v5, 0.0 }
 0x24f   :  { %v5884_v44 = vpop.eup %3967  ;;  %v1622_v25 = vsel %vm40_vm0, %v5879_v55, 0.0 }
 0x250   :  { %v5888_v41 = vpop.eup %3969  ;;  %v1146_v19 = vpop.permute.xlu0 %1145  ;;  %3722 = vmatmul.mubr.msk.f32.gmra.mxu1 %vm40_vm0, %v1662_v58  ;;  %3983 = vrcp.f32 %v1608_v15  ;;  %v1617_v43 = vadd.f32 %v1616_v47, %v1615_v49  ;;  %v1624_v48 = vsel %vm43_vm1, %v5884_v44, 0.0  ;;  %v1725_v58 = vld [vmem:[#allocation3 + $0x100] sm:$0x3]  ;;  %v1728_v15 = vld [vmem:[#allocation3 + $0x118] sm:$0x3] }
 0x251   :  { %v5893_v40 = vpop.eup %3971  ;;  %1214 = vst.msk [vmem:[#allocation3 + $0x141] sm:$0xff] %vm1026_vm2, %v1146_v19  ;;  %3744 = vmatpush3.xpose.msk.msra.mxu1 %vm40_vm0, %v1714_v62  ;;  %3745 = vmatprep.mubr.msk.f32.mxu1 %vm4031_vm3, %v6587_v9  ;;  %v1625_v36 = vsel %vm43_vm1, %v5888_v41, 0.0  ;;  %v1723_v62 = vld [vmem:[#allocation3 + $0xf0] sm:$0xff] }
 0x252   :  { %v5903_v60 = vpop.eup %3973  ;;  %3769 = vmatprep.subr.mxu1 %v6587_v9  ;;  %v1619_v57 = vadd.f32 %v1618_v3, %v1617_v43  ;;  %v1626_v13 = vadd.f32 %v1625_v36, %v1624_v48  ;;  %v1627_v39 = vsel %vm43_vm1, %v5893_v40, 0.0 }
 0x253   :  { %v5910_v7 = vpop.eup %3975  ;;  %v1629_v17 = vsel %vm43_vm1, %v5903_v60, 0.0 }
 0x254   :  { %v1144_v61 = vpop.permute.xlu0 %1143  ;;  %3746 = vmatmul.mubr.msk.f32.vlgmr.msra.gmra.mxu1 %vm40_vm0, %v6613_v45  ;;  %v1621_v59 = vadd.f32 %v1620_v26, %v1619_v57  ;;  %v1628_v51 = vadd.f32 %v1627_v39, %v1626_v13  ;;  %v5922_v29 = vpop.eup %3977  ;;  %v1631_v37 = vsel %vm43_vm1, %v5910_v7, 0.0  ;;  %v1726_v43 = vld [vmem:[#allocation3 + $0x108] sm:$0xff]  ;;  %v1729_v26 = vld [vmem:[#allocation3 + $0x120] sm:$0xff] }
 0x255   :  { %1213 = vst.msk [vmem:[#allocation3 + $0x139] sm:$0xff] %vm1026_vm2, %v1144_v61  ;;  %3770 = vmatpush3.xpose.msk.msra.mxu1 %vm40_vm0, %v1722_v14  ;;  %3748 = vmatprep.mubr.msk.f32.mxu1 %vm4031_vm3, %v6587_v9  ;;  %v5929_v24 = vpop.eup %3979  ;;  %v1633_v34 = vsel %vm43_vm1, %v5922_v29, 0.0  ;;  %v1730_v57 = vld [vmem:[#allocation3 + $0x128] sm:$0xff]  ;;  %v1737_v61 = vld [vmem:[#allocation3 + $0x160] sm:$0x3]  ;;  %v1736_v14 = vld [vmem:[#allocation3 + $0x158] sm:$0xff] }
 0x256   :  { %3771 = vmatprep.subr.mxu1 %v6587_v9  ;;  %v1623_v42 = vadd.f32 %v1622_v25, %v1621_v59  ;;  %v1630_v31 = vadd.f32 %v1629_v17, %v1628_v51  ;;  %v5938_v23 = vpop.eup %3981  ;;  %v1635_v53 = vsel %vm43_vm1, %v5929_v24, 0.0  ;;  %v1735_v51 = vld [vmem:[#allocation3 + $0x150] sm:$0xff] }
 0x257   :  { %v1637_v8 = vsel %vm43_vm1, %v5938_v23, 0.0 }
 0x258   :  { %v1154_v12 = vpop.permute.xlu0 %1153  ;;  %3749 = vmatmul.mubr.msk.f32.gmra.mxu1 %vm40_vm0, %v1667_v52  ;;  %3985 = vrcp.f32 %v1623_v42  ;;  %v1632_v33 = vadd.f32 %v1631_v37, %v1630_v31 }
 0x259   :  { %1218 = vst.msk [vmem:[#allocation3 + $0x171] sm:$0xff] %vm1026_vm2, %v1154_v12  ;;  %3772 = vmatpush3.xpose.msk.msra.mxu1 %vm40_vm0, %v1721_v46  ;;  %3751 = vmatprep.mubr.msk.f32.mxu1 %vm4031_vm3, %v6587_v9 }
 0x25a   :  { %3773 = vmatprep.subr.mxu1 %v6587_v9  ;;  %v1634_v4 = vadd.f32 %v1633_v34, %v1632_v33 }
 0x25c   :  { %v1152_v56 = vpop.permute.xlu0 %1151  ;;  %3752 = vmatmul.mubr.msk.f32.gmra.mxu1 %vm40_vm0, %v5374_v27  ;;  %v1636_v0 = vadd.f32 %v1635_v53, %v1634_v4  ;;  %v1733_v13 = vld [vmem:[#allocation3 + $0x140] sm:$0xff]  ;;  %v1732_v39 = vld [vmem:[#allocation3 + $0x138] sm:$0xff] }
 0x25d   :  { %v5945_v22 = vpop.eup %3983  ;;  %1217 = vst.msk [vmem:[#allocation3 + $0x169] sm:$0xff] %vm1026_vm2, %v1152_v56  ;;  %3774 = vmatpush3.xpose.msk.msra.mxu1 %vm40_vm0, %v1720_v32  ;;  %3775 = vmatprep.mubr.msk.f32.mxu1 %vm4031_vm3, %v6587_v9 }
 0x25e   :  { %v1669_v28 = vmul.f32 %v5945_v22, %v5774_v63  ;;  %v1672_v27 = vmul.f32 %v5945_v22, %v5780_v35  ;;  %3799 = vmatprep.subr.mxu1 %v6587_v9  ;;  %v1638_v21 = vadd.f32 %v1637_v8, %v1636_v0  ;;  %v1724_v63 = vld [vmem:[#allocation3 + $0xf8] sm:$0xff]  ;;  %v1727_v35 = vld [vmem:[#allocation3 + $0x110] sm:$0xff]  ;;  %v1675_v3 = vmul.f32 %v5945_v22, %v5786_v50 }
 0x25f   :  { %v1678_v36 = vmul.f32 %v5945_v22, %v5795_v11  ;;  %v1690_v17 = vmul.f32 %v5945_v22, %v5826_v30 }
 0x260   :  { %3761 = vmatmul.mubr.msk.f32.vlgmr.msra.gmra.mxu0 %vm40_vm0, %v1669_v28  ;;  %3776 = vmatmul.mubr.msk.f32.vlgmr.msra.gmra.mxu1 %vm40_vm0, %v1672_v27  ;;  %3987 = vrcp.f32 %v1638_v21  ;;  %v1740_v45 = vld [vmem:[#allocation3 + $0x178] sm:$0x3] }
 0x261   :  { %3785 = vmatpush3.xpose.msk.msra.mxu0 %vm40_vm0, %v1725_v58  ;;  %3800 = vmatpush3.xpose.msk.msra.mxu1 %vm40_vm0, %v1728_v15 }
 0x262   :  { %3763 = vmatprep.mubr.msk.f32.mxu0 %vm4031_vm3, %v6587_v9  ;;  %3786 = vmatprep.subr.mxu0 %v6587_v9 }
 0x263   :  { %3778 = vmatprep.mubr.msk.f32.mxu1 %vm4031_vm3, %v6587_v9  ;;  %3801 = vmatprep.subr.mxu1 %v6587_v9 }
 0x264   :  { %v1739_v59 = vld [vmem:[#allocation3 + $0x170] sm:$0xff]  ;;  %v1738_v25 = vld [vmem:[#allocation3 + $0x168] sm:$0xff] }
 0x265   :  { %v5968_v49 = vpop.eup %3985  ;;  %3787 = vmatpush3.xpose.msk.msra.mxu0 %vm40_vm0, %v1724_v63  ;;  %3802 = vmatpush3.xpose.msk.msra.mxu1 %vm40_vm0, %v1727_v35 }
 0x266   :  { %v1670_v47 = vmul.f32 %v5968_v49, %v5833_v38  ;;  %v1673_v19 = vmul.f32 %v5968_v49, %v5840_v1  ;;  %3788 = vmatprep.subr.mxu0 %v6587_v9  ;;  %3803 = vmatprep.subr.mxu1 %v6587_v9  ;;  %v1676_v50 = vmul.f32 %v5968_v49, %v5845_v20 }
 0x267   :  { %v1679_v11 = vmul.f32 %v5968_v49, %v5855_v6 }
 0x268   :  { %3764 = vmatmul.mubr.msk.f32.gmra.mxu0 %vm40_vm0, %v1670_v47  ;;  %3779 = vmatmul.mubr.msk.f32.gmra.mxu1 %vm40_vm0, %v1673_v19 }
 0x269   :  { %3766 = vmatprep.mubr.msk.f32.mxu0 %vm4031_vm3, %v6587_v9  ;;  %3781 = vmatprep.mubr.msk.f32.mxu1 %vm4031_vm3, %v6587_v9 }
 0x26a   :  { %3789 = vmatpush3.xpose.msk.msra.mxu0 %vm40_vm0, %v1723_v62  ;;  %3804 = vmatpush3.xpose.msk.msra.mxu1 %vm40_vm0, %v1726_v43 }
 0x26b   :  { %3814 = vmatprep.subr.mxu0 %v6587_v9  ;;  %3829 = vmatprep.subr.mxu1 %v6587_v9 }
 0x26d   :  { %v5988_v38 = vpop.eup %3987 }
 0x26e   :  { %v1671_v1 = vmul.f32 %v5988_v38, %v5884_v44  ;;  %v1674_v48 = vmul.f32 %v5988_v38, %v5888_v41  ;;  %v1731_v44 = vld [vmem:[#allocation3 + $0x130] sm:$0x3]  ;;  %v1734_v41 = vld [vmem:[#allocation3 + $0x148] sm:$0x3]  ;;  %v1677_v20 = vmul.f32 %v5988_v38, %v5893_v40  ;;  %v1680_v6 = vmul.f32 %v5988_v38, %v5903_v60 }
 0x26f   :  { %v1681_v40 = vmul.f32 %v5945_v22, %v5805_v2  ;;  %v1684_v60 = vmul.f32 %v5945_v22, %v5813_v18  ;;  %v1682_v2 = vmul.f32 %v5968_v49, %v5860_v16  ;;  %v1685_v18 = vmul.f32 %v5968_v49, %v5866_v54 }
 0x270   :  { %3767 = vmatmul.mubr.msk.f32.gmra.mxu0 %vm40_vm0, %v1671_v1  ;;  %3782 = vmatmul.mubr.msk.f32.gmra.mxu1 %vm40_vm0, %v1674_v48  ;;  %v1683_v16 = vmul.f32 %v5988_v38, %v5910_v7  ;;  %v1686_v54 = vmul.f32 %v5988_v38, %v5922_v29  ;;  %v1687_v7 = vmul.f32 %v5945_v22, %v5817_v10 }
 0x271   :  { %3790 = vmatprep.mubr.msk.f32.mxu0 %vm4031_vm3, %v6587_v9  ;;  %3805 = vmatprep.mubr.msk.f32.mxu1 %vm4031_vm3, %v6587_v9  ;;  %v1688_v29 = vmul.f32 %v5968_v49, %v5869_v5  ;;  %v1691_v10 = vmul.f32 %v5968_v49, %v5879_v55  ;;  %v1689_v30 = vmul.f32 %v5988_v38, %v5929_v24 }
 0x272   :  { %v1692_v52 = vmul.f32 %v5988_v38, %v5938_v23 }
 0x274   :  { %3791 = vmatmul.mubr.msk.f32.vlgmr.msra.gmra.mxu0 %vm40_vm0, %v1675_v3  ;;  %3806 = vmatmul.mubr.msk.f32.vlgmr.msra.gmra.mxu1 %vm40_vm0, %v1678_v36 }
 0x275   :  { %3815 = vmatpush3.xpose.msk.msra.mxu0 %vm40_vm0, %v1731_v44  ;;  %3830 = vmatpush3.xpose.msk.msra.mxu1 %vm40_vm0, %v1734_v41 }
 0x276   :  { %3793 = vmatprep.mubr.msk.f32.mxu0 %vm4031_vm3, %v6587_v9  ;;  %3816 = vmatprep.subr.mxu0 %v6587_v9 }
 0x277   :  { %3808 = vmatprep.mubr.msk.f32.mxu1 %vm4031_vm3, %v6587_v9  ;;  %3831 = vmatprep.subr.mxu1 %v6587_v9 }
 0x278   :  { %3794 = vmatmul.mubr.msk.f32.gmra.mxu0 %vm40_vm0, %v1676_v50  ;;  %3809 = vmatmul.mubr.msk.f32.gmra.mxu1 %vm40_vm0, %v1679_v11 }
 0x279   :  { %3817 = vmatpush3.xpose.msk.msra.mxu0 %vm40_vm0, %v1730_v57  ;;  %3832 = vmatpush3.xpose.msk.msra.mxu1 %vm40_vm0, %v1733_v13 }
 0x27a   :  { %3796 = vmatprep.mubr.msk.f32.mxu0 %vm4031_vm3, %v6587_v9  ;;  %3818 = vmatprep.subr.mxu0 %v6587_v9 }
 0x27b   :  { %3811 = vmatprep.mubr.msk.f32.mxu1 %vm4031_vm3, %v6587_v9  ;;  %3833 = vmatprep.subr.mxu1 %v6587_v9 }
 0x27c   :  { %3797 = vmatmul.mubr.msk.f32.gmra.mxu0 %vm40_vm0, %v1677_v20  ;;  %3812 = vmatmul.mubr.msk.f32.gmra.mxu1 %vm40_vm0, %v1680_v6 }
 0x27d   :  { %3819 = vmatpush3.xpose.msk.msra.mxu0 %vm40_vm0, %v1729_v26  ;;  %3834 = vmatpush3.xpose.msk.msra.mxu1 %vm40_vm0, %v1732_v39 }
 0x27e   :  { %3820 = vmatprep.mubr.msk.f32.mxu0 %vm4031_vm3, %v6587_v9  ;;  %3844 = vmatprep.subr.mxu0 %v6587_v9 }
 0x27f   :  { %3835 = vmatprep.mubr.msk.f32.mxu1 %vm4031_vm3, %v6587_v9  ;;  %3859 = vmatprep.subr.mxu1 %v6587_v9 }
 0x280   :  { %3821 = vmatmul.mubr.msk.f32.vlgmr.msra.gmra.mxu0 %vm40_vm0, %v1681_v40  ;;  %3836 = vmatmul.mubr.msk.f32.vlgmr.msra.gmra.mxu1 %vm40_vm0, %v1684_v60 }
 0x281   :  { %3845 = vmatpush3.xpose.msk.msra.mxu0 %vm40_vm0, %v1737_v61  ;;  %3860 = vmatpush3.xpose.msk.msra.mxu1 %vm40_vm0, %v1740_v45 }
 0x282   :  { %3823 = vmatprep.mubr.msk.f32.mxu0 %vm4031_vm3, %v6587_v9  ;;  %3846 = vmatprep.subr.mxu0 %v6587_v9 }
 0x283   :  { %3838 = vmatprep.mubr.msk.f32.mxu1 %vm4031_vm3, %v6587_v9  ;;  %3861 = vmatprep.subr.mxu1 %v6587_v9 }
 0x284   :  { %3824 = vmatmul.mubr.msk.f32.gmra.mxu0 %vm40_vm0, %v1682_v2  ;;  %3839 = vmatmul.mubr.msk.f32.gmra.mxu1 %vm40_vm0, %v1685_v18 }
 0x285   :  { %3847 = vmatpush3.xpose.msk.msra.mxu0 %vm40_vm0, %v1736_v14  ;;  %3862 = vmatpush3.xpose.msk.msra.mxu1 %vm40_vm0, %v1739_v59 }
 0x286   :  { %3826 = vmatprep.mubr.msk.f32.mxu0 %vm4031_vm3, %v6587_v9  ;;  %3848 = vmatprep.subr.mxu0 %v6587_v9 }
 0x287   :  { %3841 = vmatprep.mubr.msk.f32.mxu1 %vm4031_vm3, %v6587_v9  ;;  %3863 = vmatprep.subr.mxu1 %v6587_v9 }
 0x288   :  { %3827 = vmatmul.mubr.msk.f32.gmra.mxu0 %vm40_vm0, %v1683_v16  ;;  %3842 = vmatmul.mubr.msk.f32.gmra.mxu1 %vm40_vm0, %v1686_v54 }
 0x289   :  { %3849 = vmatpush3.xpose.msk.msra.mxu0 %vm40_vm0, %v1735_v51  ;;  %3864 = vmatpush3.xpose.msk.msra.mxu1 %vm40_vm0, %v1738_v25 }
 0x28a   :  { %3850 = vmatprep.mubr.msk.f32.mxu0 %vm4031_vm3, %v6587_v9  ;;  %3865 = vmatprep.mubr.msk.f32.mxu1 %vm4031_vm3, %v6587_v9 }
 0x28c   :  { %3851 = vmatmul.mubr.msk.f32.vlgmr.msra.gmra.mxu0 %vm40_vm0, %v1687_v7  ;;  %3866 = vmatmul.mubr.msk.f32.vlgmr.msra.gmra.mxu1 %vm40_vm0, %v1690_v17 }
 0x28d   :  { %3853 = vmatprep.mubr.msk.f32.mxu0 %vm4031_vm3, %v6587_v9  ;;  %3868 = vmatprep.mubr.msk.f32.mxu1 %vm4031_vm3, %v6587_v9 }
 0x290   :  { %3854 = vmatmul.mubr.msk.f32.gmra.mxu0 %vm40_vm0, %v1688_v29  ;;  %3869 = vmatmul.mubr.msk.f32.gmra.mxu1 %vm40_vm0, %v1691_v10 }
 0x291   :  { %3856 = vmatprep.mubr.msk.f32.mxu0 %vm4031_vm3, %v6587_v9  ;;  %3871 = vmatprep.mubr.msk.f32.mxu1 %vm4031_vm3, %v6587_v9 }
 0x294   :  { %3857 = vmatmul.mubr.msk.f32.gmra.mxu0 %vm40_vm0, %v1689_v30  ;;  %3872 = vmatmul.mubr.msk.f32.gmra.mxu1 %vm40_vm0, %v1692_v52 }
 0x2d8   :  { %v1825_v5 = vpop.f32.mrf.mxu0 }
 0x2d9   :  { %3309 = vst.msk [vmem:[%s6614_s24] sm:$0xff] %vm40_vm0, %v1825_v5 }
 0x2da   :  { %v3642_v55 = vpop.f32.mrf.mxu0 }
 0x2dc   :  { %v1830_v42 = vpop.f32.mrf.mxu0 }
 0x2dd   :  { %3310 = vst.msk [vmem:[%s6614_s24 + $0x8] sm:$0xff] %vm40_vm0, %v1830_v42 }
 0x2de   :  { %v3645_v9 = vpop.f32.mrf.mxu0 }
 0x2e0   :  { %v1835_v31 = vpop.f32.mrf.mxu0 }
 0x2e1   :  { %3311 = vst.msk [vmem:[%s6614_s24 + $0x10] sm:$0x3] %vm43_vm1, %v1835_v31 }
 0x2e2   :  { %v3648_v37 = vpop.f32.mrf.mxu0 }
 0x2e4   :  { %v2021_v24 = vpop.f32.mrf.mxu0 }
 0x2e5   :  { %3315 = vst.msk [vmem:[%s6614_s24 + $0x30] sm:$0xff] %vm40_vm0, %v2021_v24 }
 0x2e6   :  { %v3672_v12 = vpop.f32.mrf.mxu0 }
 0x2e8   :  { %v2026_v46 = vpop.f32.mrf.mxu0 }
 0x2e9   :  { %3316 = vst.msk [vmem:[%s6614_s24 + $0x38] sm:$0xff] %vm40_vm0, %v2026_v46 }
 0x2ea   :  { %v3675_v33 = vpop.f32.mrf.mxu0 }
 0x2ec   :  { %v1923_v34 = vpop.f32.mrf.mxu1  ;;  %v2031_v23 = vpop.f32.mrf.mxu0 }
 0x2ed   :  { %3312 = vst.msk [vmem:[%s6614_s24 + $0x18] sm:$0xff] %vm40_vm0, %v1923_v34 }
 0x2ee   :  { %3317 = vst.msk [vmem:[%s6614_s24 + $0x40] sm:$0x3] %vm43_vm1, %v2031_v23  ;;  %v3657_v4 = vpop.f32.mrf.mxu1  ;;  %v3678_v53 = vpop.f32.mrf.mxu0 }
 0x2f0   :  { %v1928_v56 = vpop.f32.mrf.mxu1  ;;  %v2217_v32 = vpop.f32.mrf.mxu0 }
 0x2f1   :  { %3313 = vst.msk [vmem:[%s6614_s24 + $0x20] sm:$0xff] %vm40_vm0, %v1928_v56  ;;  %3321 = vst.msk [vmem:[%s6614_s24 + $0x60] sm:$0xff] %vm40_vm0, %v2217_v32 }
 0x2f2   :  { %v3660_v0 = vpop.f32.mrf.mxu1  ;;  %v3702_v22 = vpop.f32.mrf.mxu0 }
 0x2f4   :  { %v1933_v8 = vpop.f32.mrf.mxu1  ;;  %v2222_v28 = vpop.f32.mrf.mxu0 }
 0x2f5   :  { %3314 = vst.msk [vmem:[%s6614_s24 + $0x28] sm:$0x3] %vm43_vm1, %v1933_v8 }
 0x2f6   :  { %3322 = vst.msk [vmem:[%s6614_s24 + $0x68] sm:$0xff] %vm40_vm0, %v2222_v28  ;;  %v3663_v27 = vpop.f32.mrf.mxu1  ;;  %v3705_v21 = vpop.f32.mrf.mxu0 }
 0x2f8   :  { %v2227_v58 = vpop.f32.mrf.mxu0 }
 0x2f9   :  { %3323 = vst.msk [vmem:[%s6614_s24 + $0x70] sm:$0x3] %vm43_vm1, %v2227_v58 }
 0x2fa   :  { %v3708_v15 = vpop.f32.mrf.mxu0 }
 0x2fc   :  { %v2119_v63 = vpop.f32.mrf.mxu1  ;;  %v2413_v35 = vpop.f32.mrf.mxu0 }
 0x2fd   :  { %3318 = vst.msk [vmem:[%s6614_s24 + $0x48] sm:$0xff] %vm40_vm0, %v2119_v63  ;;  %3327 = vst.msk [vmem:[%s6614_s24 + $0x90] sm:$0xff] %vm40_vm0, %v2413_v35 }
 0x2fe   :  { %v3687_v49 = vpop.f32.mrf.mxu1  ;;  %v3732_v47 = vpop.f32.mrf.mxu0 }
 0x300   :  { %v2124_v19 = vpop.f32.mrf.mxu1  ;;  %v2418_v62 = vpop.f32.mrf.mxu0 }
 0x301   :  { %3319 = vst.msk [vmem:[%s6614_s24 + $0x50] sm:$0xff] %vm40_vm0, %v2124_v19  ;;  %3328 = vst.msk [vmem:[%s6614_s24 + $0x98] sm:$0xff] %vm40_vm0, %v2418_v62 }
 0x302   :  { %v3690_v43 = vpop.f32.mrf.mxu1  ;;  %v3735_v38 = vpop.f32.mrf.mxu0 }
 0x304   :  { %v2129_v1 = vpop.f32.mrf.mxu1  ;;  %v2423_v48 = vpop.f32.mrf.mxu0 }
 0x305   :  { %3320 = vst.msk [vmem:[%s6614_s24 + $0x58] sm:$0x3] %vm43_vm1, %v2129_v1  ;;  %3329 = vst.msk [vmem:[%s6614_s24 + $0xa0] sm:$0x3] %vm43_vm1, %v2423_v48 }
 0x306   :  { %v3693_v3 = vpop.f32.mrf.mxu1  ;;  %v3738_v36 = vpop.f32.mrf.mxu0 }
 0x308   :  { %v2315_v44 = vpop.f32.mrf.mxu1 }
 0x309   :  { %3324 = vst.msk [vmem:[%s6614_s24 + $0x78] sm:$0xff] %vm40_vm0, %v2315_v44 }
 0x30a   :  { %v3717_v41 = vpop.f32.mrf.mxu1 }
 0x30c   :  { %v2320_v50 = vpop.f32.mrf.mxu1 }
 0x30d   :  { %3325 = vst.msk [vmem:[%s6614_s24 + $0x80] sm:$0xff] %vm40_vm0, %v2320_v50 }
 0x30e   :  { %v3720_v11 = vpop.f32.mrf.mxu1 }
 0x310   :  { %v2325_v57 = vpop.f32.mrf.mxu1 }
 0x311   :  { %3326 = vst.msk [vmem:[%s6614_s24 + $0x88] sm:$0x3] %vm43_vm1, %v2325_v57 }
 0x312   :  { %v3723_v13 = vpop.f32.mrf.mxu1 }
 0x314   :  { %v2511_v20 = vpop.f32.mrf.mxu1 }
 0x315   :  { %3330 = vst.msk [vmem:[%s6614_s24 + $0xa8] sm:$0xff] %vm40_vm0, %v2511_v20 }
 0x316   :  { %v3747_v6 = vpop.f32.mrf.mxu1 }
 0x318   :  { %v2516_v26 = vpop.f32.mrf.mxu1 }
 0x319   :  { %3331 = vst.msk [vmem:[%s6614_s24 + $0xb0] sm:$0xff] %vm40_vm0, %v2516_v26 }
 0x31a   :  { %v3750_v39 = vpop.f32.mrf.mxu1 }
 0x31c   :  { %v2521_v40 = vpop.f32.mrf.mxu1 }
 0x31d   :  { %3332 = vst.msk [vmem:[%s6614_s24 + $0xb8] sm:$0x3] %vm43_vm1, %v2521_v40 }
 0x31e   :  { %v3753_v60 = vpop.f32.mrf.mxu1 }
 0x320   :  { %v2609_v61 = vpop.f32.mrf.mxu0  ;;  %v2707_v45 = vpop.f32.mrf.mxu1 }
 0x321   :  { %3333 = vst.msk [vmem:[%s6614_s24 + $0xc0] sm:$0xff] %vm40_vm0, %v2609_v61  ;;  %3336 = vst.msk [vmem:[%s6614_s24 + $0xd8] sm:$0xff] %vm40_vm0, %v2707_v45 }
 0x322   :  { %v3762_v2 = vpop.f32.mrf.mxu0  ;;  %v3777_v18 = vpop.f32.mrf.mxu1 }
 0x328   :  { %v2614_v14 = vpop.f32.mrf.mxu0  ;;  %v2712_v59 = vpop.f32.mrf.mxu1 }
 0x329   :  { %3334 = vst.msk [vmem:[%s6614_s24 + $0xc8] sm:$0xff] %vm40_vm0, %v2614_v14  ;;  %3337 = vst.msk [vmem:[%s6614_s24 + $0xe0] sm:$0xff] %vm40_vm0, %v2712_v59 }
 0x32a   :  { %v3765_v16 = vpop.f32.mrf.mxu0  ;;  %v3780_v54 = vpop.f32.mrf.mxu1 }
 0x330   :  { %v2619_v51 = vpop.f32.mrf.mxu0  ;;  %v2717_v25 = vpop.f32.mrf.mxu1 }
 0x331   :  { %3335 = vst.msk [vmem:[%s6614_s24 + $0xd0] sm:$0x3] %vm43_vm1, %v2619_v51  ;;  %3338 = vst.msk [vmem:[%s6614_s24 + $0xe8] sm:$0x3] %vm43_vm1, %v2717_v25 }
 0x332   :  { %v3768_v7 = vpop.f32.mrf.mxu0  ;;  %v3783_v17 = vpop.f32.mrf.mxu1 }
 0x334   :  { %v2805_v29 = vpop.f32.mrf.mxu0  ;;  %v2903_v10 = vpop.f32.mrf.mxu1 }
 0x335   :  { %3339 = vst.msk [vmem:[%s6614_s24 + $0xf0] sm:$0xff] %vm40_vm0, %v2805_v29  ;;  %3342 = vst.msk [vmem:[%s6614_s24 + $0x108] sm:$0xff] %vm40_vm0, %v2903_v10 }
 0x336   :  { %v3792_v30 = vpop.f32.mrf.mxu0  ;;  %v3807_v52 = vpop.f32.mrf.mxu1 }
 0x338   :  { %v2810_v5 = vpop.f32.mrf.mxu0  ;;  %v2908_v55 = vpop.f32.mrf.mxu1 }
 0x339   :  { %3340 = vst.msk [vmem:[%s6614_s24 + $0xf8] sm:$0xff] %vm40_vm0, %v2810_v5  ;;  %3343 = vst.msk [vmem:[%s6614_s24 + $0x110] sm:$0xff] %vm40_vm0, %v2908_v55 }
 0x33a   :  { %v3795_v42 = vpop.f32.mrf.mxu0  ;;  %v3810_v9 = vpop.f32.mrf.mxu1 }
 0x33c   :  { %v2815_v31 = vpop.f32.mrf.mxu0  ;;  %v2913_v37 = vpop.f32.mrf.mxu1 }
 0x33d   :  { %3341 = vst.msk [vmem:[%s6614_s24 + $0x100] sm:$0x3] %vm43_vm1, %v2815_v31  ;;  %3344 = vst.msk [vmem:[%s6614_s24 + $0x118] sm:$0x3] %vm43_vm1, %v2913_v37 }
 0x33e   :  { %v3798_v24 = vpop.f32.mrf.mxu0  ;;  %v3813_v12 = vpop.f32.mrf.mxu1 }
 0x340   :  { %v3001_v46 = vpop.f32.mrf.mxu0  ;;  %v3099_v33 = vpop.f32.mrf.mxu1 }
 0x341   :  { %3345 = vst.msk [vmem:[%s6614_s24 + $0x120] sm:$0xff] %vm40_vm0, %v3001_v46  ;;  %3348 = vst.msk [vmem:[%s6614_s24 + $0x138] sm:$0xff] %vm40_vm0, %v3099_v33 }
 0x342   :  { %v3822_v34 = vpop.f32.mrf.mxu0  ;;  %v3837_v23 = vpop.f32.mrf.mxu1 }
 0x344   :  { %v3006_v4 = vpop.f32.mrf.mxu0  ;;  %v3104_v53 = vpop.f32.mrf.mxu1 }
 0x345   :  { %3346 = vst.msk [vmem:[%s6614_s24 + $0x128] sm:$0xff] %vm40_vm0, %v3006_v4  ;;  %3349 = vst.msk [vmem:[%s6614_s24 + $0x140] sm:$0xff] %vm40_vm0, %v3104_v53 }
 0x346   :  { %v3825_v56 = vpop.f32.mrf.mxu0  ;;  %v3840_v32 = vpop.f32.mrf.mxu1 }
 0x348   :  { %v3011_v0 = vpop.f32.mrf.mxu0  ;;  %v3109_v22 = vpop.f32.mrf.mxu1 }
 0x349   :  { %3347 = vst.msk [vmem:[%s6614_s24 + $0x130] sm:$0x3] %vm43_vm1, %v3011_v0  ;;  %3350 = vst.msk [vmem:[%s6614_s24 + $0x148] sm:$0x3] %vm43_vm1, %v3109_v22 }
 0x34a   :  { %v3828_v8 = vpop.f32.mrf.mxu0  ;;  %v3843_v28 = vpop.f32.mrf.mxu1 }
 0x34c   :  { %v3197_v27 = vpop.f32.mrf.mxu0  ;;  %v3295_v21 = vpop.f32.mrf.mxu1 }
 0x34d   :  { %3351 = vst.msk [vmem:[%s6614_s24 + $0x150] sm:$0xff] %vm40_vm0, %v3197_v27  ;;  %3354 = vst.msk [vmem:[%s6614_s24 + $0x168] sm:$0xff] %vm40_vm0, %v3295_v21 }
 0x34e   :  { %v3852_v58 = vpop.f32.mrf.mxu0  ;;  %v3867_v15 = vpop.f32.mrf.mxu1 }
 0x350   :  { %v3202_v63 = vpop.f32.mrf.mxu0  ;;  %v3300_v35 = vpop.f32.mrf.mxu1 }
 0x351   :  { %3352 = vst.msk [vmem:[%s6614_s24 + $0x158] sm:$0xff] %vm40_vm0, %v3202_v63  ;;  %3355 = vst.msk [vmem:[%s6614_s24 + $0x170] sm:$0xff] %vm40_vm0, %v3300_v35 }
 0x352   :  { %v3855_v49 = vpop.f32.mrf.mxu0  ;;  %v3870_v47 = vpop.f32.mrf.mxu1 }
 0x354   :  { %v3207_v19 = vpop.f32.mrf.mxu0  ;;  %v3305_v62 = vpop.f32.mrf.mxu1 }
 0x355   :  { %3353 = vst.msk [vmem:[%s6614_s24 + $0x160] sm:$0x3] %vm43_vm1, %v3207_v19  ;;  %3356 = vst.msk [vmem:[%s6614_s24 + $0x178] sm:$0x3] %vm43_vm1, %v3305_v62 }
 0x356   :  { %v3858_v43 = vpop.f32.mrf.mxu0  ;;  %v3873_v38 = vpop.f32.mrf.mxu1 }
 0x357   :  { %3361 = vsyncpa [#allocation5], 1 }
 0x358   :  { %3362 = vsyncpa [#allocation6], 1 }

</bundles_post_ra>
